<compile_context>
chip_gen: v5e
topology: v5e:2x2
jax: 0.10.0
libtpu: 0.0.40
codegen_flags: <defaults>
</compile_context>

<pallas_src>
import functools

import jax
import jax.numpy as jnp
from jax import lax
from jax.experimental import pallas as pl
from jax.experimental.pallas import tpu as pltpu


def _softplus(x):
    return jnp.logaddexp(x, 0.0)


def _render_kernel(
    geom_ref, light_ref,
    w0_ref, w1_ref, w2_ref, wh_ref, b012_ref, bh_ref, nabso_ref, bs_ref,
    out_ref,
    *, n_pts_per_ray: int, inverse_square: bool, gamma_correct: bool,
):
    P = n_pts_per_ray
    TR = geom_ref.shape[1]               # rays in this tile (lane axis)
    f32 = jnp.float32
    bf16 = jnp.bfloat16
    dot = functools.partial(jnp.dot, preferred_element_type=f32)

    # ---------------- per-ray geometry (rows on sublanes, rays on lanes) -----
    org = geom_ref[0:3, :]                                   # (3, TR)
    dirs = geom_ref[3:6, :]                                  # (3, TR)
    d0, d1, d2 = dirs[0:1, :], dirs[1:2, :], dirs[2:3, :]

    dn2 = d0 * d0 + d1 * d1 + d2 * d2                        # (1, TR)
    dnorm = jnp.sqrt(dn2)                                    # ||dir|| (raw)
    inv_dn = lax.rsqrt(jnp.maximum(dn2, 1e-24))              # F.normalize eps
    dh0, dh1, dh2 = d0 * inv_dn, d1 * inv_dn, d2 * inv_dn    # normalized dir

    light = light_ref[...]                                   # (3, 1)
    cos_light = jnp.abs(dh0 * light[0:1, :] + dh1 * light[1:2, :]
                        + dh2 * light[2:3, :])               # (1, TR)

    # ray points, lane-dense (3, P*TR); lane index = p*TR + r --------------
    x = jnp.concatenate(
        [org + geom_ref[6 + p:7 + p, :] * dirs for p in range(P)], axis=-1)
    x_bf = x.astype(bf16)

    # ---------------- WaterDensityFieldHash MLP (transposed, lane-dense) -----
    b0 = b012_ref[:, 0:1]
    b1 = b012_ref[:, 1:2]
    b2 = b012_ref[:, 2:3]
    h = jnp.maximum(dot(w0_ref[...], x_bf) + b0, 0.0)        # (H, P*TR)
    h = jnp.maximum(dot(w1_ref[...], h.astype(bf16)) + b1, 0.0)
    hx = jnp.concatenate([h, x], axis=0).astype(bf16)        # fused xyz skip
    h = jnp.maximum(dot(w2_ref[...], hx) + b2, 0.0)
    raw = dot(wh_ref[...], h.astype(bf16)) + bh_ref[...]     # (7, P*TR)

    # heads: [density | albedo(3) | normal(3)]
    density = _softplus(raw[0:1, :])                         # (1, P*TR)
    albedo = jax.nn.sigmoid(raw[1:4, :])                     # (3, P*TR)
    n0, n1, n2 = raw[4:5, :], raw[5:6, :], raw[6:7, :]
    inv_nn = lax.rsqrt(n0 * n0 + n1 * n1 + n2 * n2 + 1e-12)
    nrm = raw[4:7, :] * inv_nn                               # (3, P*TR)

    nabso = nabso_ref[...]                                   # (3,1) = -softplus(abs)

    # -------- WaterEmissionAbsorptionRaymarcher: running product over P ------
    trans = jnp.ones((1, TR), f32)
    acc_c = jnp.zeros((3, TR), f32)
    acc_r = jnp.zeros((3, TR), f32)
    acc_a = jnp.zeros((3, TR), f32)
    acc_n = jnp.zeros((3, TR), f32)
    for p in range(P):                    # static unroll; 128-aligned lane slices
        lo = p * TR
        len_p = geom_ref[6 + p:7 + p, :]                     # (1, TR)
        if p + 1 < P:
            delta_p = geom_ref[7 + p:8 + p, :] - len_p
        else:
            # TODO(synk): terminal delta duplicates the previous interval; the
            # reference raymarcher's exact convention is not public.
            delta_p = len_p - geom_ref[5 + p:6 + p, :]

        ray_len = len_p * dnorm                              # lengths * ||dir||
        irr = pl.reciprocal(ray_len, approx=True)
        if inverse_square:
            irr = irr * irr
        dir_arrived = cos_light * irr                        # (1, TR)

        nrm_p = nrm[:, lo:lo + TR]                           # (3, TR)
        alb_p = albedo[:, lo:lo + TR]                        # (3, TR)
        cos_surf = jnp.abs(dh0 * nrm_p[0:1, :] + dh1 * nrm_p[1:2, :]
                           + dh2 * nrm_p[2:3, :])            # (1, TR)
        refl = alb_p * (cos_surf * dir_arrived)              # (3, TR)
        atten = jnp.exp(ray_len * nabso)                     # (3, TR)

        alpha = 1.0 - jnp.exp(-density[:, lo:lo + TR] * (delta_p * dnorm))
        w = alpha * trans                                    # exclusive transmittance
        trans = trans * (1.0 - alpha)

        wr = w * refl
        acc_c = acc_c + wr
        acc_r = acc_r + wr * atten
        acc_a = acc_a + w * atten
        acc_n = acc_n + w * nrm_p

    # TODO(synk): WaterEmissionAbsorptionRaymarcher internals are not public;
    # rgb_corrected is the standard attenuation-normalised correction here.
    rgb_x = acc_r * pl.reciprocal(acc_a + 1e-6, approx=True)

    bs = bs_ref[...]                                         # (3,1) = softplus(bs)
    rgb_c = jnp.clip(acc_c + bs, 1e-6, 1.0)
    rgb_r = jnp.clip(acc_r + bs, 1e-6, 1.0)
    rgb_x = jnp.clip(rgb_x, 1e-6, 1.0)
    if gamma_correct:                    # dataset_type == 'real'
        rgb_c = jnp.power(rgb_c, 0.45)
        rgb_r = jnp.power(rgb_r, 0.45)
        rgb_x = jnp.power(rgb_x, 0.45)
    nmap = jnp.clip(-acc_n, -1.0, 1.0) * 0.5 + 0.5

    # single lane-dense packed output: [coarse | refined | corrected | norm]
    out_ref[...] = jnp.concatenate([rgb_c, rgb_r, rgb_x, nmap], axis=0)


def init_params(key, hidden=32):
    ks = jax.random.split(key, 8)

    def w(k, shape, scale=0.1):
        return scale * jax.random.normal(k, shape, jnp.float32)

    H = hidden
    return dict(
        w0=w(ks[0], (3, H)),   b0=jnp.zeros((1, H), jnp.float32),
        w1=w(ks[1], (H, H)),   b1=jnp.zeros((1, H), jnp.float32),
        w2h=w(ks[2], (H, H)),  w2x=w(ks[3], (3, H)),
        b2=jnp.zeros((1, H), jnp.float32),
        wd=w(ks[4], (H, 1)),   bd=jnp.full((1, 1), 0.5, jnp.float32),
        wa=w(ks[5], (H, 3)),   ba=jnp.zeros((1, 3), jnp.float32),
        wn=w(ks[6], (H, 3)),   bn=w(ks[7], (1, 3)),
        absorption_coeff=jnp.array([[-1.0, -2.0, -2.0]], jnp.float32),
        bs=jnp.array([[-4.0, -3.0, -3.0]], jnp.float32),
    )


def water_reflectance_render(origins, directions, lengths, light_dir, params, *,
                             light_falloff="inverse_linear",
                             dataset_type="synthetic",
                             rays_per_tile=128):
    f32 = jnp.float32
    bf16 = jnp.bfloat16
    B, R, P = lengths.shape
    n_rays = B * R
    TR = rays_per_tile
    assert TR % 128 == 0, "rays_per_tile must be a multiple of the 128-lane width"

    # flatten rays and pad the ray count to a multiple of the tile (edge-pad so
    # the dummy rays stay finite; their outputs are sliced off below).
    org2 = origins.reshape(n_rays, 3).astype(f32)
    dir2 = directions.reshape(n_rays, 3).astype(f32)
    len2 = lengths.reshape(n_rays, P).astype(f32)
    n_pad = (-n_rays) % TR
    if n_pad:
        pad = lambda a: jnp.pad(a, ((0, n_pad), (0, 0)), mode="edge")
        org2, dir2, len2 = pad(org2), pad(dir2), pad(len2)
    n_rays_p = n_rays + n_pad
    n_tiles = n_rays_p // TR

    # one packed, lane-dense geometry slab: rows = [org(3) | dir(3) | lengths(P)]
    # (deltas derived in-kernel), sublane-padded to a multiple of 8.
    geom = jnp.concatenate([org2, dir2, len2], axis=1).T        # (6+P, n_rays_p)
    gr_pad = (-geom.shape[0]) % 8
    if gr_pad:
        geom = jnp.concatenate(
            [geom, jnp.zeros((gr_pad, n_rays_p), f32)], axis=0)
    GR = geom.shape[0]

    # fused / transposed weights (bf16 for the MXU); biases & consts stay f32.
    w0t = params["w0"].T.astype(bf16)                                       # (H, 3)
    w1t = params["w1"].T.astype(bf16)                                       # (H, H)
    w2t = jnp.concatenate([params["w2h"].T, params["w2x"].T], axis=1).astype(bf16)   # (H, H+3)
    wht = jnp.concatenate([params["wd"].T, params["wa"].T, params["wn"].T],
                          axis=0).astype(bf16)                              # (7, H)
    b012 = jnp.concatenate([params["b0"], params["b1"], params["b2"]],
                           axis=0).T.astype(f32)                            # (H, 3)
    bh = jnp.concatenate([params["bd"], params["ba"], params["bn"]],
                         axis=1).T.astype(f32)                              # (7, 1)
    light = light_dir.reshape(3, 1).astype(f32)
    nabso = (-_softplus(params["absorption_coeff"])).reshape(3, 1).astype(f32)
    bscol = _softplus(params["bs"]).reshape(3, 1).astype(f32)

    consts = [w0t, w1t, w2t, wht, b012, bh, nabso, bscol]

    def const_spec(a):
        zeros = (0,) * a.ndim
        return pl.BlockSpec(a.shape, lambda i: zeros)

    geom_spec = pl.BlockSpec((GR, TR), lambda i: (0, i))
    out_spec = pl.BlockSpec((12, TR), lambda i: (0, i))

    kernel = functools.partial(
        _render_kernel, n_pts_per_ray=P,
        inverse_square=(light_falloff == "inverse_square"),
        gamma_correct=(dataset_type == "real"))

    packed = pl.pallas_call(
        kernel,
        out_shape=jax.ShapeDtypeStruct((12, n_rays_p), f32),
        grid_spec=pltpu.PrefetchScalarGridSpec(
            num_scalar_prefetch=0,
            grid=(n_tiles,),
            in_specs=[geom_spec, const_spec(light)] + [const_spec(a) for a in consts],
            out_specs=out_spec,
        ),
        compiler_params=pltpu.CompilerParams(
            dimension_semantics=("parallel",),
            vmem_limit_bytes=32 * 1024 * 1024),
    )(geom, light, *consts)

    res = packed[:, :n_rays].T                                   # (n_rays, 12)
    rs = lambda a: a.reshape(B, R, 3)
    return dict(rgb_coarse=rs(res[:, 0:3]), rgb_refined=rs(res[:, 3:6]),
                rgb_corrected=rs(res[:, 6:9]), norm_map=rs(res[:, 9:12]))


# ---------------- plain-JAX glue (no clean Pallas equivalent) ----------------
def sample_images_at_mc_locs(image, xys):
    # nearest-neighbour stand-in for grid_sample gather (data-dependent gather
    # kept in plain JAX).
    B, Hh, Ww, _ = image.shape
    x = jnp.clip(jnp.round((xys[..., 0] + 1.0) * 0.5 * (Ww - 1)), 0, Ww - 1).astype(jnp.int32)
    y = jnp.clip(jnp.round((xys[..., 1] + 1.0) * 0.5 * (Hh - 1)), 0, Hh - 1).astype(jnp.int32)
    b = jnp.arange(B)[:, None]
    return image[b, y, x, :]


def calc_mse(x, y):
    return jnp.mean((x - y) ** 2)


def calc_psnr(x, y):
    return -10.0 * jnp.log10(calc_mse(x, y))


if __name__ == "__main__":
    key = jax.random.PRNGKey(0)
    k_par, k_o, k_d, k_xy, k_im, k_l = jax.random.split(key, 6)

    B, R, P = 2, 128, 8           # batch, n_rays_per_image, n_pts_per_ray
    IMG_H = IMG_W = 16
    near, z_range = 1.0, 4.0      # near_bounding_in_z, near_to_far_range_in_z

    params = init_params(k_par, hidden=32)

    origins = 0.1 * jax.random.normal(k_o, (B, R, 3), jnp.float32)
    directions = jax.random.normal(k_d, (B, R, 3), jnp.float32)
    t = jnp.linspace(0.0, 1.0, P, dtype=jnp.float32)
    lengths = near + z_range * jnp.broadcast_to(t, (B, R, P))
    xys = jax.random.uniform(k_xy, (B, R, 2), jnp.float32, -1.0, 1.0)
    image = jax.random.uniform(k_im, (B, IMG_H, IMG_W, 3), jnp.float32)
    light_dir = jax.random.normal(k_l, (3,), jnp.float32)
    light_dir = light_dir / jnp.linalg.norm(light_dir)

    out = water_reflectance_render(
        origins, directions, lengths, light_dir, params,
        light_falloff="inverse_linear", dataset_type="synthetic")

    rgb_gt = sample_images_at_mc_locs(image, xys)
    out["rgb_gt"] = rgb_gt

    metrics = {}
    for pass_name in ("coarse", "refined"):
        metrics[f"mse_{pass_name}"] = calc_mse(out["rgb_" + pass_name], rgb_gt)
        metrics[f"psnr_{pass_name}"] = calc_psnr(out["rgb_" + pass_name], rgb_gt)

    jax.block_until_ready(out)
    jax.block_until_ready(metrics)
    assert all(bool(jnp.all(jnp.isfinite(v))) for v in out.values())
    assert all(bool(jnp.isfinite(v)) for v in metrics.values())
    print("KERNEL_OK")
</pallas_src>

<mosaic_0001>
module attributes {stable_mosaic.version = 11 : i64} {
  func.func @_render_kernel(%arg0: i32, %arg1: memref<16x128xf32, #tpu.memory_space<vmem>>, %arg2: memref<3x1xf32, #tpu.memory_space<vmem>>, %arg3: memref<32x3xbf16, #tpu.memory_space<vmem>>, %arg4: memref<32x32xbf16, #tpu.memory_space<vmem>>, %arg5: memref<32x35xbf16, #tpu.memory_space<vmem>>, %arg6: memref<7x32xbf16, #tpu.memory_space<vmem>>, %arg7: memref<32x3xf32, #tpu.memory_space<vmem>>, %arg8: memref<7x1xf32, #tpu.memory_space<vmem>>, %arg9: memref<3x1xf32, #tpu.memory_space<vmem>>, %arg10: memref<3x1xf32, #tpu.memory_space<vmem>>, %arg11: memref<12x128xf32, #tpu.memory_space<vmem>>) attributes {dimension_semantics = [#tpu.dimension_semantics<parallel>], iteration_bounds = array<i64: 2>, scalar_prefetch = 0 : i64, scratch_operands = 0 : i64, tpu.core_type = #tpu.core_type<tc>, window_params = [{transform_indices = @transform_0, window_bounds = array<i64: 16, 128>}, {pipeline_mode = #tpu.pipeline_mode<synchronous>, transform_indices = @transform_1, window_bounds = array<i64: 3, 1>}, {pipeline_mode = #tpu.pipeline_mode<synchronous>, transform_indices = @transform_2, window_bounds = array<i64: 32, 3>}, {pipeline_mode = #tpu.pipeline_mode<synchronous>, transform_indices = @transform_3, window_bounds = array<i64: 32, 32>}, {pipeline_mode = #tpu.pipeline_mode<synchronous>, transform_indices = @transform_4, window_bounds = array<i64: 32, 35>}, {pipeline_mode = #tpu.pipeline_mode<synchronous>, transform_indices = @transform_5, window_bounds = array<i64: 7, 32>}, {pipeline_mode = #tpu.pipeline_mode<synchronous>, transform_indices = @transform_6, window_bounds = array<i64: 32, 3>}, {pipeline_mode = #tpu.pipeline_mode<synchronous>, transform_indices = @transform_7, window_bounds = array<i64: 7, 1>}, {pipeline_mode = #tpu.pipeline_mode<synchronous>, transform_indices = @transform_8, window_bounds = array<i64: 3, 1>}, {pipeline_mode = #tpu.pipeline_mode<synchronous>, transform_indices = @transform_9, window_bounds = array<i64: 3, 1>}, {transform_indices = @transform_10, window_bounds = array<i64: 12, 128>}]} {
    %c0 = arith.constant 0 : index
    %c0_0 = arith.constant 0 : index
    %0 = vector.load %arg1[%c0, %c0_0] : memref<16x128xf32, #tpu.memory_space<vmem>>, vector<3x128xf32>
    %c3 = arith.constant 3 : index
    %c0_1 = arith.constant 0 : index
    %1 = vector.load %arg1[%c3, %c0_1] : memref<16x128xf32, #tpu.memory_space<vmem>>, vector<3x128xf32>
    %2 = vector.extract_strided_slice %1 {offsets = [0, 0], sizes = [1, 128], strides = [1, 1]} : vector<3x128xf32> to vector<1x128xf32>
    %3 = vector.extract_strided_slice %1 {offsets = [1, 0], sizes = [1, 128], strides = [1, 1]} : vector<3x128xf32> to vector<1x128xf32>
    %4 = vector.extract_strided_slice %1 {offsets = [2, 0], sizes = [1, 128], strides = [1, 1]} : vector<3x128xf32> to vector<1x128xf32>
    %5 = arith.mulf %2, %2 : vector<1x128xf32>
    %6 = arith.mulf %3, %3 : vector<1x128xf32>
    %7 = arith.addf %5, %6 : vector<1x128xf32>
    %8 = arith.mulf %4, %4 : vector<1x128xf32>
    %9 = arith.addf %7, %8 : vector<1x128xf32>
    %10 = math.sqrt %9 : vector<1x128xf32>
    %cst = arith.constant 1.000000e-24 : f32
    %11 = vector.broadcast %cst : f32 to vector<1x128xf32>
    %12 = arith.maximumf %9, %11 : vector<1x128xf32>
    %13 = math.rsqrt %12 : vector<1x128xf32>
    %14 = arith.mulf %2, %13 : vector<1x128xf32>
    %15 = arith.mulf %3, %13 : vector<1x128xf32>
    %16 = arith.mulf %4, %13 : vector<1x128xf32>
    %c0_2 = arith.constant 0 : index
    %c0_3 = arith.constant 0 : index
    %17 = vector.load %arg2[%c0_2, %c0_3] : memref<3x1xf32, #tpu.memory_space<vmem>>, vector<3x1xf32>
    %18 = vector.extract_strided_slice %17 {offsets = [0, 0], sizes = [1, 1], strides = [1, 1]} : vector<3x1xf32> to vector<1x1xf32>
    %19 = vector.broadcast %18 : vector<1x1xf32> to vector<1x128xf32>
    %20 = arith.mulf %14, %19 : vector<1x128xf32>
    %21 = vector.extract_strided_slice %17 {offsets = [1, 0], sizes = [1, 1], strides = [1, 1]} : vector<3x1xf32> to vector<1x1xf32>
    %22 = vector.broadcast %21 : vector<1x1xf32> to vector<1x128xf32>
    %23 = arith.mulf %15, %22 : vector<1x128xf32>
    %24 = arith.addf %20, %23 : vector<1x128xf32>
    %25 = vector.extract_strided_slice %17 {offsets = [2, 0], sizes = [1, 1], strides = [1, 1]} : vector<3x1xf32> to vector<1x1xf32>
    %26 = vector.broadcast %25 : vector<1x1xf32> to vector<1x128xf32>
    %27 = arith.mulf %16, %26 : vector<1x128xf32>
    %28 = arith.addf %24, %27 : vector<1x128xf32>
    %29 = math.absf %28 : vector<1x128xf32>
    %c6 = arith.constant 6 : index
    %c0_4 = arith.constant 0 : index
    %30 = vector.load %arg1[%c6, %c0_4] : memref<16x128xf32, #tpu.memory_space<vmem>>, vector<1x128xf32>
    %31 = vector.broadcast %30 : vector<1x128xf32> to vector<3x128xf32>
    %32 = arith.mulf %31, %1 : vector<3x128xf32>
    %33 = arith.addf %0, %32 : vector<3x128xf32>
    %c7 = arith.constant 7 : index
    %c0_5 = arith.constant 0 : index
    %34 = vector.load %arg1[%c7, %c0_5] : memref<16x128xf32, #tpu.memory_space<vmem>>, vector<1x128xf32>
    %35 = vector.broadcast %34 : vector<1x128xf32> to vector<3x128xf32>
    %36 = arith.mulf %35, %1 : vector<3x128xf32>
    %37 = arith.addf %0, %36 : vector<3x128xf32>
    %c8 = arith.constant 8 : index
    %c0_6 = arith.constant 0 : index
    %38 = vector.load %arg1[%c8, %c0_6] : memref<16x128xf32, #tpu.memory_space<vmem>>, vector<1x128xf32>
    %39 = vector.broadcast %38 : vector<1x128xf32> to vector<3x128xf32>
    %40 = arith.mulf %39, %1 : vector<3x128xf32>
    %41 = arith.addf %0, %40 : vector<3x128xf32>
    %c9 = arith.constant 9 : index
    %c0_7 = arith.constant 0 : index
    %42 = vector.load %arg1[%c9, %c0_7] : memref<16x128xf32, #tpu.memory_space<vmem>>, vector<1x128xf32>
    %43 = vector.broadcast %42 : vector<1x128xf32> to vector<3x128xf32>
    %44 = arith.mulf %43, %1 : vector<3x128xf32>
    %45 = arith.addf %0, %44 : vector<3x128xf32>
    %c10 = arith.constant 10 : index
    %c0_8 = arith.constant 0 : index
    %46 = vector.load %arg1[%c10, %c0_8] : memref<16x128xf32, #tpu.memory_space<vmem>>, vector<1x128xf32>
    %47 = vector.broadcast %46 : vector<1x128xf32> to vector<3x128xf32>
    %48 = arith.mulf %47, %1 : vector<3x128xf32>
    %49 = arith.addf %0, %48 : vector<3x128xf32>
    %c11 = arith.constant 11 : index
    %c0_9 = arith.constant 0 : index
    %50 = vector.load %arg1[%c11, %c0_9] : memref<16x128xf32, #tpu.memory_space<vmem>>, vector<1x128xf32>
    %51 = vector.broadcast %50 : vector<1x128xf32> to vector<3x128xf32>
    %52 = arith.mulf %51, %1 : vector<3x128xf32>
    %53 = arith.addf %0, %52 : vector<3x128xf32>
    %c12 = arith.constant 12 : index
    %c0_10 = arith.constant 0 : index
    %54 = vector.load %arg1[%c12, %c0_10] : memref<16x128xf32, #tpu.memory_space<vmem>>, vector<1x128xf32>
    %55 = vector.broadcast %54 : vector<1x128xf32> to vector<3x128xf32>
    %56 = arith.mulf %55, %1 : vector<3x128xf32>
    %57 = arith.addf %0, %56 : vector<3x128xf32>
    %c13 = arith.constant 13 : index
    %c0_11 = arith.constant 0 : index
    %58 = vector.load %arg1[%c13, %c0_11] : memref<16x128xf32, #tpu.memory_space<vmem>>, vector<1x128xf32>
    %59 = vector.broadcast %58 : vector<1x128xf32> to vector<3x128xf32>
    %60 = arith.mulf %59, %1 : vector<3x128xf32>
    %61 = arith.addf %0, %60 : vector<3x128xf32>
    %62 = tpu.concatenate %33, %37, %41, %45, %49, %53, %57, %61 in 1 : vector<3x128xf32>, vector<3x128xf32>, vector<3x128xf32>, vector<3x128xf32>, vector<3x128xf32>, vector<3x128xf32>, vector<3x128xf32>, vector<3x128xf32> -> vector<3x1024xf32>
    %63 = arith.truncf %62 : vector<3x1024xf32> to vector<3x1024xbf16>
    %c0_12 = arith.constant 0 : index
    %c0_13 = arith.constant 0 : index
    %64 = vector.load %arg7[%c0_12, %c0_13] : memref<32x3xf32, #tpu.memory_space<vmem>>, vector<32x1xf32>
    %c0_14 = arith.constant 0 : index
    %c1 = arith.constant 1 : index
    %65 = vector.load %arg7[%c0_14, %c1] : memref<32x3xf32, #tpu.memory_space<vmem>>, vector<32x1xf32>
    %c0_15 = arith.constant 0 : index
    %c2 = arith.constant 2 : index
    %66 = vector.load %arg7[%c0_15, %c2] : memref<32x3xf32, #tpu.memory_space<vmem>>, vector<32x1xf32>
    %c0_16 = arith.constant 0 : index
    %c0_17 = arith.constant 0 : index
    %67 = vector.load %arg3[%c0_16, %c0_17] : memref<32x3xbf16, #tpu.memory_space<vmem>>, vector<32x3xbf16>
    %cst_18 = arith.constant dense<0.000000e+00> : vector<32x1024xf32>
    %68 = tpu.matmul %67, %63, %cst_18 {dimension_numbers = #tpu.dot_dimension_numbers<[1], [0], [0], [1], [0, 0, 1, 1], [], []>} : vector<32x3xbf16>, vector<3x1024xbf16>, vector<32x1024xf32> -> vector<32x1024xf32>
    %69 = vector.broadcast %64 : vector<32x1xf32> to vector<32x1024xf32>
    %70 = arith.addf %68, %69 : vector<32x1024xf32>
    %cst_19 = arith.constant 0.000000e+00 : f32
    %71 = vector.broadcast %cst_19 : f32 to vector<32x1024xf32>
    %72 = arith.maximumf %70, %71 : vector<32x1024xf32>
    %c0_20 = arith.constant 0 : index
    %c0_21 = arith.constant 0 : index
    %73 = vector.load %arg4[%c0_20, %c0_21] : memref<32x32xbf16, #tpu.memory_space<vmem>>, vector<32x32xbf16>
    %74 = arith.truncf %72 : vector<32x1024xf32> to vector<32x1024xbf16>
    %cst_22 = arith.constant dense<0.000000e+00> : vector<32x1024xf32>
    %75 = tpu.matmul %73, %74, %cst_22 {dimension_numbers = #tpu.dot_dimension_numbers<[1], [0], [0], [1], [0, 0, 1, 1], [], []>} : vector<32x32xbf16>, vector<32x1024xbf16>, vector<32x1024xf32> -> vector<32x1024xf32>
    %76 = vector.broadcast %65 : vector<32x1xf32> to vector<32x1024xf32>
    %77 = arith.addf %75, %76 : vector<32x1024xf32>
    %cst_23 = arith.constant 0.000000e+00 : f32
    %78 = vector.broadcast %cst_23 : f32 to vector<32x1024xf32>
    %79 = arith.maximumf %77, %78 : vector<32x1024xf32>
    %80 = tpu.concatenate %79, %62 in 0 : vector<32x1024xf32>, vector<3x1024xf32> -> vector<35x1024xf32>
    %81 = arith.truncf %80 : vector<35x1024xf32> to vector<35x1024xbf16>
    %c0_24 = arith.constant 0 : index
    %c0_25 = arith.constant 0 : index
    %82 = vector.load %arg5[%c0_24, %c0_25] : memref<32x35xbf16, #tpu.memory_space<vmem>>, vector<32x35xbf16>
    %cst_26 = arith.constant dense<0.000000e+00> : vector<32x1024xf32>
    %83 = tpu.matmul %82, %81, %cst_26 {dimension_numbers = #tpu.dot_dimension_numbers<[1], [0], [0], [1], [0, 0, 1, 1], [], []>} : vector<32x35xbf16>, vector<35x1024xbf16>, vector<32x1024xf32> -> vector<32x1024xf32>
    %84 = vector.broadcast %66 : vector<32x1xf32> to vector<32x1024xf32>
    %85 = arith.addf %83, %84 : vector<32x1024xf32>
    %cst_27 = arith.constant 0.000000e+00 : f32
    %86 = vector.broadcast %cst_27 : f32 to vector<32x1024xf32>
    %87 = arith.maximumf %85, %86 : vector<32x1024xf32>
    %c0_28 = arith.constant 0 : index
    %c0_29 = arith.constant 0 : index
    %88 = vector.load %arg6[%c0_28, %c0_29] : memref<7x32xbf16, #tpu.memory_space<vmem>>, vector<7x32xbf16>
    %89 = arith.truncf %87 : vector<32x1024xf32> to vector<32x1024xbf16>
    %cst_30 = arith.constant dense<0.000000e+00> : vector<7x1024xf32>
    %90 = tpu.matmul %88, %89, %cst_30 {dimension_numbers = #tpu.dot_dimension_numbers<[1], [0], [0], [1], [0, 0, 1, 1], [], []>} : vector<7x32xbf16>, vector<32x1024xbf16>, vector<7x1024xf32> -> vector<7x1024xf32>
    %c0_31 = arith.constant 0 : index
    %c0_32 = arith.constant 0 : index
    %91 = vector.load %arg8[%c0_31, %c0_32] : memref<7x1xf32, #tpu.memory_space<vmem>>, vector<7x1xf32>
    %92 = vector.broadcast %91 : vector<7x1xf32> to vector<7x1024xf32>
    %93 = arith.addf %90, %92 : vector<7x1024xf32>
    %94 = vector.extract_strided_slice %93 {offsets = [0, 0], sizes = [1, 1024], strides = [1, 1]} : vector<7x1024xf32> to vector<1x1024xf32>
    %cst_33 = arith.constant 0.000000e+00 : f32
    %95 = vector.broadcast %cst_33 : f32 to vector<1x1024xf32>
    %96 = arith.maximumf %94, %95 : vector<1x1024xf32>
    %97 = vector.broadcast %cst_33 : f32 to vector<1x1024xf32>
    %98 = arith.subf %94, %97 : vector<1x1024xf32>
    %99 = arith.cmpf one, %98, %98 : vector<1x1024xf32>
    %100 = vector.broadcast %cst_33 : f32 to vector<1x1024xf32>
    %101 = arith.addf %94, %100 : vector<1x1024xf32>
    %102 = math.absf %98 : vector<1x1024xf32>
    %cst_34 = arith.constant 0.000000e+00 : f32
    %103 = vector.broadcast %cst_34 : f32 to vector<1x1024xf32>
    %104 = arith.subf %103, %102 : vector<1x1024xf32>
    %105 = math.exp %104 : vector<1x1024xf32>
    %106 = math.log1p %105 : vector<1x1024xf32>
    %107 = arith.addf %96, %106 : vector<1x1024xf32>
    %108 = arith.select %99, %101, %107 : vector<1x1024xi1>, vector<1x1024xf32>
    %109 = vector.extract_strided_slice %93 {offsets = [1, 0], sizes = [3, 1024], strides = [1, 1]} : vector<7x1024xf32> to vector<3x1024xf32>
    %110 = arith.negf %109 : vector<3x1024xf32>
    %111 = math.exp %110 : vector<3x1024xf32>
    %cst_35 = arith.constant 1.000000e+00 : f32
    %112 = vector.broadcast %cst_35 : f32 to vector<3x1024xf32>
    %113 = arith.addf %112, %111 : vector<3x1024xf32>
    %114 = arith.divf %112, %113 : vector<3x1024xf32>
    %115 = vector.extract_strided_slice %93 {offsets = [4, 0], sizes = [1, 1024], strides = [1, 1]} : vector<7x1024xf32> to vector<1x1024xf32>
    %116 = vector.extract_strided_slice %93 {offsets = [5, 0], sizes = [1, 1024], strides = [1, 1]} : vector<7x1024xf32> to vector<1x1024xf32>
    %117 = vector.extract_strided_slice %93 {offsets = [6, 0], sizes = [1, 1024], strides = [1, 1]} : vector<7x1024xf32> to vector<1x1024xf32>
    %118 = arith.mulf %115, %115 : vector<1x1024xf32>
    %119 = arith.mulf %116, %116 : vector<1x1024xf32>
    %120 = arith.addf %118, %119 : vector<1x1024xf32>
    %121 = arith.mulf %117, %117 : vector<1x1024xf32>
    %122 = arith.addf %120, %121 : vector<1x1024xf32>
    %cst_36 = arith.constant 9.99999996E-13 : f32
    %123 = vector.broadcast %cst_36 : f32 to vector<1x1024xf32>
    %124 = arith.addf %122, %123 : vector<1x1024xf32>
    %125 = math.rsqrt %124 : vector<1x1024xf32>
    %126 = vector.extract_strided_slice %93 {offsets = [4, 0], sizes = [3, 1024], strides = [1, 1]} : vector<7x1024xf32> to vector<3x1024xf32>
    %127 = vector.broadcast %125 : vector<1x1024xf32> to vector<3x1024xf32>
    %128 = arith.mulf %126, %127 : vector<3x1024xf32>
    %c0_37 = arith.constant 0 : index
    %c0_38 = arith.constant 0 : index
    %129 = vector.load %arg9[%c0_37, %c0_38] : memref<3x1xf32, #tpu.memory_space<vmem>>, vector<3x1xf32>
    %cst_39 = arith.constant 1.000000e+00 : f32
    %130 = vector.broadcast %cst_39 : f32 to vector<1x128xf32>
    %cst_40 = arith.constant 0.000000e+00 : f32
    %131 = vector.broadcast %cst_40 : f32 to vector<3x128xf32>
    %cst_41 = arith.constant 0.000000e+00 : f32
    %132 = vector.broadcast %cst_41 : f32 to vector<3x128xf32>
    %cst_42 = arith.constant 0.000000e+00 : f32
    %133 = vector.broadcast %cst_42 : f32 to vector<3x128xf32>
    %cst_43 = arith.constant 0.000000e+00 : f32
    %134 = vector.broadcast %cst_43 : f32 to vector<3x128xf32>
    %c6_44 = arith.constant 6 : index
    %c0_45 = arith.constant 0 : index
    %135 = vector.load %arg1[%c6_44, %c0_45] : memref<16x128xf32, #tpu.memory_space<vmem>>, vector<1x128xf32>
    %c7_46 = arith.constant 7 : index
    %c0_47 = arith.constant 0 : index
    %136 = vector.load %arg1[%c7_46, %c0_47] : memref<16x128xf32, #tpu.memory_space<vmem>>, vector<1x128xf32>
    %137 = arith.subf %136, %135 : vector<1x128xf32>
    %138 = arith.mulf %135, %10 : vector<1x128xf32>
    %139 = tpu.reciprocal %138 {approx = true} : vector<1x128xf32> -> vector<1x128xf32>
    %140 = arith.mulf %29, %139 : vector<1x128xf32>
    %141 = vector.extract_strided_slice %128 {offsets = [0, 0], sizes = [3, 128], strides = [1, 1]} : vector<3x1024xf32> to vector<3x128xf32>
    %142 = vector.extract_strided_slice %114 {offsets = [0, 0], sizes = [3, 128], strides = [1, 1]} : vector<3x1024xf32> to vector<3x128xf32>
    %143 = vector.extract_strided_slice %141 {offsets = [0, 0], sizes = [1, 128], strides = [1, 1]} : vector<3x128xf32> to vector<1x128xf32>
    %144 = arith.mulf %14, %143 : vector<1x128xf32>
    %145 = vector.extract_strided_slice %141 {offsets = [1, 0], sizes = [1, 128], strides = [1, 1]} : vector<3x128xf32> to vector<1x128xf32>
    %146 = arith.mulf %15, %145 : vector<1x128xf32>
    %147 = arith.addf %144, %146 : vector<1x128xf32>
    %148 = vector.extract_strided_slice %141 {offsets = [2, 0], sizes = [1, 128], strides = [1, 1]} : vector<3x128xf32> to vector<1x128xf32>
    %149 = arith.mulf %16, %148 : vector<1x128xf32>
    %150 = arith.addf %147, %149 : vector<1x128xf32>
    %151 = math.absf %150 : vector<1x128xf32>
    %152 = arith.mulf %151, %140 : vector<1x128xf32>
    %153 = vector.broadcast %152 : vector<1x128xf32> to vector<3x128xf32>
    %154 = arith.mulf %142, %153 : vector<3x128xf32>
    %155 = vector.broadcast %138 : vector<1x128xf32> to vector<3x128xf32>
    %156 = vector.broadcast %129 : vector<3x1xf32> to vector<3x128xf32>
    %157 = arith.mulf %155, %156 : vector<3x128xf32>
    %158 = math.exp %157 : vector<3x128xf32>
    %159 = vector.extract_strided_slice %108 {offsets = [0, 0], sizes = [1, 128], strides = [1, 1]} : vector<1x1024xf32> to vector<1x128xf32>
    %cst_48 = arith.constant 0.000000e+00 : f32
    %160 = vector.broadcast %cst_48 : f32 to vector<1x128xf32>
    %161 = arith.subf %160, %159 : vector<1x128xf32>
    %162 = arith.mulf %137, %10 : vector<1x128xf32>
    %163 = arith.mulf %161, %162 : vector<1x128xf32>
    %164 = math.exp %163 : vector<1x128xf32>
    %cst_49 = arith.constant 1.000000e+00 : f32
    %165 = vector.broadcast %cst_49 : f32 to vector<1x128xf32>
    %166 = arith.subf %165, %164 : vector<1x128xf32>
    %167 = arith.mulf %166, %130 : vector<1x128xf32>
    %cst_50 = arith.constant 1.000000e+00 : f32
    %168 = vector.broadcast %cst_50 : f32 to vector<1x128xf32>
    %169 = arith.subf %168, %166 : vector<1x128xf32>
    %170 = arith.mulf %130, %169 : vector<1x128xf32>
    %171 = vector.broadcast %167 : vector<1x128xf32> to vector<3x128xf32>
    %172 = arith.mulf %171, %154 : vector<3x128xf32>
    %173 = arith.addf %131, %172 : vector<3x128xf32>
    %174 = arith.mulf %172, %158 : vector<3x128xf32>
    %175 = arith.addf %132, %174 : vector<3x128xf32>
    %176 = vector.broadcast %167 : vector<1x128xf32> to vector<3x128xf32>
    %177 = arith.mulf %176, %158 : vector<3x128xf32>
    %178 = arith.addf %133, %177 : vector<3x128xf32>
    %179 = vector.broadcast %167 : vector<1x128xf32> to vector<3x128xf32>
    %180 = arith.mulf %179, %141 : vector<3x128xf32>
    %181 = arith.addf %134, %180 : vector<3x128xf32>
    %c7_51 = arith.constant 7 : index
    %c0_52 = arith.constant 0 : index
    %182 = vector.load %arg1[%c7_51, %c0_52] : memref<16x128xf32, #tpu.memory_space<vmem>>, vector<1x128xf32>
    %c8_53 = arith.constant 8 : index
    %c0_54 = arith.constant 0 : index
    %183 = vector.load %arg1[%c8_53, %c0_54] : memref<16x128xf32, #tpu.memory_space<vmem>>, vector<1x128xf32>
    %184 = arith.subf %183, %182 : vector<1x128xf32>
    %185 = arith.mulf %182, %10 : vector<1x128xf32>
    %186 = tpu.reciprocal %185 {approx = true} : vector<1x128xf32> -> vector<1x128xf32>
    %187 = arith.mulf %29, %186 : vector<1x128xf32>
    %188 = vector.extract_strided_slice %128 {offsets = [0, 128], sizes = [3, 128], strides = [1, 1]} : vector<3x1024xf32> to vector<3x128xf32>
    %189 = vector.extract_strided_slice %114 {offsets = [0, 128], sizes = [3, 128], strides = [1, 1]} : vector<3x1024xf32> to vector<3x128xf32>
    %190 = vector.extract_strided_slice %188 {offsets = [0, 0], sizes = [1, 128], strides = [1, 1]} : vector<3x128xf32> to vector<1x128xf32>
    %191 = arith.mulf %14, %190 : vector<1x128xf32>
    %192 = vector.extract_strided_slice %188 {offsets = [1, 0], sizes = [1, 128], strides = [1, 1]} : vector<3x128xf32> to vector<1x128xf32>
    %193 = arith.mulf %15, %192 : vector<1x128xf32>
    %194 = arith.addf %191, %193 : vector<1x128xf32>
    %195 = vector.extract_strided_slice %188 {offsets = [2, 0], sizes = [1, 128], strides = [1, 1]} : vector<3x128xf32> to vector<1x128xf32>
    %196 = arith.mulf %16, %195 : vector<1x128xf32>
    %197 = arith.addf %194, %196 : vector<1x128xf32>
    %198 = math.absf %197 : vector<1x128xf32>
    %199 = arith.mulf %198, %187 : vector<1x128xf32>
    %200 = vector.broadcast %199 : vector<1x128xf32> to vector<3x128xf32>
    %201 = arith.mulf %189, %200 : vector<3x128xf32>
    %202 = vector.broadcast %185 : vector<1x128xf32> to vector<3x128xf32>
    %203 = vector.broadcast %129 : vector<3x1xf32> to vector<3x128xf32>
    %204 = arith.mulf %202, %203 : vector<3x128xf32>
    %205 = math.exp %204 : vector<3x128xf32>
    %206 = vector.extract_strided_slice %108 {offsets = [0, 128], sizes = [1, 128], strides = [1, 1]} : vector<1x1024xf32> to vector<1x128xf32>
    %cst_55 = arith.constant 0.000000e+00 : f32
    %207 = vector.broadcast %cst_55 : f32 to vector<1x128xf32>
    %208 = arith.subf %207, %206 : vector<1x128xf32>
    %209 = arith.mulf %184, %10 : vector<1x128xf32>
    %210 = arith.mulf %208, %209 : vector<1x128xf32>
    %211 = math.exp %210 : vector<1x128xf32>
    %cst_56 = arith.constant 1.000000e+00 : f32
    %212 = vector.broadcast %cst_56 : f32 to vector<1x128xf32>
    %213 = arith.subf %212, %211 : vector<1x128xf32>
    %214 = arith.mulf %213, %170 : vector<1x128xf32>
    %cst_57 = arith.constant 1.000000e+00 : f32
    %215 = vector.broadcast %cst_57 : f32 to vector<1x128xf32>
    %216 = arith.subf %215, %213 : vector<1x128xf32>
    %217 = arith.mulf %170, %216 : vector<1x128xf32>
    %218 = vector.broadcast %214 : vector<1x128xf32> to vector<3x128xf32>
    %219 = arith.mulf %218, %201 : vector<3x128xf32>
    %220 = arith.addf %173, %219 : vector<3x128xf32>
    %221 = arith.mulf %219, %205 : vector<3x128xf32>
    %222 = arith.addf %175, %221 : vector<3x128xf32>
    %223 = vector.broadcast %214 : vector<1x128xf32> to vector<3x128xf32>
    %224 = arith.mulf %223, %205 : vector<3x128xf32>
    %225 = arith.addf %178, %224 : vector<3x128xf32>
    %226 = vector.broadcast %214 : vector<1x128xf32> to vector<3x128xf32>
    %227 = arith.mulf %226, %188 : vector<3x128xf32>
    %228 = arith.addf %181, %227 : vector<3x128xf32>
    %c8_58 = arith.constant 8 : index
    %c0_59 = arith.constant 0 : index
    %229 = vector.load %arg1[%c8_58, %c0_59] : memref<16x128xf32, #tpu.memory_space<vmem>>, vector<1x128xf32>
    %c9_60 = arith.constant 9 : index
    %c0_61 = arith.constant 0 : index
    %230 = vector.load %arg1[%c9_60, %c0_61] : memref<16x128xf32, #tpu.memory_space<vmem>>, vector<1x128xf32>
    %231 = arith.subf %230, %229 : vector<1x128xf32>
    %232 = arith.mulf %229, %10 : vector<1x128xf32>
    %233 = tpu.reciprocal %232 {approx = true} : vector<1x128xf32> -> vector<1x128xf32>
    %234 = arith.mulf %29, %233 : vector<1x128xf32>
    %235 = vector.extract_strided_slice %128 {offsets = [0, 256], sizes = [3, 128], strides = [1, 1]} : vector<3x1024xf32> to vector<3x128xf32>
    %236 = vector.extract_strided_slice %114 {offsets = [0, 256], sizes = [3, 128], strides = [1, 1]} : vector<3x1024xf32> to vector<3x128xf32>
    %237 = vector.extract_strided_slice %235 {offsets = [0, 0], sizes = [1, 128], strides = [1, 1]} : vector<3x128xf32> to vector<1x128xf32>
    %238 = arith.mulf %14, %237 : vector<1x128xf32>
    %239 = vector.extract_strided_slice %235 {offsets = [1, 0], sizes = [1, 128], strides = [1, 1]} : vector<3x128xf32> to vector<1x128xf32>
    %240 = arith.mulf %15, %239 : vector<1x128xf32>
    %241 = arith.addf %238, %240 : vector<1x128xf32>
    %242 = vector.extract_strided_slice %235 {offsets = [2, 0], sizes = [1, 128], strides = [1, 1]} : vector<3x128xf32> to vector<1x128xf32>
    %243 = arith.mulf %16, %242 : vector<1x128xf32>
    %244 = arith.addf %241, %243 : vector<1x128xf32>
    %245 = math.absf %244 : vector<1x128xf32>
    %246 = arith.mulf %245, %234 : vector<1x128xf32>
    %247 = vector.broadcast %246 : vector<1x128xf32> to vector<3x128xf32>
    %248 = arith.mulf %236, %247 : vector<3x128xf32>
    %249 = vector.broadcast %232 : vector<1x128xf32> to vector<3x128xf32>
    %250 = vector.broadcast %129 : vector<3x1xf32> to vector<3x128xf32>
    %251 = arith.mulf %249, %250 : vector<3x128xf32>
    %252 = math.exp %251 : vector<3x128xf32>
    %253 = vector.extract_strided_slice %108 {offsets = [0, 256], sizes = [1, 128], strides = [1, 1]} : vector<1x1024xf32> to vector<1x128xf32>
    %cst_62 = arith.constant 0.000000e+00 : f32
    %254 = vector.broadcast %cst_62 : f32 to vector<1x128xf32>
    %255 = arith.subf %254, %253 : vector<1x128xf32>
    %256 = arith.mulf %231, %10 : vector<1x128xf32>
    %257 = arith.mulf %255, %256 : vector<1x128xf32>
    %258 = math.exp %257 : vector<1x128xf32>
    %cst_63 = arith.constant 1.000000e+00 : f32
    %259 = vector.broadcast %cst_63 : f32 to vector<1x128xf32>
    %260 = arith.subf %259, %258 : vector<1x128xf32>
    %261 = arith.mulf %260, %217 : vector<1x128xf32>
    %cst_64 = arith.constant 1.000000e+00 : f32
    %262 = vector.broadcast %cst_64 : f32 to vector<1x128xf32>
    %263 = arith.subf %262, %260 : vector<1x128xf32>
    %264 = arith.mulf %217, %263 : vector<1x128xf32>
    %265 = vector.broadcast %261 : vector<1x128xf32> to vector<3x128xf32>
    %266 = arith.mulf %265, %248 : vector<3x128xf32>
    %267 = arith.addf %220, %266 : vector<3x128xf32>
    %268 = arith.mulf %266, %252 : vector<3x128xf32>
    %269 = arith.addf %222, %268 : vector<3x128xf32>
    %270 = vector.broadcast %261 : vector<1x128xf32> to vector<3x128xf32>
    %271 = arith.mulf %270, %252 : vector<3x128xf32>
    %272 = arith.addf %225, %271 : vector<3x128xf32>
    %273 = vector.broadcast %261 : vector<1x128xf32> to vector<3x128xf32>
    %274 = arith.mulf %273, %235 : vector<3x128xf32>
    %275 = arith.addf %228, %274 : vector<3x128xf32>
    %c9_65 = arith.constant 9 : index
    %c0_66 = arith.constant 0 : index
    %276 = vector.load %arg1[%c9_65, %c0_66] : memref<16x128xf32, #tpu.memory_space<vmem>>, vector<1x128xf32>
    %c10_67 = arith.constant 10 : index
    %c0_68 = arith.constant 0 : index
    %277 = vector.load %arg1[%c10_67, %c0_68] : memref<16x128xf32, #tpu.memory_space<vmem>>, vector<1x128xf32>
    %278 = arith.subf %277, %276 : vector<1x128xf32>
    %279 = arith.mulf %276, %10 : vector<1x128xf32>
    %280 = tpu.reciprocal %279 {approx = true} : vector<1x128xf32> -> vector<1x128xf32>
    %281 = arith.mulf %29, %280 : vector<1x128xf32>
    %282 = vector.extract_strided_slice %128 {offsets = [0, 384], sizes = [3, 128], strides = [1, 1]} : vector<3x1024xf32> to vector<3x128xf32>
    %283 = vector.extract_strided_slice %114 {offsets = [0, 384], sizes = [3, 128], strides = [1, 1]} : vector<3x1024xf32> to vector<3x128xf32>
    %284 = vector.extract_strided_slice %282 {offsets = [0, 0], sizes = [1, 128], strides = [1, 1]} : vector<3x128xf32> to vector<1x128xf32>
    %285 = arith.mulf %14, %284 : vector<1x128xf32>
    %286 = vector.extract_strided_slice %282 {offsets = [1, 0], sizes = [1, 128], strides = [1, 1]} : vector<3x128xf32> to vector<1x128xf32>
    %287 = arith.mulf %15, %286 : vector<1x128xf32>
    %288 = arith.addf %285, %287 : vector<1x128xf32>
    %289 = vector.extract_strided_slice %282 {offsets = [2, 0], sizes = [1, 128], strides = [1, 1]} : vector<3x128xf32> to vector<1x128xf32>
    %290 = arith.mulf %16, %289 : vector<1x128xf32>
    %291 = arith.addf %288, %290 : vector<1x128xf32>
    %292 = math.absf %291 : vector<1x128xf32>
    %293 = arith.mulf %292, %281 : vector<1x128xf32>
    %294 = vector.broadcast %293 : vector<1x128xf32> to vector<3x128xf32>
    %295 = arith.mulf %283, %294 : vector<3x128xf32>
    %296 = vector.broadcast %279 : vector<1x128xf32> to vector<3x128xf32>
    %297 = vector.broadcast %129 : vector<3x1xf32> to vector<3x128xf32>
    %298 = arith.mulf %296, %297 : vector<3x128xf32>
    %299 = math.exp %298 : vector<3x128xf32>
    %300 = vector.extract_strided_slice %108 {offsets = [0, 384], sizes = [1, 128], strides = [1, 1]} : vector<1x1024xf32> to vector<1x128xf32>
    %cst_69 = arith.constant 0.000000e+00 : f32
    %301 = vector.broadcast %cst_69 : f32 to vector<1x128xf32>
    %302 = arith.subf %301, %300 : vector<1x128xf32>
    %303 = arith.mulf %278, %10 : vector<1x128xf32>
    %304 = arith.mulf %302, %303 : vector<1x128xf32>
    %305 = math.exp %304 : vector<1x128xf32>
    %cst_70 = arith.constant 1.000000e+00 : f32
    %306 = vector.broadcast %cst_70 : f32 to vector<1x128xf32>
    %307 = arith.subf %306, %305 : vector<1x128xf32>
    %308 = arith.mulf %307, %264 : vector<1x128xf32>
    %cst_71 = arith.constant 1.000000e+00 : f32
    %309 = vector.broadcast %cst_71 : f32 to vector<1x128xf32>
    %310 = arith.subf %309, %307 : vector<1x128xf32>
    %311 = arith.mulf %264, %310 : vector<1x128xf32>
    %312 = vector.broadcast %308 : vector<1x128xf32> to vector<3x128xf32>
    %313 = arith.mulf %312, %295 : vector<3x128xf32>
    %314 = arith.addf %267, %313 : vector<3x128xf32>
    %315 = arith.mulf %313, %299 : vector<3x128xf32>
    %316 = arith.addf %269, %315 : vector<3x128xf32>
    %317 = vector.broadcast %308 : vector<1x128xf32> to vector<3x128xf32>
    %318 = arith.mulf %317, %299 : vector<3x128xf32>
    %319 = arith.addf %272, %318 : vector<3x128xf32>
    %320 = vector.broadcast %308 : vector<1x128xf32> to vector<3x128xf32>
    %321 = arith.mulf %320, %282 : vector<3x128xf32>
    %322 = arith.addf %275, %321 : vector<3x128xf32>
    %c10_72 = arith.constant 10 : index
    %c0_73 = arith.constant 0 : index
    %323 = vector.load %arg1[%c10_72, %c0_73] : memref<16x128xf32, #tpu.memory_space<vmem>>, vector<1x128xf32>
    %c11_74 = arith.constant 11 : index
    %c0_75 = arith.constant 0 : index
    %324 = vector.load %arg1[%c11_74, %c0_75] : memref<16x128xf32, #tpu.memory_space<vmem>>, vector<1x128xf32>
    %325 = arith.subf %324, %323 : vector<1x128xf32>
    %326 = arith.mulf %323, %10 : vector<1x128xf32>
    %327 = tpu.reciprocal %326 {approx = true} : vector<1x128xf32> -> vector<1x128xf32>
    %328 = arith.mulf %29, %327 : vector<1x128xf32>
    %329 = vector.extract_strided_slice %128 {offsets = [0, 512], sizes = [3, 128], strides = [1, 1]} : vector<3x1024xf32> to vector<3x128xf32>
    %330 = vector.extract_strided_slice %114 {offsets = [0, 512], sizes = [3, 128], strides = [1, 1]} : vector<3x1024xf32> to vector<3x128xf32>
    %331 = vector.extract_strided_slice %329 {offsets = [0, 0], sizes = [1, 128], strides = [1, 1]} : vector<3x128xf32> to vector<1x128xf32>
    %332 = arith.mulf %14, %331 : vector<1x128xf32>
    %333 = vector.extract_strided_slice %329 {offsets = [1, 0], sizes = [1, 128], strides = [1, 1]} : vector<3x128xf32> to vector<1x128xf32>
    %334 = arith.mulf %15, %333 : vector<1x128xf32>
    %335 = arith.addf %332, %334 : vector<1x128xf32>
    %336 = vector.extract_strided_slice %329 {offsets = [2, 0], sizes = [1, 128], strides = [1, 1]} : vector<3x128xf32> to vector<1x128xf32>
    %337 = arith.mulf %16, %336 : vector<1x128xf32>
    %338 = arith.addf %335, %337 : vector<1x128xf32>
    %339 = math.absf %338 : vector<1x128xf32>
    %340 = arith.mulf %339, %328 : vector<1x128xf32>
    %341 = vector.broadcast %340 : vector<1x128xf32> to vector<3x128xf32>
    %342 = arith.mulf %330, %341 : vector<3x128xf32>
    %343 = vector.broadcast %326 : vector<1x128xf32> to vector<3x128xf32>
    %344 = vector.broadcast %129 : vector<3x1xf32> to vector<3x128xf32>
    %345 = arith.mulf %343, %344 : vector<3x128xf32>
    %346 = math.exp %345 : vector<3x128xf32>
    %347 = vector.extract_strided_slice %108 {offsets = [0, 512], sizes = [1, 128], strides = [1, 1]} : vector<1x1024xf32> to vector<1x128xf32>
    %cst_76 = arith.constant 0.000000e+00 : f32
    %348 = vector.broadcast %cst_76 : f32 to vector<1x128xf32>
    %349 = arith.subf %348, %347 : vector<1x128xf32>
    %350 = arith.mulf %325, %10 : vector<1x128xf32>
    %351 = arith.mulf %349, %350 : vector<1x128xf32>
    %352 = math.exp %351 : vector<1x128xf32>
    %cst_77 = arith.constant 1.000000e+00 : f32
    %353 = vector.broadcast %cst_77 : f32 to vector<1x128xf32>
    %354 = arith.subf %353, %352 : vector<1x128xf32>
    %355 = arith.mulf %354, %311 : vector<1x128xf32>
    %cst_78 = arith.constant 1.000000e+00 : f32
    %356 = vector.broadcast %cst_78 : f32 to vector<1x128xf32>
    %357 = arith.subf %356, %354 : vector<1x128xf32>
    %358 = arith.mulf %311, %357 : vector<1x128xf32>
    %359 = vector.broadcast %355 : vector<1x128xf32> to vector<3x128xf32>
    %360 = arith.mulf %359, %342 : vector<3x128xf32>
    %361 = arith.addf %314, %360 : vector<3x128xf32>
    %362 = arith.mulf %360, %346 : vector<3x128xf32>
    %363 = arith.addf %316, %362 : vector<3x128xf32>
    %364 = vector.broadcast %355 : vector<1x128xf32> to vector<3x128xf32>
    %365 = arith.mulf %364, %346 : vector<3x128xf32>
    %366 = arith.addf %319, %365 : vector<3x128xf32>
    %367 = vector.broadcast %355 : vector<1x128xf32> to vector<3x128xf32>
    %368 = arith.mulf %367, %329 : vector<3x128xf32>
    %369 = arith.addf %322, %368 : vector<3x128xf32>
    %c11_79 = arith.constant 11 : index
    %c0_80 = arith.constant 0 : index
    %370 = vector.load %arg1[%c11_79, %c0_80] : memref<16x128xf32, #tpu.memory_space<vmem>>, vector<1x128xf32>
    %c12_81 = arith.constant 12 : index
    %c0_82 = arith.constant 0 : index
    %371 = vector.load %arg1[%c12_81, %c0_82] : memref<16x128xf32, #tpu.memory_space<vmem>>, vector<1x128xf32>
    %372 = arith.subf %371, %370 : vector<1x128xf32>
    %373 = arith.mulf %370, %10 : vector<1x128xf32>
    %374 = tpu.reciprocal %373 {approx = true} : vector<1x128xf32> -> vector<1x128xf32>
    %375 = arith.mulf %29, %374 : vector<1x128xf32>
    %376 = vector.extract_strided_slice %128 {offsets = [0, 640], sizes = [3, 128], strides = [1, 1]} : vector<3x1024xf32> to vector<3x128xf32>
    %377 = vector.extract_strided_slice %114 {offsets = [0, 640], sizes = [3, 128], strides = [1, 1]} : vector<3x1024xf32> to vector<3x128xf32>
    %378 = vector.extract_strided_slice %376 {offsets = [0, 0], sizes = [1, 128], strides = [1, 1]} : vector<3x128xf32> to vector<1x128xf32>
    %379 = arith.mulf %14, %378 : vector<1x128xf32>
    %380 = vector.extract_strided_slice %376 {offsets = [1, 0], sizes = [1, 128], strides = [1, 1]} : vector<3x128xf32> to vector<1x128xf32>
    %381 = arith.mulf %15, %380 : vector<1x128xf32>
    %382 = arith.addf %379, %381 : vector<1x128xf32>
    %383 = vector.extract_strided_slice %376 {offsets = [2, 0], sizes = [1, 128], strides = [1, 1]} : vector<3x128xf32> to vector<1x128xf32>
    %384 = arith.mulf %16, %383 : vector<1x128xf32>
    %385 = arith.addf %382, %384 : vector<1x128xf32>
    %386 = math.absf %385 : vector<1x128xf32>
    %387 = arith.mulf %386, %375 : vector<1x128xf32>
    %388 = vector.broadcast %387 : vector<1x128xf32> to vector<3x128xf32>
    %389 = arith.mulf %377, %388 : vector<3x128xf32>
    %390 = vector.broadcast %373 : vector<1x128xf32> to vector<3x128xf32>
    %391 = vector.broadcast %129 : vector<3x1xf32> to vector<3x128xf32>
    %392 = arith.mulf %390, %391 : vector<3x128xf32>
    %393 = math.exp %392 : vector<3x128xf32>
    %394 = vector.extract_strided_slice %108 {offsets = [0, 640], sizes = [1, 128], strides = [1, 1]} : vector<1x1024xf32> to vector<1x128xf32>
    %cst_83 = arith.constant 0.000000e+00 : f32
    %395 = vector.broadcast %cst_83 : f32 to vector<1x128xf32>
    %396 = arith.subf %395, %394 : vector<1x128xf32>
    %397 = arith.mulf %372, %10 : vector<1x128xf32>
    %398 = arith.mulf %396, %397 : vector<1x128xf32>
    %399 = math.exp %398 : vector<1x128xf32>
    %cst_84 = arith.constant 1.000000e+00 : f32
    %400 = vector.broadcast %cst_84 : f32 to vector<1x128xf32>
    %401 = arith.subf %400, %399 : vector<1x128xf32>
    %402 = arith.mulf %401, %358 : vector<1x128xf32>
    %cst_85 = arith.constant 1.000000e+00 : f32
    %403 = vector.broadcast %cst_85 : f32 to vector<1x128xf32>
    %404 = arith.subf %403, %401 : vector<1x128xf32>
    %405 = arith.mulf %358, %404 : vector<1x128xf32>
    %406 = vector.broadcast %402 : vector<1x128xf32> to vector<3x128xf32>
    %407 = arith.mulf %406, %389 : vector<3x128xf32>
    %408 = arith.addf %361, %407 : vector<3x128xf32>
    %409 = arith.mulf %407, %393 : vector<3x128xf32>
    %410 = arith.addf %363, %409 : vector<3x128xf32>
    %411 = vector.broadcast %402 : vector<1x128xf32> to vector<3x128xf32>
    %412 = arith.mulf %411, %393 : vector<3x128xf32>
    %413 = arith.addf %366, %412 : vector<3x128xf32>
    %414 = vector.broadcast %402 : vector<1x128xf32> to vector<3x128xf32>
    %415 = arith.mulf %414, %376 : vector<3x128xf32>
    %416 = arith.addf %369, %415 : vector<3x128xf32>
    %c12_86 = arith.constant 12 : index
    %c0_87 = arith.constant 0 : index
    %417 = vector.load %arg1[%c12_86, %c0_87] : memref<16x128xf32, #tpu.memory_space<vmem>>, vector<1x128xf32>
    %c13_88 = arith.constant 13 : index
    %c0_89 = arith.constant 0 : index
    %418 = vector.load %arg1[%c13_88, %c0_89] : memref<16x128xf32, #tpu.memory_space<vmem>>, vector<1x128xf32>
    %419 = arith.subf %418, %417 : vector<1x128xf32>
    %420 = arith.mulf %417, %10 : vector<1x128xf32>
    %421 = tpu.reciprocal %420 {approx = true} : vector<1x128xf32> -> vector<1x128xf32>
    %422 = arith.mulf %29, %421 : vector<1x128xf32>
    %423 = vector.extract_strided_slice %128 {offsets = [0, 768], sizes = [3, 128], strides = [1, 1]} : vector<3x1024xf32> to vector<3x128xf32>
    %424 = vector.extract_strided_slice %114 {offsets = [0, 768], sizes = [3, 128], strides = [1, 1]} : vector<3x1024xf32> to vector<3x128xf32>
    %425 = vector.extract_strided_slice %423 {offsets = [0, 0], sizes = [1, 128], strides = [1, 1]} : vector<3x128xf32> to vector<1x128xf32>
    %426 = arith.mulf %14, %425 : vector<1x128xf32>
    %427 = vector.extract_strided_slice %423 {offsets = [1, 0], sizes = [1, 128], strides = [1, 1]} : vector<3x128xf32> to vector<1x128xf32>
    %428 = arith.mulf %15, %427 : vector<1x128xf32>
    %429 = arith.addf %426, %428 : vector<1x128xf32>
    %430 = vector.extract_strided_slice %423 {offsets = [2, 0], sizes = [1, 128], strides = [1, 1]} : vector<3x128xf32> to vector<1x128xf32>
    %431 = arith.mulf %16, %430 : vector<1x128xf32>
    %432 = arith.addf %429, %431 : vector<1x128xf32>
    %433 = math.absf %432 : vector<1x128xf32>
    %434 = arith.mulf %433, %422 : vector<1x128xf32>
    %435 = vector.broadcast %434 : vector<1x128xf32> to vector<3x128xf32>
    %436 = arith.mulf %424, %435 : vector<3x128xf32>
    %437 = vector.broadcast %420 : vector<1x128xf32> to vector<3x128xf32>
    %438 = vector.broadcast %129 : vector<3x1xf32> to vector<3x128xf32>
    %439 = arith.mulf %437, %438 : vector<3x128xf32>
    %440 = math.exp %439 : vector<3x128xf32>
    %441 = vector.extract_strided_slice %108 {offsets = [0, 768], sizes = [1, 128], strides = [1, 1]} : vector<1x1024xf32> to vector<1x128xf32>
    %cst_90 = arith.constant 0.000000e+00 : f32
    %442 = vector.broadcast %cst_90 : f32 to vector<1x128xf32>
    %443 = arith.subf %442, %441 : vector<1x128xf32>
    %444 = arith.mulf %419, %10 : vector<1x128xf32>
    %445 = arith.mulf %443, %444 : vector<1x128xf32>
    %446 = math.exp %445 : vector<1x128xf32>
    %cst_91 = arith.constant 1.000000e+00 : f32
    %447 = vector.broadcast %cst_91 : f32 to vector<1x128xf32>
    %448 = arith.subf %447, %446 : vector<1x128xf32>
    %449 = arith.mulf %448, %405 : vector<1x128xf32>
    %cst_92 = arith.constant 1.000000e+00 : f32
    %450 = vector.broadcast %cst_92 : f32 to vector<1x128xf32>
    %451 = arith.subf %450, %448 : vector<1x128xf32>
    %452 = arith.mulf %405, %451 : vector<1x128xf32>
    %453 = vector.broadcast %449 : vector<1x128xf32> to vector<3x128xf32>
    %454 = arith.mulf %453, %436 : vector<3x128xf32>
    %455 = arith.addf %408, %454 : vector<3x128xf32>
    %456 = arith.mulf %454, %440 : vector<3x128xf32>
    %457 = arith.addf %410, %456 : vector<3x128xf32>
    %458 = vector.broadcast %449 : vector<1x128xf32> to vector<3x128xf32>
    %459 = arith.mulf %458, %440 : vector<3x128xf32>
    %460 = arith.addf %413, %459 : vector<3x128xf32>
    %461 = vector.broadcast %449 : vector<1x128xf32> to vector<3x128xf32>
    %462 = arith.mulf %461, %423 : vector<3x128xf32>
    %463 = arith.addf %416, %462 : vector<3x128xf32>
    %c13_93 = arith.constant 13 : index
    %c0_94 = arith.constant 0 : index
    %464 = vector.load %arg1[%c13_93, %c0_94] : memref<16x128xf32, #tpu.memory_space<vmem>>, vector<1x128xf32>
    %c12_95 = arith.constant 12 : index
    %c0_96 = arith.constant 0 : index
    %465 = vector.load %arg1[%c12_95, %c0_96] : memref<16x128xf32, #tpu.memory_space<vmem>>, vector<1x128xf32>
    %466 = arith.subf %464, %465 : vector<1x128xf32>
    %467 = arith.mulf %464, %10 : vector<1x128xf32>
    %468 = tpu.reciprocal %467 {approx = true} : vector<1x128xf32> -> vector<1x128xf32>
    %469 = arith.mulf %29, %468 : vector<1x128xf32>
    %470 = vector.extract_strided_slice %128 {offsets = [0, 896], sizes = [3, 128], strides = [1, 1]} : vector<3x1024xf32> to vector<3x128xf32>
    %471 = vector.extract_strided_slice %114 {offsets = [0, 896], sizes = [3, 128], strides = [1, 1]} : vector<3x1024xf32> to vector<3x128xf32>
    %472 = vector.extract_strided_slice %470 {offsets = [0, 0], sizes = [1, 128], strides = [1, 1]} : vector<3x128xf32> to vector<1x128xf32>
    %473 = arith.mulf %14, %472 : vector<1x128xf32>
    %474 = vector.extract_strided_slice %470 {offsets = [1, 0], sizes = [1, 128], strides = [1, 1]} : vector<3x128xf32> to vector<1x128xf32>
    %475 = arith.mulf %15, %474 : vector<1x128xf32>
    %476 = arith.addf %473, %475 : vector<1x128xf32>
    %477 = vector.extract_strided_slice %470 {offsets = [2, 0], sizes = [1, 128], strides = [1, 1]} : vector<3x128xf32> to vector<1x128xf32>
    %478 = arith.mulf %16, %477 : vector<1x128xf32>
    %479 = arith.addf %476, %478 : vector<1x128xf32>
    %480 = math.absf %479 : vector<1x128xf32>
    %481 = arith.mulf %480, %469 : vector<1x128xf32>
    %482 = vector.broadcast %481 : vector<1x128xf32> to vector<3x128xf32>
    %483 = arith.mulf %471, %482 : vector<3x128xf32>
    %484 = vector.broadcast %467 : vector<1x128xf32> to vector<3x128xf32>
    %485 = vector.broadcast %129 : vector<3x1xf32> to vector<3x128xf32>
    %486 = arith.mulf %484, %485 : vector<3x128xf32>
    %487 = math.exp %486 : vector<3x128xf32>
    %488 = vector.extract_strided_slice %108 {offsets = [0, 896], sizes = [1, 128], strides = [1, 1]} : vector<1x1024xf32> to vector<1x128xf32>
    %cst_97 = arith.constant 0.000000e+00 : f32
    %489 = vector.broadcast %cst_97 : f32 to vector<1x128xf32>
    %490 = arith.subf %489, %488 : vector<1x128xf32>
    %491 = arith.mulf %466, %10 : vector<1x128xf32>
    %492 = arith.mulf %490, %491 : vector<1x128xf32>
    %493 = math.exp %492 : vector<1x128xf32>
    %cst_98 = arith.constant 1.000000e+00 : f32
    %494 = vector.broadcast %cst_98 : f32 to vector<1x128xf32>
    %495 = arith.subf %494, %493 : vector<1x128xf32>
    %496 = arith.mulf %495, %452 : vector<1x128xf32>
    %497 = vector.broadcast %496 : vector<1x128xf32> to vector<3x128xf32>
    %498 = arith.mulf %497, %483 : vector<3x128xf32>
    %499 = arith.addf %455, %498 : vector<3x128xf32>
    %500 = arith.mulf %498, %487 : vector<3x128xf32>
    %501 = arith.addf %457, %500 : vector<3x128xf32>
    %502 = vector.broadcast %496 : vector<1x128xf32> to vector<3x128xf32>
    %503 = arith.mulf %502, %487 : vector<3x128xf32>
    %504 = arith.addf %460, %503 : vector<3x128xf32>
    %505 = vector.broadcast %496 : vector<1x128xf32> to vector<3x128xf32>
    %506 = arith.mulf %505, %470 : vector<3x128xf32>
    %507 = arith.addf %463, %506 : vector<3x128xf32>
    %cst_99 = arith.constant 9.99999997E-7 : f32
    %508 = vector.broadcast %cst_99 : f32 to vector<3x128xf32>
    %509 = arith.addf %504, %508 : vector<3x128xf32>
    %510 = tpu.reciprocal %509 {approx = true} : vector<3x128xf32> -> vector<3x128xf32>
    %511 = arith.mulf %501, %510 : vector<3x128xf32>
    %c0_100 = arith.constant 0 : index
    %c0_101 = arith.constant 0 : index
    %512 = vector.load %arg10[%c0_100, %c0_101] : memref<3x1xf32, #tpu.memory_space<vmem>>, vector<3x1xf32>
    %513 = vector.broadcast %512 : vector<3x1xf32> to vector<3x128xf32>
    %514 = arith.addf %499, %513 : vector<3x128xf32>
    %cst_102 = arith.constant 9.99999997E-7 : f32
    %cst_103 = arith.constant 1.000000e+00 : f32
    %515 = vector.broadcast %cst_102 : f32 to vector<3x128xf32>
    %516 = arith.maximumf %515, %514 : vector<3x128xf32>
    %517 = vector.broadcast %cst_103 : f32 to vector<3x128xf32>
    %518 = arith.minimumf %517, %516 : vector<3x128xf32>
    %519 = vector.broadcast %512 : vector<3x1xf32> to vector<3x128xf32>
    %520 = arith.addf %501, %519 : vector<3x128xf32>
    %cst_104 = arith.constant 9.99999997E-7 : f32
    %cst_105 = arith.constant 1.000000e+00 : f32
    %521 = vector.broadcast %cst_104 : f32 to vector<3x128xf32>
    %522 = arith.maximumf %521, %520 : vector<3x128xf32>
    %523 = vector.broadcast %cst_105 : f32 to vector<3x128xf32>
    %524 = arith.minimumf %523, %522 : vector<3x128xf32>
    %cst_106 = arith.constant 9.99999997E-7 : f32
    %cst_107 = arith.constant 1.000000e+00 : f32
    %525 = vector.broadcast %cst_106 : f32 to vector<3x128xf32>
    %526 = arith.maximumf %525, %511 : vector<3x128xf32>
    %527 = vector.broadcast %cst_107 : f32 to vector<3x128xf32>
    %528 = arith.minimumf %527, %526 : vector<3x128xf32>
    %cst_108 = arith.constant 0.000000e+00 : f32
    %529 = vector.broadcast %cst_108 : f32 to vector<3x128xf32>
    %530 = arith.subf %529, %507 : vector<3x128xf32>
    %cst_109 = arith.constant -1.000000e+00 : f32
    %cst_110 = arith.constant 1.000000e+00 : f32
    %531 = vector.broadcast %cst_109 : f32 to vector<3x128xf32>
    %532 = arith.maximumf %531, %530 : vector<3x128xf32>
    %533 = vector.broadcast %cst_110 : f32 to vector<3x128xf32>
    %534 = arith.minimumf %533, %532 : vector<3x128xf32>
    %cst_111 = arith.constant 5.000000e-01 : f32
    %535 = vector.broadcast %cst_111 : f32 to vector<3x128xf32>
    %536 = arith.mulf %534, %535 : vector<3x128xf32>
    %cst_112 = arith.constant 5.000000e-01 : f32
    %537 = vector.broadcast %cst_112 : f32 to vector<3x128xf32>
    %538 = arith.addf %536, %537 : vector<3x128xf32>
    %539 = tpu.concatenate %518, %524, %528, %538 in 0 : vector<3x128xf32>, vector<3x128xf32>, vector<3x128xf32>, vector<3x128xf32> -> vector<12x128xf32>
    %c0_113 = arith.constant 0 : index
    %c0_114 = arith.constant 0 : index
    %540 = vector.load %arg11[%c0_113, %c0_114] : memref<12x128xf32, #tpu.memory_space<vmem>>, vector<12x128xf32>
    tpu.vector_store %arg11[%c0_113, %c0_114], %539 {strides = array<i32>} : memref<12x128xf32, #tpu.memory_space<vmem>>, vector<12x128xf32>,
    return
  }
  func.func @transform_0(%arg0: i32) -> (i32, i32) {
    %c0_i32 = arith.constant 0 : i32
    %c0_i32_0 = arith.constant 0 : i32
    return %c0_i32, %arg0 : i32, i32
  }
  func.func @transform_1(%arg0: i32) -> (i32, i32) {
    %c0_i32 = arith.constant 0 : i32
    %c0_i32_0 = arith.constant 0 : i32
    %c0_i32_1 = arith.constant 0 : i32
    return %c0_i32, %c0_i32_0 : i32, i32
  }
  func.func @transform_2(%arg0: i32) -> (i32, i32) {
    %c0_i32 = arith.constant 0 : i32
    %c0_i32_0 = arith.constant 0 : i32
    %c0_i32_1 = arith.constant 0 : i32
    return %c0_i32, %c0_i32_0 : i32, i32
  }
  func.func @transform_3(%arg0: i32) -> (i32, i32) {
    %c0_i32 = arith.constant 0 : i32
    %c0_i32_0 = arith.constant 0 : i32
    %c0_i32_1 = arith.constant 0 : i32
    return %c0_i32, %c0_i32_0 : i32, i32
  }
  func.func @transform_4(%arg0: i32) -> (i32, i32) {
    %c0_i32 = arith.constant 0 : i32
    %c0_i32_0 = arith.constant 0 : i32
    %c0_i32_1 = arith.constant 0 : i32
    return %c0_i32, %c0_i32_0 : i32, i32
  }
  func.func @transform_5(%arg0: i32) -> (i32, i32) {
    %c0_i32 = arith.constant 0 : i32
    %c0_i32_0 = arith.constant 0 : i32
    %c0_i32_1 = arith.constant 0 : i32
    return %c0_i32, %c0_i32_0 : i32, i32
  }
  func.func @transform_6(%arg0: i32) -> (i32, i32) {
    %c0_i32 = arith.constant 0 : i32
    %c0_i32_0 = arith.constant 0 : i32
    %c0_i32_1 = arith.constant 0 : i32
    return %c0_i32, %c0_i32_0 : i32, i32
  }
  func.func @transform_7(%arg0: i32) -> (i32, i32) {
    %c0_i32 = arith.constant 0 : i32
    %c0_i32_0 = arith.constant 0 : i32
    %c0_i32_1 = arith.constant 0 : i32
    return %c0_i32, %c0_i32_0 : i32, i32
  }
  func.func @transform_8(%arg0: i32) -> (i32, i32) {
    %c0_i32 = arith.constant 0 : i32
    %c0_i32_0 = arith.constant 0 : i32
    %c0_i32_1 = arith.constant 0 : i32
    return %c0_i32, %c0_i32_0 : i32, i32
  }
  func.func @transform_9(%arg0: i32) -> (i32, i32) {
    %c0_i32 = arith.constant 0 : i32
    %c0_i32_0 = arith.constant 0 : i32
    %c0_i32_1 = arith.constant 0 : i32
    return %c0_i32, %c0_i32_0 : i32, i32
  }
  func.func @transform_10(%arg0: i32) -> (i32, i32) {
    %c0_i32 = arith.constant 0 : i32
    %c0_i32_0 = arith.constant 0 : i32
    return %c0_i32, %arg0 : i32, i32
  }
}

</mosaic_0001>

<bundles_post_ra>
// kernel: tpu_custom_call.1
= control target key start
LH: loop header
LB: loop body
LE: loop exit
PB: predicated region body
PF: predicated region fallthrough
CT: control target
= control target key end

     0   :  { %s4251_s0 = inlined_call_operand.vmem [shape: f32[16,256], index: 0, kind: input, shape index: {}]   ;;  %s4252_s1 = inlined_call_operand.vmem [shape: f32[3,1], index: 1, kind: input, shape index: {}]   ;;  %s4253_s2 = inlined_call_operand.vmem [shape: bf16[32,3], index: 2, kind: input, shape index: {}]   ;;  %s4254_s3 = inlined_call_operand.vmem [shape: bf16[32,32], index: 3, kind: input, shape index: {}]   ;;  %s4255_s4 = inlined_call_operand.hbm [shape: bf16[32,35], index: 4, kind: input, shape index: {}]   ;;  %s4256_s5 = inlined_call_operand.vmem [shape: bf16[7,32], index: 5, kind: input, shape index: {}]   ;;  %s4257_s6 = inlined_call_operand.vmem [shape: f32[32,3], index: 6, kind: input, shape index: {}]   ;;  %s4258_s7 = inlined_call_operand.vmem [shape: f32[7,1], index: 7, kind: input, shape index: {}]   ;;  %s4259_s8 = inlined_call_operand.vmem [shape: f32[3,1], index: 8, kind: input, shape index: {}]   ;;  %s4260_s9 = inlined_call_operand.vmem [shape: f32[3,1], index: 9, kind: input, shape index: {}]   ;;  %s4261_s10 = inlined_call_operand.hbm [shape: f32[12,256], index: 10, kind: output, shape index: {}]  }
   0x1   :  { %4275 = sst [smem:[#allocation33_spill]] %s4255_s4 }
   0x2   :  { %15 = vsyncpa [#allocation4], 0 }
   0x3   :  { %16 = vsyncpa [#allocation5], 0 }
   0x4   :  { %18 = vsyncpa [#allocation5 + $0x1], 0  ;;  %s2840_s13 = smov 0   ;;  %s2842_s14 = smov 0  }
   0x5   :  { %s2844_s15 = smov 0   ;;  %s2846_s16 = smov 0  }
   0x6 LB: > { %s2861_s17 = sadd.s32 4294967295, %s2773_s16   ;;  %s2355_s18 = sadd.s32 4294967294, %s2773_s16   ;;  %s2773_s16 = sphi %s2846_s16, %s4409_s16   ;;  %s2769_s15 = sphi %s2844_s15, %s4408_s15   ;;  %s2765_s14 = sphi %s2842_s14, %s4407_s14   ;;  %s2761_s13 = sphi %s2840_s13, %s4406_s13  }
   0x7   : > { %s2865_s19 = sadd.s32 1, %s2773_s16   ;;  %s31_s20 = sadd.s32 1, %s2769_s15 }
   0x8   : > { %s28_s21 = ssub.s32 %s2773_s16, %s2865_s19  ;;  %p38_p0 = scmp.ne.s32.totalorder %s2769_s15, %s2765_s14 }
   0x9   : > { %p29_p1 = scmp.eq.s32.totalorder %s28_s21, 0  ;;  %p39_p2 = scmp.eq.s32.totalorder %s2773_s16, 0 }
   0xa   : > { %p257_p3 = scmp.eq.s32.totalorder %s2861_s17, 1  ;;  %p262_p4 = scmp.ne.s32.totalorder %s2765_s14, %s2761_s13 }
   0xb   : > { %s2877_s22 = scalar_select %p29_p1, %s2769_s15, %s31_s20  }
   0xc   : > { %p2879_p5 = por %p39_p2, %p38_p0  ;;  %p2883_p6 = por %p257_p3, %p38_p0 }
   0xd   : > { %p263_p7 = scmp.eq.s32.totalorder %s2355_s18, 1  ;;  %p2356_p8 = scmp.ge.s32.totalorder %s2773_s16, 1 }
   0xe   : > { %p270_p9 = scmp.lt.s32.totalorder %s2773_s16, 3  ;;  %p2478_p11 = scmp.eq.s32.totalorder %s2861_s17, 0 }
   0xf   : > { %p2889_p10 = por %p263_p7, %p262_p4  ;;  %s4280_s4 = sld [smem:[#allocation33_spill]] }
  0x10   : > { %p2894_p12 = pnand %p2356_p8, %p270_p9  ;;  %s2775_s30 = smov [#allocation3]  }
  0x11   : > { %s292_s11 = sshll.u32 %s2775_s30, 4  ;;  %s2776_s12 = smov 64   ;;  %s293_s11 = int_to_ptr.vmem [resolvable:$true] %s292_s11 }
  0x12   : > { %p2470_p13 = pneg %p2894_p12  ;;  %s2777_s18 = smov 4  }
  0x13   : > { %p2358_p1 = scmp.ge.s32.totalorder %s2773_s16, 2 }
  0x14   : > { %p2471_p0 = pnand %p2478_p11, %p2470_p13 }
  0x15   : > { %s290_s29 = sshll.u32 %s4280_s4, 4  ;;  %317 = sbr.rel (%p2358_p1) target bundleno = 32 (0x20), region = 52  ;;  %s291_s29 = int_to_ptr.hbm [resolvable:$true] %s290_s29 }
  0x16   : > { %2473 = dma.hbm_to_vmem [thread:$0]  (!%p2471_p0), %s291_s29, 256, %s293_s11, [#allocation4], %s2776_s12, %s2776_s12, %s2777_s18  }
  0x1a   : > { %320 = sbr.rel (!%p2879_p5) target bundleno = 32 (0x20), region = 56  ;;  %s322_s20 = sand.u32 (%p2879_p5), 1, %s2769_s15  }
  0x1b   : > { %s2360_s21 = sshll.u32 (%p2879_p5), %s2773_s16, 3  ;;  %s2359_s27 = sshll.u32 (%p2879_p5), %s322_s20, 4 }
  0x1c   : > { %s326_s4 = scalar_lea.vmem (%p2879_p5), %s4251_s0, %s2360_s21  ;;  %s324_s29 = scalar_lea.vmem (%p2879_p5), [#allocation2], %s2359_s27 }
  0x1d   : > { %v357_v0 = vld [vmem:[%s326_s4] sm:$0xff] (%p2879_p5)  ;;  %v359_v1 = vld [vmem:[%s326_s4 + $0x10] sm:$0xff] (%p2879_p5) }
  0x1e   : > { %358 = vst [vmem:[%s324_s29] sm:$0xff] (%p2879_p5), %v357_v0 }
  0x1f   : > { %360 = vst [vmem:[%s324_s29 + $0x8] sm:$0xff] %v359_v1 }
  0x20 PF: > { %369 = sbr.rel (%p2894_p12) target bundleno = 886 (0x376), region = 94 }
  0x25   : > { %s372_s23 = sand.u32 1, %s2765_s14  }
  0x26   : > { %s2920_s11 = sshll.u32 %s372_s23, 4 }
  0x27   : > { %s2923_s12 = scalar_lea.vmem [#allocation2], %s2920_s11 }
  0x28   : > { %2752 = dma.done.wait (%p2478_p11), [#allocation4], 256  }
  0x29   : > { %2754 = vsyncadd (%p2478_p11), [#allocation4], 4294967040  ;;  %v416_v2 = vld [vmem:[%s2923_s12 + $0x3] sm:$0x7]  ;;  %v2534_v3 = vld [vmem:[%s2923_s12 + $0x6] ss:$0 sm:$0xff] }
  0x2a   : > { %vm559_vm0 = vcmask 1040384   ;;  %v2535_v4 = vld [vmem:[%s2923_s12 + $0x7] ss:$0 sm:$0xff]  ;;  %v415_v5 = vld [vmem:[%s2923_s12] sm:$0x7]  ;;  %v476_v7 = vmul.f32 %v2534_v3, %v416_v2  ;;  %vm560_vm1 = vcmask 1041408  }
  0x2b   : > { %v2536_v6 = vld [vmem:[%s2923_s12 + $0x8] ss:$0 sm:$0xff]  ;;  %v480_v8 = vmul.f32 %v2535_v4, %v416_v2  ;;  %v2537_v9 = vld [vmem:[%s2923_s12 + $0x9] ss:$0 sm:$0xff]  ;;  %v2778_v10 = vmov 65535   ;;  %v2939_v13 = vld [vmem:[%s4257_s6] sm:$0xff] }
  0x2c   : > { %v561_v11 = vsel %vm559_vm0, 4294967295, %v2778_v10  ;;  %v484_v12 = vmul.f32 %v2536_v6, %v416_v2  ;;  %v2944_v14 = vld [vmem:[%s4257_s6 + $0x10] sm:$0xff]  ;;  %v477_v15 = vadd.f32 %v476_v7, %v415_v5  ;;  %v488_v17 = vmul.f32 %v2537_v9, %v416_v2  ;;  %v2538_v19 = vld [vmem:[%s2923_s12 + $0xc] ss:$0 sm:$0xff]  ;;  %v2539_v21 = vld [vmem:[%s2923_s12 + $0xa] ss:$0 sm:$0xff] }
  0x2d   : > { %v481_v16 = vadd.f32 %v480_v8, %v415_v5  ;;  %v2779_v18 = vmov 0   ;;  %v2540_v22 = vld [vmem:[%s2923_s12 + $0xb] ss:$0 sm:$0xff]  ;;  %v562_v24 = vsel %vm560_vm1, %v561_v11, 0  ;;  %v500_v28 = vmul.f32 %v2538_v19, %v416_v2  ;;  %v2541_v31 = vld [vmem:[%s2923_s12 + $0xd] ss:$0 sm:$0xff] }
  0x2e   : > { %2524 = vset.pattern.permute.xlu1 %v2779_v18  ;;  %v485_v20 = vadd.f32 %v484_v12, %v415_v5  ;;  %2523 = vset.pattern.permute.xlu0 %v2779_v18  ;;  %v506_v23 = vpack.c.bf16 %v477_v15, %v477_v15  ;;  %v489_v26 = vadd.f32 %v488_v17, %v415_v5  ;;  %v2458_v36 = vld [vmem:[%s4253_s2] sm:$0xff]  ;;  %v2967_v37 = vld [vmem:[%s4257_s6 + $0x8] sm:$0xff]  ;;  %vm552_vm2 = vcmask 23552   ;;  %v2990_v51 = vld [vmem:[%s4257_s6 + $0x18] sm:$0xff]  ;;  %s413_s18 = scalar_lea.vmem [#allocation6], %s2920_s11 }
  0x2f   : > { %524 = vperm.xlu1 %2524, %v2939_v13   ;;  %v507_v25 = vpack.c.bf16 %v481_v16, %v481_v16  ;;  %534 = vperm.xlu0 %2523, %v2944_v14   ;;  %v492_v29 = vmul.f32 %v2539_v21, %v416_v2  ;;  %v496_v30 = vmul.f32 %v2540_v22, %v416_v2  ;;  %v2459_v53 = vld [vmem:[%s4253_s2 + $0x8] sm:$0xff]  ;;  %vm817_vm3 = vcmask 261120   ;;  %s2272_s20 = sshll.u32 %s413_s18, 4  ;;  %s2273_s20 = int_to_ptr.vmem [resolvable:$true] %s2272_s20 }
  0x30   : > { %v508_v27 = vpack.c.bf16 %v485_v20, %v485_v20  ;;  %v2955_v32 = vand.u32 %v562_v24, %v506_v23  ;;  %v509_v35 = vpack.c.bf16 %v489_v26, %v489_v26  ;;  %v501_v38 = vadd.f32 %v500_v28, %v415_v5 }
  0x31   : > { %v2957_v33 = vand.u32 %v562_v24, %v507_v25  ;;  %v493_v39 = vadd.f32 %v492_v29, %v415_v5  ;;  %v497_v40 = vadd.f32 %v496_v30, %v415_v5  ;;  %v504_v42 = vmul.f32 %v2541_v31, %v416_v2 }
  0x32   : > { %v2959_v34 = vand.u32 %v562_v24, %v508_v27  ;;  %594 = vmatpush.bf16.msra.mxu0 %v2955_v32  ;;  %v2971_v41 = vand.u32 %v562_v24, %v509_v35  ;;  %v512_v43 = vpack.c.bf16 %v501_v38, %v501_v38  ;;  %v2780_v30 = vmov 1  }
  0x33   : > { %613 = vmatpush.bf16.msra.mxu1 %v2957_v33  ;;  %v510_v44 = vpack.c.bf16 %v493_v39, %v493_v39  ;;  %v511_v45 = vpack.c.bf16 %v497_v40, %v497_v40  ;;  %v505_v46 = vadd.f32 %v504_v42, %v415_v5  ;;  %2525 = vset.pattern.permute.xlu2 %v2780_v30  ;;  %vm1054_vm4 = vcmask 285696  }
  0x34   : > { %632 = vmatpush.bf16.msra.mxu2 %v2959_v34  ;;  %651 = vmatpush.bf16.msra.mxu3 %v2971_v41  ;;  %v2978_v47 = vand.u32 %v562_v24, %v512_v43 }
  0x35   : > { %2373 = vmatmul.msk.bf16.vlgmr.msra.gmra.mxu0 %vm552_vm2, %v2458_v36  ;;  %v2980_v48 = vand.u32 %v562_v24, %v510_v44  ;;  %v2982_v49 = vand.u32 %v562_v24, %v511_v45  ;;  %v513_v50 = vpack.c.bf16 %v505_v46, %v505_v46  ;;  %800 = vperm.xlu2 %2525, %v2944_v14  }
  0x36   : > { %2375 = vmatmul.msk.bf16.vlgmr.msra.gmra.mxu1 %vm552_vm2, %v2458_v36 }
  0x37   : > { %529 = vperm.xlu1 %2524, %v2967_v37   ;;  %2377 = vmatmul.msk.bf16.vlgmr.msra.gmra.mxu2 %vm552_vm2, %v2458_v36  ;;  %v2994_v52 = vand.u32 %v562_v24, %v513_v50 }
  0x38   : > { %2379 = vmatmul.msk.bf16.vlgmr.msra.gmra.mxu3 %vm552_vm2, %v2458_v36  ;;  %708 = vmatpush.bf16.msrb.mxu2 %v2978_v47 }
  0x39   : > { %670 = vmatpush.bf16.msrb.mxu0 %v2980_v48  ;;  %689 = vmatpush.bf16.msrb.mxu1 %v2982_v49 }
  0x3a   : > { %539 = vperm.xlu0 %2523, %v2990_v51   ;;  %727 = vmatpush.bf16.msrb.mxu3 %v2994_v52 }
  0x3d   : > { %804 = vperm.xlu2 %2525, %v2990_v51  }
  0x3f   : > { %2527 = vset.pattern.permute.xlu1 %v2780_v30 }
  0x40   : > { %796 = vperm.xlu1 %2527, %v2967_v37  }
  0x42   : > { %2526 = vset.pattern.permute.xlu0 %v2780_v30 }
  0x43   : > { %792 = vperm.xlu0 %2526, %v2939_v13  }
  0x45   : > { %2374 = vmatmul.msk.bf16.gmra.mxu0 %vm552_vm2, %v2459_v53 }
  0x46   : > { %2376 = vmatmul.msk.bf16.gmra.mxu1 %vm552_vm2, %v2459_v53 }
  0x47   : > { %2378 = vmatmul.msk.bf16.gmra.mxu2 %vm552_vm2, %v2459_v53 }
  0x48   : > { %2380 = vmatmul.msk.bf16.gmra.mxu3 %vm552_vm2, %v2459_v53 }
  0x55   : > { %2381 = vmatmul.msk.bf16.vlgmr.msrb.gmra.mxu0 %vm552_vm2, %v2458_v36 }
  0x56   : > { %2383 = vmatmul.msk.bf16.vlgmr.msrb.gmra.mxu1 %vm552_vm2, %v2458_v36 }
  0x57   : > { %2385 = vmatmul.msk.bf16.vlgmr.msrb.gmra.mxu2 %vm552_vm2, %v2458_v36 }
  0x58   : > { %2387 = vmatmul.msk.bf16.vlgmr.msrb.gmra.mxu3 %vm552_vm2, %v2458_v36 }
  0x65   : > { %2382 = vmatmul.msk.bf16.gmra.mxu0 %vm552_vm2, %v2459_v53 }
  0x66   : > { %2384 = vmatmul.msk.bf16.gmra.mxu1 %vm552_vm2, %v2459_v53 }
  0x67   : > { %2386 = vmatmul.msk.bf16.gmra.mxu2 %vm552_vm2, %v2459_v53 }
  0x68   : > { %2388 = vmatmul.msk.bf16.gmra.mxu3 %vm552_vm2, %v2459_v53 }
  0xa1   : > { %v3013_v60 = vpop.permute.xlu1 %524  ;;  %v3015_v61 = vpop.permute.xlu0 %534 }
  0xa9   : > { %v3017_v2 = vpop.permute.xlu1 %529 }
  0xac   : > { %v3020_v4 = vpop.permute.xlu0 %539 }
  0xb2   : > { %v596_v54 = vpop.f32.mrf.mxu0 }
  0xb3   : > { %v615_v55 = vpop.f32.mrf.mxu1  ;;  %v597_v11 = vadd.f32 %v596_v54, %v3013_v60 }
  0xb4   : > { %v616_v16 = vadd.f32 %v615_v55, %v3013_v60  ;;  %v3041_v55 = vld [vmem:[%s4254_s3] sm:$0xff] }
  0xb5   : > { %v739_v24 = vmax.f32 %v597_v11, 0.0 }
  0xb6   : > { %v740_v28 = vmax.f32 %v616_v16, 0.0 }
  0xba   : > { %v634_v56 = vpop.f32.mrf.mxu2  ;;  %v598_v58 = vpop.f32.mrf.mxu0 }
  0xbb   : > { %v653_v57 = vpop.f32.mrf.mxu3  ;;  %v617_v59 = vpop.f32.mrf.mxu1  ;;  %v599_v12 = vadd.f32 %v598_v58, %v3017_v2  ;;  %v635_v46 = vadd.f32 %v634_v56, %v3013_v60 }
  0xbc   : > { %v618_v17 = vadd.f32 %v617_v59, %v3017_v2  ;;  %v654_v58 = vadd.f32 %v653_v57, %v3013_v60 }
  0xbd   : > { %v747_v25 = vmax.f32 %v599_v12, 0.0 }
  0xbe   : > { %v748_v29 = vmax.f32 %v618_v17, 0.0  ;;  %v3057_v17 = vld [vmem:[%s4254_s3 + $0x8] sm:$0xff] }
  0xbf   : > { %v775_v45 = vpack.c.bf16 %v747_v25, %v739_v24 }
  0xc0   : > { %v776_v54 = vpack.c.bf16 %v748_v29, %v740_v28 }
  0xc2   : > { %v636_v62 = vpop.f32.mrf.mxu2  ;;  %v601_v0 = vpop.f32.mrf.mxu0 }
  0xc3   : > { %v655_v63 = vpop.f32.mrf.mxu3  ;;  %v620_v1 = vpop.f32.mrf.mxu1  ;;  %v602_v3 = vadd.f32 %v601_v0, %v3015_v61  ;;  %v637_v36 = vadd.f32 %v636_v62, %v3017_v2 }
  0xc4   : > { %v621_v6 = vadd.f32 %v620_v1, %v3015_v61  ;;  %v656_v42 = vadd.f32 %v655_v63, %v3017_v2 }
  0xc5   : > { %v755_v19 = vmax.f32 %v602_v3, 0.0  ;;  %v749_v63 = vmax.f32 %v637_v36, 0.0  ;;  %v741_v3 = vmax.f32 %v635_v46, 0.0 }
  0xc6   : > { %v756_v21 = vmax.f32 %v621_v6, 0.0  ;;  %v750_v56 = vmax.f32 %v656_v42, 0.0 }
  0xca   : > { %v639_v5 = vpop.f32.mrf.mxu2  ;;  %v603_v8 = vpop.f32.mrf.mxu0 }
  0xcb   : > { %v658_v7 = vpop.f32.mrf.mxu3  ;;  %v604_v9 = vadd.f32 %v603_v8, %v3020_v4  ;;  %v622_v10 = vpop.f32.mrf.mxu1  ;;  %v640_v26 = vadd.f32 %v639_v5, %v3015_v61  ;;  %v742_v5 = vmax.f32 %v654_v58, 0.0  ;;  %v777_v8 = vpack.c.bf16 %v749_v63, %v741_v3 }
  0xcc   : > { %v623_v15 = vadd.f32 %v622_v10, %v3020_v4  ;;  %v659_v31 = vadd.f32 %v658_v7, %v3015_v61 }
  0xcd   : > { %v763_v20 = vmax.f32 %v604_v9, 0.0  ;;  %v757_v50 = vmax.f32 %v640_v26, 0.0  ;;  %v778_v10 = vpack.c.bf16 %v750_v56, %v742_v5 }
  0xce   : > { %v764_v22 = vmax.f32 %v623_v15, 0.0  ;;  %v758_v59 = vmax.f32 %v659_v31, 0.0 }
  0xcf   : > { %v783_v23 = vpack.c.bf16 %v763_v20, %v755_v19 }
  0xd0   : > { %v784_v27 = vpack.c.bf16 %v764_v22, %v756_v21 }
  0xd1   : > { %830 = vmatpush.bf16.msra.mxu0 %v783_v23 }
  0xd2   : > { %v641_v35 = vpop.f32.mrf.mxu2  ;;  %849 = vmatpush.bf16.msra.mxu1 %v784_v27  ;;  %v672_v40 = vpop.f32.mrf.mxu0 }
  0xd3   : > { %v642_v38 = vadd.f32 %v641_v35, %v3020_v4  ;;  %v660_v39 = vpop.f32.mrf.mxu3  ;;  %v691_v44 = vpop.f32.mrf.mxu1  ;;  %v673_v29 = vadd.f32 %v672_v40, %v3013_v60 }
  0xd4   : > { %v661_v43 = vadd.f32 %v660_v39, %v3020_v4  ;;  %v692_v35 = vadd.f32 %v691_v44, %v3013_v60 }
  0xd5   : > { %v765_v53 = vmax.f32 %v642_v38, 0.0  ;;  %831 = vmatpush.bf16.msra.mxu0 %v775_v45 }
  0xd6   : > { %v766_v62 = vmax.f32 %v661_v43, 0.0  ;;  %850 = vmatpush.bf16.msra.mxu1 %v776_v54  ;;  %v744_v44 = vmax.f32 %v692_v35, 0.0 }
  0xd7   : > { %v785_v0 = vpack.c.bf16 %v765_v53, %v757_v50  ;;  %v743_v50 = vmax.f32 %v673_v29, 0.0 }
  0xd8   : > { %v786_v1 = vpack.c.bf16 %v766_v62, %v758_v59  ;;  %2397 = vmatmul.msk.bf16.vlgmr.msra.gmra.mxu0 %vm817_vm3, %v3041_v55 }
  0xd9   : > { %868 = vmatpush.bf16.msra.mxu2 %v785_v0  ;;  %2399 = vmatmul.msk.bf16.vlgmr.msra.gmra.mxu1 %vm817_vm3, %v3041_v55 }
  0xda   : > { %887 = vmatpush.bf16.msra.mxu3 %v786_v1  ;;  %v710_v6 = vpop.f32.mrf.mxu2  ;;  %v674_v7 = vpop.f32.mrf.mxu0 }
  0xdb   : > { %v729_v57 = vpop.f32.mrf.mxu3  ;;  %v693_v9 = vpop.f32.mrf.mxu1  ;;  %v675_v24 = vadd.f32 %v674_v7, %v3017_v2  ;;  %v711_v56 = vadd.f32 %v710_v6, %v3013_v60 }
  0xdc   : > { %v694_v27 = vadd.f32 %v693_v9, %v3017_v2 }
  0xdd   : > { %869 = vmatpush.bf16.msra.mxu2 %v777_v8  ;;  %v751_v39 = vmax.f32 %v675_v24, 0.0 }
  0xde   : > { %888 = vmatpush.bf16.msra.mxu3 %v778_v10  ;;  %v752_v43 = vmax.f32 %v694_v27, 0.0 }
  0xdf   : > { %v779_v62 = vpack.c.bf16 %v751_v39, %v743_v50 }
  0xe0   : > { %2401 = vmatmul.msk.bf16.vlgmr.msra.gmra.mxu2 %vm817_vm3, %v3041_v55  ;;  %v780_v1 = vpack.c.bf16 %v752_v43, %v744_v44 }
  0xe1   : > { %2403 = vmatmul.msk.bf16.vlgmr.msra.gmra.mxu3 %vm817_vm3, %v3041_v55 }
  0xe2   : > { %v712_v11 = vpop.f32.mrf.mxu2  ;;  %v677_v15 = vpop.f32.mrf.mxu0 }
  0xe3   : > { %v731_v12 = vpop.f32.mrf.mxu3  ;;  %v696_v16 = vpop.f32.mrf.mxu1  ;;  %v678_v19 = vadd.f32 %v677_v15, %v3015_v61  ;;  %v713_v54 = vadd.f32 %v712_v11, %v3017_v2 }
  0xe4   : > { %v697_v21 = vadd.f32 %v696_v16, %v3015_v61  ;;  %v732_v63 = vadd.f32 %v731_v12, %v3017_v2  ;;  %v745_v2 = vmax.f32 %v711_v56, 0.0  ;;  %v3125_v56 = vld [vmem:[#allocation3] sm:$0xff] }
  0xe5   : > { %v759_v30 = vmax.f32 %v678_v19, 0.0  ;;  %v753_v9 = vmax.f32 %v713_v54, 0.0 }
  0xe6   : > { %v760_v36 = vmax.f32 %v697_v21, 0.0  ;;  %v754_v11 = vmax.f32 %v732_v63, 0.0 }
  0xe8   : > { %2398 = vmatmul.msk.bf16.gmra.mxu0 %vm817_vm3, %v3057_v17 }
  0xe9   : > { %2400 = vmatmul.msk.bf16.gmra.mxu1 %vm817_vm3, %v3057_v17 }
  0xea   : > { %v715_v20 = vpop.f32.mrf.mxu2  ;;  %v679_v23 = vpop.f32.mrf.mxu0 }
  0xeb   : > { %v734_v22 = vpop.f32.mrf.mxu3  ;;  %v680_v25 = vadd.f32 %v679_v23, %v3020_v4  ;;  %v698_v26 = vpop.f32.mrf.mxu1  ;;  %v716_v45 = vadd.f32 %v715_v20, %v3015_v61 }
  0xec   : > { %v699_v28 = vadd.f32 %v698_v26, %v3020_v4  ;;  %v735_v40 = vadd.f32 %v734_v22, %v3015_v61  ;;  %v730_v61 = vadd.f32 %v729_v57, %v3013_v60  ;;  %v781_v60 = vpack.c.bf16 %v753_v9, %v745_v2  ;;  %v3103_v57 = vpop.permute.xlu2 %800  ;;  %v3108_v22 = vpop.permute.xlu1 %796 }
  0xed   : > { %v767_v31 = vmax.f32 %v680_v25, 0.0  ;;  %v761_v3 = vmax.f32 %v716_v45, 0.0  ;;  %v3113_v25 = vpop.permute.xlu0 %792  ;;  %v2781_v9 = vmov 2  }
  0xee   : > { %v768_v38 = vmax.f32 %v699_v28, 0.0  ;;  %v762_v7 = vmax.f32 %v735_v40, 0.0  ;;  %2529 = vset.pattern.permute.xlu1 %v2781_v9  ;;  %2530 = vset.pattern.permute.xlu0 %v2781_v9 }
  0xef   : > { %v787_v42 = vpack.c.bf16 %v767_v31, %v759_v30  ;;  %1041 = vperm.xlu1 %2529, %v2990_v51   ;;  %2528 = vset.pattern.permute.xlu2 %v2781_v9 }
  0xf0   : > { %2402 = vmatmul.msk.bf16.gmra.mxu2 %vm817_vm3, %v3057_v17  ;;  %v788_v46 = vpack.c.bf16 %v768_v38, %v760_v36  ;;  %1033 = vperm.xlu0 %2530, %v2967_v37  }
  0xf1   : > { %2404 = vmatmul.msk.bf16.gmra.mxu3 %vm817_vm3, %v3057_v17  ;;  %906 = vmatpush.bf16.msrb.mxu0 %v787_v42 }
  0xf2   : > { %v717_v53 = vpop.f32.mrf.mxu2  ;;  %925 = vmatpush.bf16.msrb.mxu1 %v788_v46  ;;  %1037 = vperm.xlu2 %2528, %v2944_v14   ;;  %v3149_v14 = vld [vmem:[#allocation3 + $0x8] sm:$0xff] }
  0xf3   : > { %v718_v58 = vadd.f32 %v717_v53, %v3020_v4  ;;  %v736_v59 = vpop.f32.mrf.mxu3 }
  0xf4   : > { %v737_v0 = vadd.f32 %v736_v59, %v3020_v4  ;;  %v746_v4 = vmax.f32 %v730_v61, 0.0 }
  0xf5   : > { %v769_v5 = vmax.f32 %v718_v58, 0.0  ;;  %907 = vmatpush.bf16.msrb.mxu0 %v779_v62 }
  0xf6   : > { %v770_v8 = vmax.f32 %v737_v0, 0.0  ;;  %926 = vmatpush.bf16.msrb.mxu1 %v780_v1  ;;  %v782_v6 = vpack.c.bf16 %v754_v11, %v746_v4 }
  0xf7   : > { %v789_v10 = vpack.c.bf16 %v769_v5, %v761_v3  ;;  %2531 = vset.pattern.permute.xlu1 %v2779_v18 }
  0xf8   : > { %v790_v15 = vpack.c.bf16 %v770_v8, %v762_v7  ;;  %2405 = vmatmul.msk.bf16.vlgmr.msrb.gmra.mxu0 %vm817_vm3, %v3041_v55  ;;  %2533 = vset.pattern.permute.xlu0 %v2779_v18 }
  0xf9   : > { %1066 = vmatpush.bf16.msra.mxu0 %v2955_v32  ;;  %944 = vmatpush.bf16.msrb.mxu2 %v789_v10 }
  0xfa   : > { %1085 = vmatpush.bf16.msra.mxu1 %v2957_v33  ;;  %963 = vmatpush.bf16.msrb.mxu3 %v790_v15 }
  0xfb   : > { %2407 = vmatmul.msk.bf16.vlgmr.msrb.gmra.mxu1 %vm817_vm3, %v3041_v55  ;;  %1029 = vperm.xlu2 %2528, %v2939_v13  }
  0xfd   : > { %945 = vmatpush.bf16.msrb.mxu2 %v781_v60 }
  0xfe   : > { %964 = vmatpush.bf16.msrb.mxu3 %v782_v6 }
 0x100   : > { %2409 = vmatmul.msk.bf16.vlgmr.msrb.gmra.mxu2 %vm817_vm3, %v3041_v55 }
 0x101   : > { %1104 = vmatpush.bf16.msra.mxu2 %v2959_v34  ;;  %2411 = vmatmul.msk.bf16.vlgmr.msrb.gmra.mxu3 %vm817_vm3, %v3041_v55 }
 0x102   : > { %1123 = vmatpush.bf16.msra.mxu3 %v2971_v41 }
 0x103   : > { %2532 = vset.pattern.permute.xlu2 %v2779_v18 }
 0x108   : > { %2406 = vmatmul.msk.bf16.gmra.mxu0 %vm817_vm3, %v3057_v17 }
 0x10b   : > { %2408 = vmatmul.msk.bf16.gmra.mxu1 %vm817_vm3, %v3057_v17 }
 0x110   : > { %2410 = vmatmul.msk.bf16.gmra.mxu2 %vm817_vm3, %v3057_v17 }
 0x111   : > { %2412 = vmatmul.msk.bf16.gmra.mxu3 %vm817_vm3, %v3057_v17  ;;  %v3111_v17 = vpop.permute.xlu2 %804 }
 0x155   : > { %v833_v32 = vpop.f32.mrf.mxu0 }
 0x156   : > { %v852_v33 = vpop.f32.mrf.mxu1  ;;  %v834_v30 = vadd.f32 %v833_v32, %v3113_v25 }
 0x157   : > { %v853_v38 = vadd.f32 %v852_v33, %v3113_v25 }
 0x158   : > { %v976_v50 = vmax.f32 %v834_v30, 0.0 }
 0x159   : > { %v977_v54 = vmax.f32 %v853_v38, 0.0 }
 0x15d   : > { %v835_v34 = vpop.f32.mrf.mxu0 }
 0x15e   : > { %v854_v41 = vpop.f32.mrf.mxu1  ;;  %v836_v31 = vadd.f32 %v835_v34, %v3108_v22 }
 0x15f   : > { %v855_v39 = vadd.f32 %v854_v41, %v3108_v22 }
 0x160   : > { %v984_v40 = vmax.f32 %v836_v31, 0.0 }
 0x161   : > { %v985_v58 = vmax.f32 %v855_v39, 0.0 }
 0x162   : > { %v1008_v63 = vpack.c.bf16 %v984_v40, %v976_v50 }
 0x163   : > { %v871_v12 = vpop.f32.mrf.mxu2  ;;  %v1009_v0 = vpack.c.bf16 %v985_v58, %v977_v54 }
 0x164   : > { %v3105_v55 = vpop.f32.mrf.mxu3  ;;  %v872_v2 = vadd.f32 %v871_v12, %v3113_v25 }
 0x165   : > { %v838_v16 = vpop.f32.mrf.mxu0  ;;  %v891_v32 = vadd.f32 %v3105_v55, %v3113_v25 }
 0x166   : > { %v857_v19 = vpop.f32.mrf.mxu1  ;;  %v839_v20 = vadd.f32 %v838_v16, %v3103_v57  ;;  %v978_v16 = vmax.f32 %v872_v2, 0.0 }
 0x167   : > { %v858_v23 = vadd.f32 %v857_v19, %v3103_v57  ;;  %v979_v19 = vmax.f32 %v891_v32, 0.0 }
 0x168   : > { %v992_v27 = vmax.f32 %v839_v20, 0.0 }
 0x169   : > { %v993_v35 = vmax.f32 %v858_v23, 0.0 }
 0x16b   : > { %v873_v21 = vpop.f32.mrf.mxu2 }
 0x16c   : > { %v892_v24 = vpop.f32.mrf.mxu3  ;;  %v874_v8 = vadd.f32 %v873_v21, %v3108_v22 }
 0x16d   : > { %v840_v26 = vpop.f32.mrf.mxu0 }
 0x16e   : > { %v841_v28 = vadd.f32 %v840_v26, %v3111_v17  ;;  %v859_v29 = vpop.f32.mrf.mxu1  ;;  %v986_v34 = vmax.f32 %v874_v8, 0.0 }
 0x16f   : > { %v860_v36 = vadd.f32 %v859_v29, %v3111_v17 }
 0x170   : > { %v1000_v42 = vmax.f32 %v841_v28, 0.0  ;;  %v1010_v21 = vpack.c.bf16 %v986_v34, %v978_v16  ;;  %v1262_v16 = vld [vmem:[%s4258_s7] sm:$0x7f] }
 0x171   : > { %v1001_v43 = vmax.f32 %v860_v36, 0.0  ;;  %1265 = vperm.xlu1 %2531, %v1262_v16  }
 0x172   : > { %v1016_v45 = vpack.c.bf16 %v1000_v42, %v992_v27 }
 0x173   : > { %v876_v46 = vpop.f32.mrf.mxu2  ;;  %v1017_v53 = vpack.c.bf16 %v1001_v43, %v993_v35 }
 0x174   : > { %v895_v44 = vpop.f32.mrf.mxu3  ;;  %1067 = vmatpush.bf16.msra.mxu0 %v1016_v45  ;;  %v877_v1 = vadd.f32 %v876_v46, %v3103_v57 }
 0x175   : > { %1086 = vmatpush.bf16.msra.mxu1 %v1017_v53  ;;  %v3121_v59 = vpop.f32.mrf.mxu0  ;;  %v896_v3 = vadd.f32 %v895_v44, %v3103_v57 }
 0x176   : > { %v910_v27 = vadd.f32 %v3121_v59, %v3113_v25 }
 0x177   : > { %v995_v4 = vmax.f32 %v896_v3, 0.0 }
 0x178   : > { %v3123_v62 = vpop.f32.mrf.mxu1  ;;  %1068 = vmatpush.bf16.msra.mxu0 %v1008_v63  ;;  %v980_v45 = vmax.f32 %v910_v27, 0.0 }
 0x179   : > { %1087 = vmatpush.bf16.msra.mxu1 %v1009_v0  ;;  %v929_v31 = vadd.f32 %v3123_v62, %v3113_v25 }
 0x17b   : > { %v878_v5 = vpop.f32.mrf.mxu2  ;;  %2421 = vmatmul.msk.bf16.vlgmr.msra.gmra.mxu0 %vm1054_vm4, %v3125_v56  ;;  %v981_v53 = vmax.f32 %v929_v31, 0.0 }
 0x17c   : > { %1142 = vmatpush.bf16.msrb.mxu0 %v2980_v48  ;;  %v879_v61 = vadd.f32 %v878_v5, %v3111_v17  ;;  %v897_v7 = vpop.f32.mrf.mxu3  ;;  %2423 = vmatmul.msk.bf16.vlgmr.msra.gmra.mxu1 %vm1054_vm4, %v3125_v56  ;;  %v893_v48 = vadd.f32 %v892_v24, %v3108_v22 }
 0x17d   : > { %1161 = vmatpush.bf16.msrb.mxu1 %v2982_v49  ;;  %v898_v10 = vadd.f32 %v897_v7, %v3111_v17  ;;  %v994_v49 = vmax.f32 %v877_v1, 0.0  ;;  %v911_v15 = vpop.f32.mrf.mxu0 }
 0x17e   : > { %v1002_v11 = vmax.f32 %v879_v61, 0.0  ;;  %v987_v41 = vmax.f32 %v893_v48, 0.0  ;;  %v912_v28 = vadd.f32 %v911_v15, %v3108_v22 }
 0x17f   : > { %v1003_v60 = vmax.f32 %v898_v10, 0.0 }
 0x180   : > { %v930_v6 = vpop.f32.mrf.mxu1  ;;  %v1018_v33 = vpack.c.bf16 %v1002_v11, %v994_v49  ;;  %v1011_v23 = vpack.c.bf16 %v987_v41, %v979_v19  ;;  %v988_v46 = vmax.f32 %v912_v28, 0.0 }
 0x181   : > { %v1019_v51 = vpack.c.bf16 %v1003_v60, %v995_v4  ;;  %v931_v35 = vadd.f32 %v930_v6, %v3108_v22 }
 0x182   : > { %1105 = vmatpush.bf16.msra.mxu2 %v1018_v33  ;;  %v1012_v59 = vpack.c.bf16 %v988_v46, %v980_v45 }
 0x183   : > { %1124 = vmatpush.bf16.msra.mxu3 %v1019_v51  ;;  %v947_v12 = vpop.f32.mrf.mxu2  ;;  %v989_v44 = vmax.f32 %v931_v35, 0.0  ;;  %v3202_v51 = vpop.permute.xlu2 %1037 }
 0x184   : > { %v3145_v20 = vpop.f32.mrf.mxu3  ;;  %v948_v8 = vadd.f32 %v947_v12, %v3113_v25 }
 0x185   : > { %v914_v55 = vpop.f32.mrf.mxu0  ;;  %v1013_v62 = vpack.c.bf16 %v989_v44, %v981_v53  ;;  %v967_v10 = vadd.f32 %v3145_v20, %v3113_v25 }
 0x186   : > { %1106 = vmatpush.bf16.msra.mxu2 %v1010_v21  ;;  %v982_v60 = vmax.f32 %v948_v8, 0.0  ;;  %v3208_v21 = vpop.permute.xlu1 %1041 }
 0x187   : > { %1125 = vmatpush.bf16.msra.mxu3 %v1011_v23  ;;  %v3210_v23 = vpop.permute.xlu0 %1033 }
 0x188   : > { %v933_v37 = vpop.f32.mrf.mxu1 }
 0x189   : > { %2425 = vmatmul.msk.bf16.vlgmr.msra.gmra.mxu2 %vm1054_vm4, %v3125_v56  ;;  %v934_v13 = vadd.f32 %v933_v37, %v3103_v57 }
 0x18a   : > { %1180 = vmatpush.bf16.msrb.mxu2 %v2978_v47  ;;  %2427 = vmatmul.msk.bf16.vlgmr.msra.gmra.mxu3 %vm1054_vm4, %v3125_v56  ;;  %v915_v47 = vadd.f32 %v914_v55, %v3103_v57 }
 0x18b   : > { %1199 = vmatpush.bf16.msrb.mxu3 %v2994_v52  ;;  %v949_v24 = vpop.f32.mrf.mxu2  ;;  %2422 = vmatmul.msk.bf16.gmra.mxu0 %vm1054_vm4, %v3149_v14  ;;  %v997_v42 = vmax.f32 %v934_v13, 0.0 }
 0x18c   : > { %v968_v26 = vpop.f32.mrf.mxu3  ;;  %2424 = vmatmul.msk.bf16.gmra.mxu1 %vm1054_vm4, %v3149_v14  ;;  %v996_v38 = vmax.f32 %v915_v47, 0.0  ;;  %v950_v1 = vadd.f32 %v949_v24, %v3108_v22 }
 0x18d   : > { %v916_v52 = vpop.f32.mrf.mxu0  ;;  %v969_v61 = vadd.f32 %v968_v26, %v3108_v22  ;;  %v983_v22 = vmax.f32 %v967_v10, 0.0 }
 0x18e   : > { %v917_v29 = vadd.f32 %v916_v52, %v3111_v17  ;;  %v990_v11 = vmax.f32 %v950_v1, 0.0 }
 0x18f   : > { %v991_v2 = vmax.f32 %v969_v61, 0.0 }
 0x190   : > { %v935_v30 = vpop.f32.mrf.mxu1  ;;  %v1004_v39 = vmax.f32 %v917_v29, 0.0 }
 0x191   : > { %v936_v36 = vadd.f32 %v935_v30, %v3111_v17  ;;  %v1015_v6 = vpack.c.bf16 %v991_v2, %v983_v22 }
 0x192   : > { %v1020_v50 = vpack.c.bf16 %v1004_v39, %v996_v38 }
 0x193   : > { %v1005_v43 = vmax.f32 %v936_v36, 0.0  ;;  %v952_v40 = vpop.f32.mrf.mxu2 }
 0x194   : > { %v971_v58 = vpop.f32.mrf.mxu3  ;;  %1143 = vmatpush.bf16.msrb.mxu0 %v1020_v50  ;;  %v953_v18 = vadd.f32 %v952_v40, %v3103_v57 }
 0x195   : > { %v1021_v54 = vpack.c.bf16 %v1005_v43, %v997_v42  ;;  %v972_v63 = vadd.f32 %v971_v58, %v3103_v57 }
 0x196   : > { %v998_v9 = vmax.f32 %v953_v18, 0.0 }
 0x197   : > { %1162 = vmatpush.bf16.msrb.mxu1 %v1021_v54  ;;  %v999_v48 = vmax.f32 %v972_v63, 0.0 }
 0x198   : > { %1144 = vmatpush.bf16.msrb.mxu0 %v1012_v59  ;;  %v3224_v59 = vld [vmem:[%s4256_s5] sm:$0xf] }
 0x199   : > { %2426 = vmatmul.msk.bf16.gmra.mxu2 %vm1054_vm4, %v3149_v14 }
 0x19a   : > { %2428 = vmatmul.msk.bf16.gmra.mxu3 %vm1054_vm4, %v3149_v14 }
 0x19b   : > { %1163 = vmatpush.bf16.msrb.mxu1 %v1013_v62  ;;  %v954_v0 = vpop.f32.mrf.mxu2  ;;  %2429 = vmatmul.msk.bf16.vlgmr.msrb.gmra.mxu0 %vm1054_vm4, %v3125_v56 }
 0x19c   : > { %v955_v3 = vadd.f32 %v954_v0, %v3111_v17  ;;  %v973_v5 = vpop.f32.mrf.mxu3 }
 0x19d   : > { %v974_v7 = vadd.f32 %v973_v5, %v3111_v17  ;;  %v1014_v17 = vpack.c.bf16 %v990_v11, %v982_v60 }
 0x19e   : > { %2431 = vmatmul.msk.bf16.vlgmr.msrb.gmra.mxu1 %vm1054_vm4, %v3125_v56  ;;  %v1006_v57 = vmax.f32 %v955_v3, 0.0 }
 0x19f   : > { %v1007_v49 = vmax.f32 %v974_v7, 0.0 }
 0x1a0   : > { %v1022_v15 = vpack.c.bf16 %v1006_v57, %v998_v9 }
 0x1a1   : > { %v1023_v4 = vpack.c.bf16 %v1007_v49, %v999_v48 }
 0x1a2   : > { %1181 = vmatpush.bf16.msrb.mxu2 %v1022_v15 }
 0x1a3   : > { %1200 = vmatpush.bf16.msrb.mxu3 %v1023_v4 }
 0x1a6   : > { %1182 = vmatpush.bf16.msrb.mxu2 %v1014_v17 }
 0x1a7   : > { %1201 = vmatpush.bf16.msrb.mxu3 %v1015_v6 }
 0x1a9   : > { %2433 = vmatmul.msk.bf16.vlgmr.msrb.gmra.mxu2 %vm1054_vm4, %v3125_v56 }
 0x1aa   : > { %2435 = vmatmul.msk.bf16.vlgmr.msrb.gmra.mxu3 %vm1054_vm4, %v3125_v56 }
 0x1ab   : > { %2430 = vmatmul.msk.bf16.gmra.mxu0 %vm1054_vm4, %v3149_v14 }
 0x1ae   : > { %2432 = vmatmul.msk.bf16.gmra.mxu1 %vm1054_vm4, %v3149_v14 }
 0x1b9   : > { %2434 = vmatmul.msk.bf16.gmra.mxu2 %vm1054_vm4, %v3149_v14 }
 0x1ba   : > { %2436 = vmatmul.msk.bf16.gmra.mxu3 %vm1054_vm4, %v3149_v14  ;;  %v3213_v14 = vpop.permute.xlu2 %1029 }
 0x1f8   : > { %v1070_v25 = vpop.f32.mrf.mxu0 }
 0x1f9   : > { %v1089_v32 = vpop.f32.mrf.mxu1  ;;  %v1071_v13 = vadd.f32 %v1070_v25, %v3213_v14 }
 0x1fa   : > { %v1090_v29 = vadd.f32 %v1089_v32, %v3213_v14 }
 0x1fb   : > { %v1213_v42 = vmax.f32 %v1071_v13, 0.0 }
 0x1fc   : > { %v1214_v46 = vmax.f32 %v1090_v29, 0.0 }
 0x200   : > { %v1072_v33 = vpop.f32.mrf.mxu0 }
 0x201   : > { %v1091_v34 = vpop.f32.mrf.mxu1  ;;  %v1073_v52 = vadd.f32 %v1072_v33, %v3210_v23 }
 0x202   : > { %v1092_v30 = vadd.f32 %v1091_v34, %v3210_v23 }
 0x203   : > { %v1221_v43 = vmax.f32 %v1073_v52, 0.0 }
 0x204   : > { %v1222_v50 = vmax.f32 %v1092_v30, 0.0 }
 0x205   : > { %v1246_v44 = vpack.c.bf16 %v1221_v43, %v1213_v42 }
 0x206   : > { %v1247_v54 = vpack.c.bf16 %v1222_v50, %v1214_v46 }
 0x208   : > { %v1075_v41 = vpop.f32.mrf.mxu0 }
 0x209   : > { %v1094_v56 = vpop.f32.mrf.mxu1  ;;  %v1076_v20 = vadd.f32 %v1075_v41, %v3202_v51 }
 0x20a   : > { %v1095_v55 = vadd.f32 %v1094_v56, %v3202_v51 }
 0x20b   : > { %v1229_v47 = vmax.f32 %v1076_v20, 0.0 }
 0x20c   : > { %v1108_v12 = vpop.f32.mrf.mxu2  ;;  %v1230_v28 = vmax.f32 %v1095_v55, 0.0 }
 0x20d   : > { %v1127_v19 = vpop.f32.mrf.mxu3  ;;  %v1109_v48 = vadd.f32 %v1108_v12, %v3213_v14  ;;  %v456_v12 = vld [vmem:[%s4252_s1] sm:$0x7] }
 0x20e   : > { %v1128_v15 = vadd.f32 %v1127_v19, %v3213_v14  ;;  %459 = vperm.xlu1 %2531, %v456_v12  }
 0x20f   : > { %v1215_v25 = vmax.f32 %v1109_v48, 0.0 }
 0x210   : > { %v1077_v37 = vpop.f32.mrf.mxu0  ;;  %v1216_v33 = vmax.f32 %v1128_v15, 0.0 }
 0x211   : > { %v1096_v24 = vpop.f32.mrf.mxu1  ;;  %v1078_v26 = vadd.f32 %v1077_v37, %v3208_v21 }
 0x212   : > { %v1097_v27 = vadd.f32 %v1096_v24, %v3208_v21 }
 0x213   : > { %v1237_v35 = vmax.f32 %v1078_v26, 0.0 }
 0x214   : > { %v1110_v31 = vpop.f32.mrf.mxu2  ;;  %v1238_v38 = vmax.f32 %v1097_v27, 0.0  ;;  %v1839_v27 = vld [vmem:[%s4259_s8] sm:$0x7] }
 0x215   : > { %v1129_v36 = vpop.f32.mrf.mxu3  ;;  %v1254_v39 = vpack.c.bf16 %v1237_v35, %v1229_v47  ;;  %v1111_v7 = vadd.f32 %v1110_v31, %v3210_v23  ;;  %1865 = vperm.xlu2 %2532, %v1839_v27  }
 0x216   : > { %v1255_v45 = vpack.c.bf16 %v1238_v38, %v1230_v28  ;;  %v1130_v9 = vadd.f32 %v1129_v36, %v3210_v23 }
 0x217   : > { %1277 = vmatpush.bf16.msra.mxu0 %v1254_v39  ;;  %v1223_v60 = vmax.f32 %v1111_v7, 0.0 }
 0x218   : > { %v1146_v40 = vpop.f32.mrf.mxu0  ;;  %1290 = vmatpush.bf16.msra.mxu1 %v1255_v45  ;;  %v1224_v6 = vmax.f32 %v1130_v9, 0.0 }
 0x219   : > { %v1248_v41 = vpack.c.bf16 %v1223_v60, %v1215_v25  ;;  %v1147_v55 = vadd.f32 %v1146_v40, %v3213_v14 }
 0x21a   : > { %v1249_v56 = vpack.c.bf16 %v1224_v6, %v1216_v33 }
 0x21b   : > { %v1165_v53 = vpop.f32.mrf.mxu1  ;;  %1278 = vmatpush.bf16.msra.mxu0 %v1246_v44  ;;  %v1217_v38 = vmax.f32 %v1147_v55, 0.0 }
 0x21c   : > { %v1113_v58 = vpop.f32.mrf.mxu2  ;;  %1291 = vmatpush.bf16.msra.mxu1 %v1247_v54  ;;  %v1166_v47 = vadd.f32 %v1165_v53, %v3213_v14 }
 0x21d   : > { %v1132_v62 = vpop.f32.mrf.mxu3  ;;  %v1114_v0 = vadd.f32 %v1113_v58, %v3202_v51 }
 0x21e   : > { %2437 = vmatmul.msk.bf16.vlgmr.msra.gmra.mxu0 %vm817_vm3, %v3224_v59  ;;  %v1133_v1 = vadd.f32 %v1132_v62, %v3202_v51  ;;  %v1218_v43 = vmax.f32 %v1166_v47, 0.0 }
 0x21f   : > { %2438 = vmatmul.msk.bf16.vlgmr.msra.gmra.mxu1 %vm817_vm3, %v3224_v59  ;;  %v1231_v57 = vmax.f32 %v1114_v0, 0.0 }
 0x220   : > { %v1148_v18 = vpop.f32.mrf.mxu0  ;;  %v1232_v49 = vmax.f32 %v1133_v1, 0.0 }
 0x221   : > { %v1149_v37 = vadd.f32 %v1148_v18, %v3210_v23 }
 0x223   : > { %v1167_v63 = vpop.f32.mrf.mxu1  ;;  %v1225_v39 = vmax.f32 %v1149_v37, 0.0  ;;  %v474_v37 = vld [vmem:[%s2923_s12 + $0x6] sm:$0x1] }
 0x224   : > { %v1115_v3 = vpop.f32.mrf.mxu2  ;;  %v1168_v13 = vadd.f32 %v1167_v63, %v3210_v23 }
 0x225   : > { %v1116_v5 = vadd.f32 %v1115_v3, %v3208_v21  ;;  %v1134_v61 = vpop.f32.mrf.mxu3  ;;  %v1250_v50 = vpack.c.bf16 %v1225_v39, %v1217_v38 }
 0x226   : > { %v1135_v8 = vadd.f32 %v1134_v61, %v3208_v21  ;;  %v1226_v45 = vmax.f32 %v1168_v13, 0.0 }
 0x227   : > { %v1239_v10 = vmax.f32 %v1116_v5, 0.0 }
 0x228   : > { %v1240_v11 = vmax.f32 %v1135_v8, 0.0  ;;  %v1151_v4 = vpop.f32.mrf.mxu0  ;;  %v1251_v40 = vpack.c.bf16 %v1226_v45, %v1218_v43 }
 0x229   : > { %v1256_v2 = vpack.c.bf16 %v1239_v10, %v1231_v57  ;;  %v1152_v16 = vadd.f32 %v1151_v4, %v3202_v51 }
 0x22a   : > { %v1257_v22 = vpack.c.bf16 %v1240_v11, %v1232_v49 }
 0x22b   : > { %v1170_v17 = vpop.f32.mrf.mxu1  ;;  %1303 = vmatpush.bf16.msra.mxu2 %v1256_v2  ;;  %v1233_v28 = vmax.f32 %v1152_v16, 0.0  ;;  %v3282_v16 = vpop.permute.xlu1 %1265 }
 0x22c   : > { %1316 = vmatpush.bf16.msra.mxu3 %v1257_v22  ;;  %v1184_v32 = vpop.f32.mrf.mxu2  ;;  %v1171_v19 = vadd.f32 %v1170_v17, %v3202_v51  ;;  %v2221_v17 = vld [vmem:[%s4260_s9] sm:$0x7] }
 0x22d   : > { %v1203_v34 = vpop.f32.mrf.mxu3  ;;  %v1185_v5 = vadd.f32 %v1184_v32, %v3213_v14  ;;  %2224 = vperm.xlu2 %2532, %v2221_v17  }
 0x22e   : > { %v1234_v31 = vmax.f32 %v1171_v19, 0.0  ;;  %v1204_v8 = vadd.f32 %v1203_v34, %v3213_v14 }
 0x22f   : > { %1304 = vmatpush.bf16.msra.mxu2 %v1248_v41  ;;  %v1219_v11 = vmax.f32 %v1185_v5, 0.0 }
 0x230   : > { %1317 = vmatpush.bf16.msra.mxu3 %v1249_v56  ;;  %v1153_v20 = vpop.f32.mrf.mxu0  ;;  %v1220_v15 = vmax.f32 %v1204_v8, 0.0 }
 0x231   : > { %v1154_v24 = vadd.f32 %v1153_v20, %v3208_v21 }
 0x232   : > { %2439 = vmatmul.msk.bf16.vlgmr.msra.gmra.mxu2 %vm817_vm3, %v3224_v59 }
 0x233   : > { %v1172_v26 = vpop.f32.mrf.mxu1  ;;  %2440 = vmatmul.msk.bf16.vlgmr.msra.gmra.mxu3 %vm817_vm3, %v3224_v59  ;;  %v1241_v29 = vmax.f32 %v1154_v24, 0.0  ;;  %v478_v24 = vld [vmem:[%s2923_s12 + $0x7] sm:$0x1] }
 0x234   : > { %v1173_v52 = vadd.f32 %v1172_v26, %v3208_v21  ;;  %v1186_v30 = vpop.f32.mrf.mxu2  ;;  %v482_v26 = vld [vmem:[%s2923_s12 + $0x8] sm:$0x1] }
 0x235   : > { %v1205_v36 = vpop.f32.mrf.mxu3  ;;  %v1258_v42 = vpack.c.bf16 %v1241_v29, %v1233_v28  ;;  %v1187_v18 = vadd.f32 %v1186_v30, %v3210_v23 }
 0x236   : > { %v1242_v35 = vmax.f32 %v1173_v52, 0.0  ;;  %v1206_v1 = vadd.f32 %v1205_v36, %v3210_v23 }
 0x237   : > { %1329 = vmatpush.bf16.msrb.mxu0 %v1258_v42 }
 0x238   : > { %v1259_v46 = vpack.c.bf16 %v1242_v35, %v1234_v31  ;;  %v1228_v48 = vmax.f32 %v1206_v1, 0.0  ;;  %v1840_v31 = vsub.f32 %v478_v24, %v474_v37  ;;  %v1890_v35 = vsub.f32 %v482_v26, %v478_v24 }
 0x23a   : > { %1342 = vmatpush.bf16.msrb.mxu1 %v1259_v46  ;;  %v1253_v2 = vpack.c.bf16 %v1228_v48, %v1220_v15 }
 0x23b   : > { %1330 = vmatpush.bf16.msrb.mxu0 %v1250_v50 }
 0x23c   : > { %v1189_v53 = vpop.f32.mrf.mxu2 }
 0x23d   : > { %v1208_v44 = vpop.f32.mrf.mxu3  ;;  %v1190_v54 = vadd.f32 %v1189_v53, %v3202_v51 }
 0x23e   : > { %1343 = vmatpush.bf16.msrb.mxu1 %v1251_v40  ;;  %2441 = vmatmul.msk.bf16.vlgmr.msrb.gmra.mxu0 %vm817_vm3, %v3224_v59  ;;  %v1209_v58 = vadd.f32 %v1208_v44, %v3202_v51  ;;  %v1227_v51 = vmax.f32 %v1187_v18, 0.0 }
 0x23f   : > { %v1235_v61 = vmax.f32 %v1190_v54, 0.0  ;;  %v486_v54 = vld [vmem:[%s2923_s12 + $0x9] sm:$0x1] }
 0x240   : > { %v1236_v9 = vmax.f32 %v1209_v58, 0.0  ;;  %v1252_v23 = vpack.c.bf16 %v1227_v51, %v1219_v11  ;;  %v1937_v1 = vsub.f32 %v486_v54, %v482_v26 }
 0x241   : > { %2442 = vmatmul.msk.bf16.vlgmr.msrb.gmra.mxu1 %vm817_vm3, %v3224_v59 }
 0x244   : > { %v1191_v62 = vpop.f32.mrf.mxu2 }
 0x245   : > { %v1192_v63 = vadd.f32 %v1191_v62, %v3208_v21  ;;  %v1210_v0 = vpop.f32.mrf.mxu3 }
 0x246   : > { %v1211_v3 = vadd.f32 %v1210_v0, %v3208_v21  ;;  %v3273_v21 = vld [vmem:[%s2923_s12 + $0x3] sm:$0x7] }
 0x247   : > { %v1243_v7 = vmax.f32 %v1192_v63, 0.0  ;;  %v417_v14 = vmul.f32 %v3273_v21, %v3273_v21 }
 0x248   : > { %v1244_v57 = vmax.f32 %v1211_v3, 0.0  ;;  %v490_v3 = vld [vmem:[%s2923_s12 + $0xa] sm:$0x1] }
 0x249   : > { %v1260_v10 = vpack.c.bf16 %v1243_v7, %v1235_v61  ;;  %v419_v4 = vrot.slane %v417_v14, 1  ;;  %v422_v22 = vrot.slane %v417_v14, 2  ;;  %v498_v7 = vld [vmem:[%s2923_s12 + $0xc] sm:$0x1]  ;;  %v1984_v8 = vsub.f32 %v490_v3, %v486_v54 }
 0x24a   : > { %v1261_v49 = vpack.c.bf16 %v1244_v57, %v1236_v9  ;;  %v494_v9 = vld [vmem:[%s2923_s12 + $0xb] sm:$0x1] }
 0x24b   : > { %1355 = vmatpush.bf16.msrb.mxu2 %v1260_v10  ;;  %v421_v60 = vadd.f32 %v419_v4, %v417_v14  ;;  %v2031_v10 = vsub.f32 %v494_v9, %v490_v3  ;;  %v2078_v48 = vsub.f32 %v498_v7, %v494_v9 }
 0x24c   : > { %1368 = vmatpush.bf16.msrb.mxu3 %v1261_v49  ;;  %v502_v49 = vld [vmem:[%s2923_s12 + $0xd] sm:$0x1]  ;;  %s2455_s12 = sshll.u32 %s2861_s17, 3  ;;  %s2261_s17 = scalar_lea.sflag [#allocation5], %s372_s23 }
 0x24d   : > { %v424_v6 = vadd.f32 %v422_v22, %v421_v60  ;;  %s2271_s26 = scalar_lea.hbm %s4261_s10, %s2455_s12  ;;  %s2727_s12 = scalar_lea.hbm %s4261_s10, 32 }
 0x24e   : > { %s2274_s21 = sshll.u32 %s2271_s26, 4  ;;  %s2275_s21 = int_to_ptr.hbm [resolvable:$true] %s2274_s21 }
 0x24f   : > { %1356 = vmatpush.bf16.msrb.mxu2 %v1252_v23  ;;  %2542 = vrsqrt.f32 %v424_v6  ;;  %v3280_v56 = vmax.f32 %v424_v6, 1e-24  ;;  %vm432_vm5 = vcmp.eq.f32.partialorder %v424_v6, inf  ;;  %v435_v13 = vand.u32 2147483648, %v424_v6  ;;  %s2721_s27 = sshra.s32 %s2275_s21, 4  ;;  %s2722_s27 = int_to_ptr.hbm [resolvable:$true] %s2721_s27 }
 0x250   : > { %1369 = vmatpush.bf16.msrb.mxu3 %v1253_v2  ;;  %vm434_vm6 = vcmp.eq.f32.partialorder %v424_v6, 0.0  ;;  %v2125_v2 = vsub.f32 %v502_v49, %v498_v7  ;;  %s2723_s28 = scalar_lea.hbm %s2722_s27, 16  ;;  %p2728_p5 = scmp.lt.s32.totalorder %s2722_s27, %s4261_s10 }
 0x251   : > { %2544 = vrsqrt.f32 %v3280_v56  ;;  %vm444_vm7 = vweird.f32 %v3280_v56  ;;  %p2724_p2 = scmp.ne.s32.totalorder %s2722_s27, %s2723_s28  ;;  %p2729_p7 = scmp.lt.s32.totalorder %s2727_s12, %s2723_s28 }
 0x252   : > { %2443 = vmatmul.msk.bf16.vlgmr.msrb.gmra.mxu2 %vm817_vm3, %v3224_v59 }
 0x253   : > { %2444 = vmatmul.msk.bf16.vlgmr.msrb.gmra.mxu3 %vm817_vm3, %v3224_v59  ;;  %p2725_p3 = pnand %p2724_p2, %p2883_p6  ;;  %p2730_p8 = por %p2729_p7, %p2728_p5 }
 0x255   : > { %v2543_v25 = vpop.eup %2542  ;;  %p2726_p4 = pneg %p2725_p3 }
 0x256   : > { %v426_v59 = vmul.f32 %v2543_v25, %v424_v6 }
 0x257   : > { %v3298_v30 = vpop.eup %2544  ;;  %p2731_p9 = pnand %p2730_p8, %p2726_p4 }
 0x258   : > { %v427_v32 = vmul.f32 %v2543_v25, %v426_v59  ;;  %v439_v45 = vmul.f32 %v3298_v30, %v3280_v56  ;;  %vm445_vm8 = vweird.f32 %v3298_v30 }
 0x259   : > { %vm446_vm9 = vmor %vm444_vm7, %vm445_vm8 }
 0x25a   : > { %v428_v33 = vmul.f32 0.5, %v427_v32  ;;  %v440_v63 = vmul.f32 %v3298_v30, %v439_v45 }
 0x25c   : > { %v429_v34 = vsub.f32 1.5, %v428_v33  ;;  %v441_v15 = vmul.f32 0.5, %v440_v63 }
 0x25e   : > { %v430_v41 = vmul.f32 %v2543_v25, %v429_v34  ;;  %v442_v34 = vsub.f32 1.5, %v441_v15 }
 0x260   : > { %v431_v12 = vmul.f32 %v430_v41, %v424_v6 }
 0x262   : > { %v433_v27 = vsel %vm432_vm5, %v424_v6, %v431_v12 }
 0x263   : > { %v3304_v46 = vsel %vm434_vm6, %v435_v13, %v433_v27 }
 0x264   : > { %v3307_v44 = vmul.f32 %v474_v37, %v3304_v46  ;;  %v3312_v0 = vmul.f32 %v478_v24, %v3304_v46  ;;  %v3321_v23 = vmul.f32 %v482_v26, %v3304_v46  ;;  %v3326_v4 = vmul.f32 %v1840_v31, %v3304_v46 }
 0x265   : > { %v3330_v60 = vmul.f32 %v1890_v35, %v3304_v46  ;;  %v3336_v6 = vmul.f32 %v1937_v1, %v3304_v46  ;;  %v3339_v25 = vmul.f32 %v486_v54, %v3304_v46  ;;  %v3345_v33 = vmul.f32 %v498_v7, %v3304_v46 }
 0x266   : > { %v3365_v13 = vmul.f32 %v1984_v8, %v3304_v46  ;;  %v443_v31 = vmul.f32 %v3298_v30, %v442_v34 }
 0x267   : > { %4281 = vst [vmem:[#allocation9_spill] sm:$0xff] %v3336_v6 }
 0x268   : > { %4282 = vst [vmem:[#allocation10_spill] sm:$0xff] %v3345_v33 }
 0x269   : > { %4283 = vst [vmem:[#allocation11_spill] sm:$0xff] %v3365_v13 }
 0x29b   : > { %v1280_v19 = vpop.f32.mrf.mxu0 }
 0x29c   : > { %v3286_v20 = vadd.f32 %v1280_v19, %v3282_v16  ;;  %v1293_v55 = vpop.f32.mrf.mxu1 }
 0x29d   : > { %v3292_v47 = vadd.f32 %v1293_v55, %v3282_v16  ;;  %v3354_v55 = vmul.f32 %v490_v3, %v3304_v46 }
 0x29e   : > { %v1399_v52 = vand.u32 2147483647, %v3286_v20  ;;  %v1671_v28 = vmul.f32 %v3286_v20, %v3286_v20  ;;  %v2445_v57 = vmul.f32 -1.442695, %v3286_v20  ;;  %v1375_v7 = vmax.f32 %v3286_v20, 0.0 }
 0x29f   : > { %v1400_v29 = vand.u32 2147483647, %v3292_v47  ;;  %v1672_v38 = vmul.f32 %v3292_v47, %v3292_v47  ;;  %v1376_v34 = vmax.f32 %v3292_v47, 0.0  ;;  %vm1384_vm11 = vcmp.ne.f32.partialorder %v3292_v47, %v3292_v47 }
 0x2a0   : > { %v1407_v36 = vsub.f32 0.0, %v1399_v52  ;;  %v1687_v39 = vrot.slane %v1671_v28, 1  ;;  %v1711_v42 = vrot.slane %v1671_v28, 2  ;;  %vm1383_vm15 = vcmp.ne.f32.partialorder %v3286_v20, %v3286_v20 }
 0x2a1   : > { %v1408_v43 = vsub.f32 0.0, %v1400_v29  ;;  %v1688_v40 = vrot.slane %v1672_v38, 1  ;;  %v1712_v53 = vrot.slane %v1672_v38, 2  ;;  %v3374_v29 = vmul.f32 %v494_v9, %v3304_v46 }
 0x2a2   : > { %v1415_v50 = vmul.f32 1.442695, %v1407_v36  ;;  %v1703_v58 = vadd.f32 %v1687_v39, %v1671_v28  ;;  %v3371_v28 = vmul.f32 %v2031_v10, %v3304_v46  ;;  %v3379_v36 = vmul.f32 %v2078_v48, %v3304_v46 }
 0x2a3   : > { %v1417_v62 = vmul.f32 1.442695, %v1408_v43  ;;  %v1282_v18 = vpop.f32.mrf.mxu0  ;;  %v1704_v5 = vadd.f32 %v1688_v40, %v1672_v38  ;;  %4285 = vst [vmem:[#allocation13_spill] sm:$0xff] %v3374_v29  ;;  %v3382_v38 = vmul.f32 %v502_v49, %v3304_v46  ;;  %v3393_v43 = vmul.f32 %v2125_v2, %v3304_v46 }
 0x2a4   : > { %2546 = vpow2.f32 %v1415_v50  ;;  %v1295_v61 = vpop.f32.mrf.mxu1  ;;  %v1727_v51 = vadd.f32 %v1711_v42, %v1703_v58  ;;  %4284 = vst [vmem:[#allocation12_spill] sm:$0xff] %v3371_v28  ;;  %v2446_v50 = vmul.f32 -1.442695, %v3292_v47  ;;  %v3410_v18 = vsel %vm446_vm9, %v3298_v30, %v443_v31 }
 0x2a5   : > { %2548 = vpow2.f32 %v1417_v62  ;;  %v1728_v11 = vadd.f32 %v1712_v53, %v1704_v5  ;;  %4286 = vst [vmem:[#allocation14_spill] sm:$0xff] %v3379_v36  ;;  %v3490_v19 = vmul.f32 %v3273_v21, %v3410_v18 }
 0x2a6   : > { %2550 = vrcp.f32 %v3307_v44  ;;  %v3323_v14 = vadd.f32 1e-12, %v1727_v51  ;;  %4287 = vst [vmem:[#allocation15_spill] sm:$0xff] %v3382_v38 }
 0x2a7   : > { %2552 = vrcp.f32 %v3312_v0  ;;  %v3332_v22 = vadd.f32 1e-12, %v1728_v11  ;;  %4288 = vst [vmem:[#allocation16_spill] sm:$0xff] %v3393_v43  ;;  %v450_v11 = vrot.slane %v3410_v18, 7 }
 0x2a8   : > { %2554 = vpow2.f32 %v2445_v57  ;;  %vm1749_vm10 = vweird.f32 %v3323_v14 }
 0x2a9   : > { %2556 = vrsqrt.f32 %v3323_v14  ;;  %vm1759_vm13 = vweird.f32 %v3332_v22 }
 0x2aa   : > { %v3341_v59 = vpop.eup %2546  ;;  %2558 = vrcp.f32 %v3321_v23 }
 0x2ab   : > { %v3348_v41 = vpop.eup %2548  ;;  %2560 = vrsqrt.f32 %v3332_v22  ;;  %v1431_v52 = vadd.f32 1.0, %v3341_v59  ;;  %v1434_v45 = vmul.f32 -0.5, %v3341_v59  ;;  %v1437_v2 = vand.u32 2147483647, %v3341_v59 }
 0x2ac   : > { %v1440_v37 = vadd.f32 1.0, %v3348_v41  ;;  %v3360_v24 = vpop.eup %2550  ;;  %2562 = vrcp.f32 %v3339_v25  ;;  %v1443_v39 = vmul.f32 -0.5, %v3348_v41  ;;  %v1446_v9 = vand.u32 2147483647, %v3348_v41 }
 0x2ad   : > { %v3368_v27 = vpop.eup %2552  ;;  %v1435_v8 = vadd.f32 1.0, %v1434_v45  ;;  %vm3457_vm2 = vcmp.lt.f32.partialorder %v1437_v2, 0.0004427343 }
 0x2ae   : > { %2564 = vlog2.f32 %v1440_v37  ;;  %v2555_v35 = vpop.eup %2554  ;;  %v1444_v3 = vadd.f32 1.0, %v1443_v39  ;;  %vm3439_vm12 = vcmp.lt.f32.partialorder %v1446_v9, 0.0004427343 }
 0x2af   : > { %2566 = vrcp.f32 %v3345_v33  ;;  %v3389_v42 = vpop.eup %2556  ;;  %v3407_v62 = vadd.f32 1.0, %v2555_v35 }
 0x2b0   : > { %2568 = vrcp.f32 %v3354_v55  ;;  %v3397_v40 = vpop.eup %2558  ;;  %v1744_v56 = vmul.f32 %v3389_v42, %v3323_v14  ;;  %v1445_v35 = vmul.f32 %v3348_v41, %v1444_v3  ;;  %vm1750_vm14 = vweird.f32 %v3389_v42 }
 0x2b1   : > { %4289 = vst [vmem:[#allocation17_spill] sm:$0xff] %v3397_v40  ;;  %2570 = vlog2.f32 %v1431_v52  ;;  %v3403_v58 = vpop.eup %2560  ;;  %v3449_v41 = vmul.f32 %v3273_v21, %v450_v11  ;;  %v453_v3 = vrot.slane %v3410_v18, 6  ;;  %vm3473_vm3 = vmor %vm1749_vm10, %vm1750_vm14 }
 0x2b2   : > { %2572 = vrcp.f32 %v3374_v29  ;;  %v3412_v63 = vpop.eup %2562  ;;  %v1745_v1 = vmul.f32 %v3389_v42, %v1744_v56  ;;  %v1754_v5 = vmul.f32 %v3403_v58, %v3332_v22  ;;  %vm1760_vm1 = vweird.f32 %v3403_v58 }
 0x2b3   : > { %4290 = vst [vmem:[#allocation18_spill] sm:$0xff] %v3412_v63  ;;  %2574 = vrcp.f32 %v3382_v38  ;;  %vm3484_vm4 = vmor %vm1759_vm13, %vm1760_vm1 }
 0x2b4   : > { %v2565_v61 = vpop.eup %2564  ;;  %2576 = vpow2.f32 %v2446_v50  ;;  %v1746_v51 = vmul.f32 0.5, %v1745_v1  ;;  %v1755_v10 = vmul.f32 %v3403_v58, %v1754_v5  ;;  %v1436_v50 = vmul.f32 %v3341_v59, %v1435_v8 }
 0x2b5   : > { %v1306_v57 = vpop.f32.mrf.mxu2  ;;  %v3420_v30 = vpop.eup %2566  ;;  %2578 = vrcp.f32 %v3407_v62  ;;  %v1442_v31 = vmul.f32 0.6931472, %v2565_v61 }
 0x2b6   : > { %4291 = vst [vmem:[#allocation19_spill] sm:$0xff] %v3420_v30  ;;  %v3424_v48 = vadd.f32 %v1306_v57, %v3282_v16  ;;  %v1319_v49 = vpop.f32.mrf.mxu3  ;;  %v3427_v15 = vpop.eup %2568  ;;  %v1747_v52 = vsub.f32 1.5, %v1746_v51  ;;  %v1756_v39 = vmul.f32 0.5, %v1755_v10 }
 0x2b7   : > { %4292 = vst [vmem:[#allocation20_spill] sm:$0xff] %v3427_v15  ;;  %v2571_v37 = vpop.eup %2570  ;;  %v460_v51 = vpop.permute.xlu1 %459  ;;  %v3465_v46 = vadd.f32 %v1319_v49, %v3282_v16 }
 0x2b8   : > { %v3436_v45 = vpop.eup %2572  ;;  %v1401_v1 = vand.u32 2147483647, %v3424_v48  ;;  %v1757_v61 = vsub.f32 1.5, %v1756_v39  ;;  %v1433_v59 = vmul.f32 0.6931472, %v2571_v37  ;;  %v1673_v9 = vmul.f32 %v3424_v48, %v3424_v48  ;;  %v3581_v30 = vpop.permute.xlu2 %1865 }
 0x2b9   : > { %4293 = vst [vmem:[#allocation21_spill] sm:$0xff] %v3436_v45  ;;  %v3445_v5 = vpop.eup %2574  ;;  %v1748_v11 = vmul.f32 %v3389_v42, %v1747_v52  ;;  %v1448_v39 = vsel %vm3439_vm12, %v1445_v35, %v1442_v31  ;;  %v1402_v18 = vand.u32 2147483647, %v3465_v46  ;;  %vm1385_vm6 = vcmp.ne.f32.partialorder %v3424_v48, %v3424_v48 }
 0x2ba   : > { %4296 = vst [vmem:[#allocation22_spill] sm:$0xff] %v3445_v5  ;;  %v2577_v57 = vpop.eup %2576  ;;  %v1409_v8 = vsub.f32 0.0, %v1401_v1  ;;  %v1758_v1 = vmul.f32 %v3403_v58, %v1757_v61  ;;  %v1689_v54 = vrot.slane %v1673_v9, 1  ;;  %v1713_v56 = vrot.slane %v1673_v9, 2 }
 0x2bb   : > { %v1332_v37 = vpop.f32.mrf.mxu0  ;;  %v3467_v26 = vpop.eup %2578  ;;  %v3478_v49 = vadd.f32 1.0, %v2577_v57  ;;  %v3493_v61 = vmul.f32 %v3273_v21, %v453_v3  ;;  %v1439_v57 = vsel %vm3457_vm2, %v1436_v50, %v1433_v59  ;;  %v1752_v12 = vsel %vm3473_vm3, %v3389_v42, %v1748_v11  ;;  %4307 = vst [vmem:[#allocation25_spill] sm:$0xff] %v3581_v30 }
 0x2bc   : > { %v1419_v52 = vmul.f32 1.442695, %v1409_v8  ;;  %v463_v8 = vmul.f32 %v460_v51, %v3449_v41  ;;  %v1705_v22 = vadd.f32 %v1689_v54, %v1673_v9  ;;  %v3504_v32 = vadd.f32 %v1332_v37, %v3282_v16 }
 0x2bd   : > { %v1308_v35 = vpop.f32.mrf.mxu2  ;;  %v1762_v21 = vsel %vm3484_vm4, %v3403_v58, %v1758_v1  ;;  %v1674_v54 = vmul.f32 %v3465_v46, %v3465_v46  ;;  %v1503_v42 = vadd.f32 %v1439_v57, %v1375_v7  ;;  %v1410_v50 = vsub.f32 0.0, %v1402_v18 }
 0x2be   : > { %v1345_v31 = vpop.f32.mrf.mxu1  ;;  %v1321_v14 = vpop.f32.mrf.mxu3  ;;  %v1504_v35 = vadd.f32 %v1448_v39, %v1376_v34  ;;  %2580 = vpow2.f32 %v1419_v52  ;;  %v1729_v3 = vadd.f32 %v1713_v56, %v1705_v22  ;;  %v2448_v34 = vmul.f32 -1.442695, %v3465_v46 }
 0x2bf   : > { %v2447_v14 = vmul.f32 -1.442695, %v3424_v48  ;;  %v462_v59 = vmul.f32 %v460_v51, %v3490_v19  ;;  %v465_v9 = vrot.slane %v463_v8, 1  ;;  %v1823_v10 = vperm.slane %v1752_v12, 4 }
 0x2c0   : > { %v1512_v53 = vsel %vm1384_vm11, %v3292_v47, %v1504_v35  ;;  %2582 = vrcp.f32 %v3478_v49  ;;  %v3520_v58 = vadd.f32 1e-12, %v1729_v3  ;;  %v1824_v11 = vperm.slane %v1762_v21, 4 }
 0x2c1   : > { %2584 = vpow2.f32 %v2447_v14  ;;  %v1421_v39 = vmul.f32 1.442695, %v1410_v50  ;;  %v1403_v37 = vand.u32 2147483647, %v3504_v32  ;;  %v1690_v1 = vrot.slane %v1674_v54, 1 }
 0x2c2   : > { %2586 = vpow2.f32 %v2448_v34  ;;  %v1675_v12 = vmul.f32 %v3504_v32, %v3504_v32  ;;  %v3526_v52 = vmul.f32 %v460_v51, %v3493_v61  ;;  %v3532_v8 = vsel %vm1383_vm15, %v3286_v20, %v1503_v42 }
 0x2c3   : > { %v1334_v7 = vpop.f32.mrf.mxu0  ;;  %2588 = vrsqrt.f32 %v3520_v58  ;;  %v3535_v35 = vadd.f32 %v465_v9, %v462_v59  ;;  %v3538_v22 = vmul.f32 %v1823_v10, %v3286_v20  ;;  %v1916_v14 = vsub.f32 0.0, %v1512_v53 }
 0x2c4   : > { %v2581_v2 = vpop.eup %2580  ;;  %2590 = vpow2.f32 %v1421_v39  ;;  %v1411_v18 = vsub.f32 0.0, %v1403_v37  ;;  %v3541_v51 = vmul.f32 %v1824_v11, %v3292_v47  ;;  %v1691_v3 = vrot.slane %v1675_v12, 1 }
 0x2c5   : > { %v1449_v57 = vadd.f32 1.0, %v2581_v2  ;;  %4303 = vst [vmem:[#allocation23_spill] sm:$0xff] %v3538_v22  ;;  %v1452_v21 = vmul.f32 -0.5, %v2581_v2  ;;  %v1706_v42 = vadd.f32 %v1690_v1, %v1674_v54  ;;  %v1714_v50 = vrot.slane %v1674_v54, 2 }
 0x2c6   : > { %v1347_v56 = vpop.f32.mrf.mxu1  ;;  %4304 = vst [vmem:[#allocation24_spill] sm:$0xff] %v3541_v51  ;;  %v3543_v34 = vpop.eup %2582  ;;  %v1423_v7 = vmul.f32 1.442695, %v1411_v18  ;;  %v3546_v59 = vadd.f32 %v1345_v31, %v3282_v16  ;;  %v2449_v53 = vmul.f32 -1.442695, %v3504_v32  ;;  %v3553_v39 = vrot.slane %v3538_v22, 4 }
 0x2c7   : > { %2592 = vlog2.f32 %v1449_v57  ;;  %v2585_v9 = vpop.eup %2584  ;;  %v3556_v37 = vmul.f32 %v3330_v60, %v1916_v14  ;;  %v1455_v54 = vand.u32 2147483647, %v2581_v2  ;;  %v3562_v56 = vrot.slane %v3541_v51, 4 }
 0x2c8   : > { %v2587_v11 = vpop.eup %2586  ;;  %v1453_v57 = vadd.f32 1.0, %v1452_v21  ;;  %v1707_v18 = vadd.f32 %v1691_v3, %v1675_v12  ;;  %v1715_v20 = vrot.slane %v1675_v12, 2  ;;  %v1730_v17 = vadd.f32 %v1714_v50, %v1706_v42 }
 0x2c9   : > { %v3559_v1 = vpop.eup %2588  ;;  %2594 = vpow2.f32 %v1423_v7  ;;  %v2450_v60 = vmul.f32 -1.442695, %v3546_v59  ;;  %v3569_v5 = vadd.f32 1.0, %v2585_v9  ;;  %v1404_v38 = vand.u32 2147483647, %v3546_v59 }
 0x2ca   : > { %v3564_v10 = vpop.eup %2590  ;;  %v1764_v47 = vmul.f32 %v3559_v1, %v3520_v58  ;;  %2596 = vpow2.f32 %v2449_v53  ;;  %vm3573_vm5 = vcmp.lt.f32.partialorder %v1455_v54, 0.0004427343  ;;  %v3578_v3 = vadd.f32 1.0, %v2587_v11 }
 0x2cb   : > { %v1458_v31 = vadd.f32 1.0, %v3564_v10  ;;  %v1454_v7 = vmul.f32 %v2581_v2, %v1453_v57  ;;  %v1731_v9 = vadd.f32 %v1715_v20, %v1707_v18  ;;  %v1461_v53 = vmul.f32 -0.5, %v3564_v10 }
 0x2cc   : > { %v1765_v12 = vmul.f32 %v3559_v1, %v1764_v47  ;;  %v3584_v33 = vadd.f32 1e-12, %v1730_v17  ;;  %vm1769_vm7 = vweird.f32 %v3520_v58  ;;  %v1412_v47 = vsub.f32 0.0, %v1404_v38 }
 0x2cd   : > { %v2593_v14 = vpop.eup %2592  ;;  %2598 = vlog2.f32 %v1458_v31  ;;  %v3592_v2 = vmul.f32 %v3546_v59, %v3546_v59  ;;  %vm1770_vm8 = vweird.f32 %v3559_v1  ;;  %v4308_v17 = vperm.slane %v3307_v44, 0 }
 0x2ce   : > { %v1451_v50 = vmul.f32 0.6931472, %v2593_v14  ;;  %v1766_v43 = vmul.f32 0.5, %v1765_v12  ;;  %2600 = vpow2.f32 %v2450_v60  ;;  %v1464_v38 = vand.u32 2147483647, %v3564_v10  ;;  %vm3612_vm9 = vmor %vm1769_vm7, %vm1770_vm8 }
 0x2cf   : > { %2602 = vrcp.f32 %v3569_v5  ;;  %v3594_v20 = vpop.eup %2594  ;;  %v1868_v54 = vmul.f32 %v3581_v30, %v4308_v17  ;;  %v3605_v60 = vadd.f32 1e-12, %v1731_v9  ;;  %v1462_v14 = vadd.f32 1.0, %v1461_v53 }
 0x2d0   : > { %v1767_v11 = vsub.f32 1.5, %v1766_v43  ;;  %2604 = vrcp.f32 %v3578_v3  ;;  %v2597_v31 = vpop.eup %2596  ;;  %v1457_v57 = vsel %vm3573_vm5, %v1454_v7, %v1451_v50  ;;  %v1467_v18 = vadd.f32 1.0, %v3594_v20 }
 0x2d1   : > { %2606 = vrsqrt.f32 %v3584_v33  ;;  %v1470_v50 = vmul.f32 -0.5, %v3594_v20  ;;  %v1425_v7 = vmul.f32 1.442695, %v1412_v47  ;;  %v1692_v9 = vrot.slane %v3592_v2, 1 }
 0x2d2   : > { %v1768_v43 = vmul.f32 %v3559_v1, %v1767_v11  ;;  %2608 = vlog2.f32 %v1467_v18  ;;  %v4311_v17 = vmax.f32 %v3424_v48, 0.0  ;;  %v3620_v12 = vadd.f32 1.0, %v2597_v31 }
 0x2d3   : > { %v2599_v42 = vpop.eup %2598  ;;  %vm3630_vm10 = vcmp.lt.f32.partialorder %v1464_v38, 0.0004427343  ;;  %2610 = vrsqrt.f32 %v3605_v60  ;;  %v4314_v47 = vrot.slane %v3526_v52, 2  ;;  %v1869_v31 = vmul.f32 1.442695, %v1868_v54 }
 0x2d4   : > { %v2601_v53 = vpop.eup %2600  ;;  %v1505_v36 = vadd.f32 %v1457_v57, %v4311_v17  ;;  %v1471_v28 = vadd.f32 1.0, %v1470_v50  ;;  %2612 = vpow2.f32 %v1425_v7  ;;  %vm1386_vm11 = vcmp.ne.f32.partialorder %v3465_v46, %v3465_v46 }
 0x2d5   : > { %v1358_v44 = vpop.f32.mrf.mxu2  ;;  %v3628_v45 = vpop.eup %2602  ;;  %v472_v57 = vadd.f32 %v4314_v47, %v3535_v35  ;;  %v3645_v15 = vadd.f32 1.0, %v2601_v53  ;;  %2614 = vrcp.f32 %v3620_v12  ;;  %v4316_v7 = vperm.slane %v3312_v0, 0 }
 0x2d6   : > { %v1371_v11 = vpop.f32.mrf.mxu3  ;;  %v3623_v29 = vadd.f32 %v1358_v44, %v3282_v16  ;;  %v3638_v17 = vpop.eup %2604  ;;  %v1460_v44 = vmul.f32 0.6931472, %v2599_v42  ;;  %v3654_v35 = vsel %vm1385_vm6, %v3424_v48, %v1505_v36  ;;  %2616 = vpow2.f32 %v1869_v31 }
 0x2d7   : > { %v3626_v58 = vadd.f32 %v1371_v11, %v3282_v16  ;;  %v1772_v16 = vsel %vm3612_vm9, %v3559_v1, %v1768_v43  ;;  %v1463_v11 = vmul.f32 %v3564_v10, %v1462_v14  ;;  %v3648_v52 = vpop.eup %2606  ;;  %4315 = vst [vmem:[#allocation26_spill] sm:$0xff] %v3654_v35  ;;  %v3660_v10 = vadd.f32 %v1692_v9, %v3592_v2 }
 0x2d8   : > { %v1405_v38 = vand.u32 2147483647, %v3623_v29  ;;  %v2609_v42 = vpop.eup %2608  ;;  %v1825_v54 = vperm.slane %v1772_v16, 4  ;;  %v1473_v43 = vand.u32 2147483647, %v3594_v20  ;;  %v1913_v53 = vmul.f32 %v4316_v7, %v3581_v30 }
 0x2d9   : > { %v1406_v51 = vand.u32 2147483647, %v3626_v58  ;;  %v2451_v14 = vmul.f32 -1.442695, %v3623_v29  ;;  %v1466_v36 = vsel %vm3630_vm10, %v1463_v11, %v1460_v44  ;;  %v3669_v9 = vpop.eup %2610  ;;  %2618 = vrcp.f32 %v3645_v15 }
 0x2da   : > { %v1413_v1 = vsub.f32 0.0, %v1405_v38  ;;  %v1472_v38 = vmul.f32 %v3594_v20, %v1471_v28  ;;  %v3675_v16 = vmul.f32 %v3623_v29, %v3623_v29  ;;  %v2452_v18 = vmul.f32 -1.442695, %v3626_v58 }
 0x2db   : > { %v1414_v50 = vsub.f32 0.0, %v1406_v51  ;;  %v1469_v44 = vmul.f32 0.6931472, %v2609_v42  ;;  %v4317_v0 = vperm.slane %v3321_v23, 0  ;;  %v3684_v28 = vmul.f32 %v1825_v54, %v3424_v48 }
 0x2dc   : > { %v1427_v21 = vmul.f32 1.442695, %v1413_v1  ;;  %v3681_v1 = vpop.eup %2612  ;;  %v4319_v20 = vmax.f32 %v3465_v46, 0.0  ;;  %vm3688_vm12 = vcmp.lt.f32.partialorder %v1473_v43, 0.0004427343  ;;  %vm1387_vm13 = vcmp.ne.f32.partialorder %v3504_v32, %v3504_v32 }
 0x2dd   : > { %v1360_v47 = vpop.f32.mrf.mxu2  ;;  %v1429_v51 = vmul.f32 1.442695, %v1414_v50  ;;  %v1960_v11 = vmul.f32 %v4317_v0, %v3581_v30  ;;  %4318 = vst [vmem:[#allocation27_spill] sm:$0xff] %v3684_v28  ;;  %v3692_v42 = vpop.eup %2614  ;;  %v4322_v48 = vperm.slane %v3339_v25, 0  ;;  %v1914_v50 = vmul.f32 1.442695, %v1913_v53 }
 0x2de   : > { %v1373_v31 = vpop.f32.mrf.mxu3  ;;  %2620 = vpow2.f32 %v1427_v21  ;;  %v1506_v7 = vadd.f32 %v1466_v36, %v4319_v20  ;;  %v3697_v21 = vand.u32 2147483647, %v472_v57  ;;  %v3702_v36 = vpop.eup %2616  ;;  %v1693_v0 = vrot.slane %v3675_v16, 1 }
 0x2df   : > { %2622 = vpow2.f32 %v2451_v14  ;;  %v2007_v54 = vmul.f32 %v4322_v48, %v3581_v30  ;;  %v1475_v31 = vsel %vm3688_vm12, %v1472_v38, %v1469_v44  ;;  %v1476_v57 = vadd.f32 1.0, %v3681_v1  ;;  %v3710_v20 = vpop.eup %2618 }
 0x2e0   : > { %2624 = vpow2.f32 %v1429_v51  ;;  %v1961_v51 = vmul.f32 1.442695, %v1960_v11  ;;  %v3713_v25 = vrot.slane %v3684_v28, 4  ;;  %v3719_v48 = vsel %vm1386_vm11, %v3465_v46, %v1506_v7 }
 0x2e1   : > { %2626 = vpow2.f32 %v2452_v18  ;;  %4323 = vst [vmem:[#allocation28_spill] sm:$0xff] %v3719_v48  ;;  %v3723_v53 = vmul.f32 %v3626_v58, %v3626_v58  ;;  %v4324_v38 = vperm.slane %v3354_v55, 0  ;;  %v2008_v11 = vmul.f32 1.442695, %v2007_v54 }
 0x2e2   : > { %2628 = vlog2.f32 %v1476_v57  ;;  %v1479_v47 = vmul.f32 -0.5, %v3681_v1  ;;  %v1552_v43 = vmul.f32 %v3467_v26, %v3407_v62  ;;  %v4325_v7 = vmax.f32 %v3504_v32, 0.0 }
 0x2e3   : > { %v2054_v18 = vmul.f32 %v4324_v38, %v3581_v30  ;;  %2630 = vpow2.f32 %v1914_v50  ;;  %v3739_v54 = vadd.f32 %v1693_v0, %v3675_v16  ;;  %v1482_v13 = vand.u32 2147483647, %v3681_v1 }
 0x2e4   : > { %v3728_v44 = vpop.eup %2620  ;;  %v1507_v14 = vadd.f32 %v1475_v31, %v4325_v7  ;;  %2632 = vpow2.f32 %v1961_v51  ;;  %v1553_v31 = vsub.f32 1.0, %v1552_v43  ;;  %v1480_v28 = vadd.f32 1.0, %v1479_v47 }
 0x2e5   : > { %v2623_v23 = vpop.eup %2622  ;;  %v1485_v63 = vadd.f32 1.0, %v3728_v44  ;;  %v1488_v57 = vmul.f32 -0.5, %v3728_v44  ;;  %v3744_v50 = vmul.f32 1.442695, %v2054_v18  ;;  %v1567_v18 = vmul.f32 %v3543_v34, %v3478_v49 }
 0x2e6   : > { %v2625_v55 = vpop.eup %2624  ;;  %v3751_v51 = vsel %vm1387_vm13, %v3504_v32, %v1507_v14  ;;  %v3753_v6 = vadd.f32 1.0, %v2623_v23  ;;  %vm3761_vm14 = vcmp.lt.f32.partialorder %v1482_v13, 0.0004427343  ;;  %v1491_v47 = vand.u32 2147483647, %v3728_v44 }
 0x2e7   : > { %v2627_v30 = vpop.eup %2626  ;;  %2634 = vlog2.f32 %v1485_v63  ;;  %v1494_v22 = vadd.f32 1.0, %v2625_v55  ;;  %4326 = vst [vmem:[#allocation29_spill] sm:$0xff] %v3744_v50  ;;  %v1497_v0 = vmul.f32 -0.5, %v2625_v55  ;;  %v1489_v63 = vadd.f32 1.0, %v1488_v57 }
 0x2e8   : > { %2636 = vpow2.f32 %v2008_v11  ;;  %4327 = vst [vmem:[#allocation30_spill] sm:$0xff] %v3751_v51  ;;  %v2629_v48 = vpop.eup %2628  ;;  %v3755_v43 = vadd.f32 1.0, %v2627_v30  ;;  %v1554_v14 = vmul.f32 %v3467_v26, %v1553_v31  ;;  %vm1556_vm15 = vweird.f32 %v3407_v62 }
 0x2e9   : > { %2638 = vlog2.f32 %v1494_v22  ;;  %v3759_v11 = vpop.eup %2630  ;;  %v1478_v23 = vmul.f32 0.6931472, %v2629_v48  ;;  %v1481_v30 = vmul.f32 %v3681_v1, %v1480_v28  ;;  %vm1557_vm1 = vweird.f32 %v3467_v26 }
 0x2ea   : > { %v3768_v57 = vpop.eup %2632  ;;  %v1568_v7 = vsub.f32 1.0, %v1567_v18  ;;  %v1498_v50 = vadd.f32 1.0, %v1497_v0  ;;  %v1500_v13 = vand.u32 2147483647, %v2625_v55  ;;  %v1560_v51 = vand.u32 2147483647, %v3407_v62  ;;  %vm3793_vm6 = vmor %vm1556_vm15, %vm1557_vm1 }
 0x2eb   : > { %4330 = vst [vmem:[#allocation31_spill] sm:$0xff] %v3768_v57  ;;  %v1582_v35 = vmul.f32 %v3628_v45, %v3569_v5  ;;  %vm1388_vm2 = vcmp.ne.f32.partialorder %v3546_v59, %v3546_v59  ;;  %v1490_v48 = vmul.f32 %v3728_v44, %v1489_v63  ;;  %v1562_v1 = vand.u32 2147483648, %v3407_v62 }
 0x2ec   : > { %v1569_v28 = vmul.f32 %v3543_v34, %v1568_v7  ;;  %v1555_v0 = vadd.f32 %v3467_v26, %v1554_v14  ;;  %vm1571_vm3 = vweird.f32 %v3478_v49  ;;  %vm1572_vm4 = vweird.f32 %v3543_v34 }
 0x2ed   : > { %v2635_v38 = vpop.eup %2634  ;;  %v1583_v57 = vsub.f32 1.0, %v1582_v35  ;;  %vm1389_vm5 = vcmp.ne.f32.partialorder %v3623_v29, %v3623_v29  ;;  %v1575_v7 = vand.u32 2147483647, %v3478_v49  ;;  %v1577_v63 = vand.u32 2147483648, %v3478_v49  ;;  %vm3829_vm11 = vmor %vm1571_vm3, %vm1572_vm4 }
 0x2ee   : > { %v3775_v40 = vpop.eup %2636  ;;  %v1487_v31 = vmul.f32 0.6931472, %v2635_v38  ;;  %v1484_v38 = vsel %vm3761_vm14, %v1481_v30, %v1478_v23  ;;  %vm1390_vm7 = vcmp.ne.f32.partialorder %v3626_v58, %v3626_v58  ;;  %vm3801_vm8 = vcmp.lt.f32.partialorder %v1491_v47, 0.0004427343 }
 0x2ef   : > { %4331 = vst [vmem:[#allocation32_spill] sm:$0xff] %v3775_v40  ;;  %v2639_v18 = vpop.eup %2638  ;;  %v1499_v22 = vmul.f32 %v2625_v55, %v1498_v50  ;;  %vm3805_vm9 = vcmp.lt.f32.partialorder %v1500_v13, 0.0004427343  ;;  %vm3809_vm10 = vcmp.eq.f32.partialorder %v1560_v51, 8.507059e+37  ;;  %v1563_v30 = vor.u32 1.1754944e-38, %v1562_v1 }
 0x2f0   : > { %v1496_v40 = vmul.f32 0.6931472, %v2639_v18  ;;  %v1493_v23 = vsel %vm3801_vm8, %v1490_v48, %v1487_v31  ;;  %v1570_v18 = vadd.f32 %v3543_v34, %v1569_v28  ;;  %v1597_v47 = vmul.f32 %v3638_v17, %v3578_v3 }
 0x2f1   : > { %v4340_v50 = vmax.f32 %v3546_v59, 0.0  ;;  %v1559_v51 = vsel %vm3793_vm6, %v3467_v26, %v1555_v0  ;;  %v1584_v48 = vmul.f32 %v3628_v45, %v1583_v57  ;;  %vm3834_vm12 = vcmp.eq.f32.partialorder %v1575_v7, 8.507059e+37 }
 0x2f2   : > { %v1502_v55 = vsel %vm3805_vm9, %v1499_v22, %v1496_v40  ;;  %v1578_v40 = vor.u32 1.1754944e-38, %v1577_v63  ;;  %vm1586_vm13 = vweird.f32 %v3569_v5  ;;  %v1598_v28 = vsub.f32 1.0, %v1597_v47 }
 0x2f3   : > { %v1508_v13 = vadd.f32 %v1484_v38, %v4340_v50  ;;  %v4345_v26 = vmax.f32 %v3623_v29, 0.0  ;;  %vm1587_vm14 = vweird.f32 %v3628_v45  ;;  %v1590_v49 = vand.u32 2147483647, %v3569_v5 }
 0x2f4   : > { %v1592_v38 = vand.u32 2147483648, %v3569_v5  ;;  %v4346_v44 = vmax.f32 %v3626_v58, 0.0  ;;  %v1574_v7 = vsel %vm3829_vm11, %v3543_v34, %v1570_v18  ;;  %v1599_v63 = vmul.f32 %v3638_v17, %v1598_v28  ;;  %vm3864_vm1 = vmor %vm1586_vm13, %vm1587_vm14 }
 0x2f5   : > { %v1509_v0 = vadd.f32 %v1493_v23, %v4345_v26  ;;  %v1612_v35 = vmul.f32 %v3692_v42, %v3620_v12  ;;  %v3856_v22 = vsel %vm1388_vm2, %v3546_v59, %v1508_v13  ;;  %v3860_v5 = vsel %vm3809_vm10, %v1563_v30, %v1559_v51 }
 0x2f6   : > { %v1510_v57 = vadd.f32 %v1502_v55, %v4346_v44  ;;  %v1585_v14 = vadd.f32 %v3628_v45, %v1584_v48  ;;  %vm1601_vm15 = vweird.f32 %v3578_v3  ;;  %vm1602_vm3 = vweird.f32 %v3638_v17 }
 0x2f7   : > { %v1605_v23 = vand.u32 2147483647, %v3578_v3  ;;  %v1613_v18 = vsub.f32 1.0, %v1612_v35  ;;  %v1627_v47 = vmul.f32 %v3710_v20, %v3645_v15  ;;  %v3876_v62 = vsel %vm1389_vm5, %v3623_v29, %v1509_v0  ;;  %vm3899_vm4 = vmor %vm1601_vm15, %vm1602_vm3 }
 0x2f8   : > { %v3880_v30 = vsel %vm3834_vm12, %v1578_v40, %v1574_v7  ;;  %vm3882_vm2 = vcmp.eq.f32.partialorder %v1590_v49, 8.507059e+37  ;;  %v1607_v50 = vand.u32 2147483648, %v3578_v3  ;;  %v3891_v13 = vsel %vm1390_vm7, %v3626_v58, %v1510_v57 }
 0x2f9   : > { %v1593_v51 = vor.u32 1.1754944e-38, %v1592_v38  ;;  %v1600_v31 = vadd.f32 %v3638_v17, %v1599_v63  ;;  %v1628_v48 = vsub.f32 1.0, %v1627_v47  ;;  %v1589_v1 = vsel %vm3864_vm1, %v3628_v45, %v1585_v14 }
 0x2fa   : > { %v1614_v28 = vmul.f32 %v3692_v42, %v1613_v18  ;;  %v1620_v26 = vand.u32 2147483647, %v3620_v12  ;;  %2640 = vrcp.f32 %v3753_v6  ;;  %vm3906_vm5 = vcmp.eq.f32.partialorder %v1605_v23, 8.507059e+37 }
 0x2fb   : > { %vm1616_vm6 = vweird.f32 %v3620_v12  ;;  %v1622_v45 = vand.u32 2147483648, %v3620_v12  ;;  %v1629_v3 = vmul.f32 %v3710_v20, %v1628_v48  ;;  %v1608_v49 = vor.u32 1.1754944e-38, %v1607_v50 }
 0x2fc   : > { %vm1617_vm7 = vweird.f32 %v3692_v42  ;;  %v1635_v38 = vand.u32 2147483647, %v3645_v15  ;;  %2642 = vrcp.f32 %v3755_v43  ;;  %v1604_v44 = vsel %vm3899_vm4, %v3638_v17, %v1600_v31 }
 0x2fd   : > { %vm1631_vm8 = vweird.f32 %v3645_v15  ;;  %vm1632_vm9 = vweird.f32 %v3710_v20  ;;  %v1637_v57 = vand.u32 2147483648, %v3645_v15  ;;  %v3924_v7 = vsel %vm3882_vm2, %v1593_v51, %v1589_v1  ;;  %vm3936_vm11 = vmor %vm1616_vm6, %vm1617_vm7 }
 0x2fe   : > { %v1615_v63 = vadd.f32 %v3692_v42, %v1614_v28  ;;  %vm3927_vm10 = vcmp.eq.f32.partialorder %v1620_v26, 8.507059e+37  ;;  %v4357_v14 = vrot.slane %v3723_v53, 1  ;;  %v1623_v15 = vor.u32 1.1754944e-38, %v1622_v45  ;;  %vm3951_vm12 = vmor %vm1631_vm8, %vm1632_vm9 }
 0x2ff   : > { %v1630_v23 = vadd.f32 %v3710_v20, %v1629_v3  ;;  %v1718_v18 = vrot.slane %v3723_v53, 2  ;;  %v4360_v47 = vrot.slane %v3592_v2, 2  ;;  %v3949_v51 = vsel %vm3906_vm5, %v1608_v49, %v1604_v44 }
 0x300   : > { %v1710_v17 = vadd.f32 %v4357_v14, %v3723_v53  ;;  %v3945_v50 = vpop.eup %2640  ;;  %vm3955_vm13 = vcmp.eq.f32.partialorder %v1635_v38, 8.507059e+37  ;;  %v4365_v53 = vrot.slane %v3675_v16, 2  ;;  %v1774_v2 = vmul.f32 %v3648_v52, %v3584_v33 }
 0x301   : > { %v1732_v55 = vadd.f32 %v4360_v47, %v3660_v10  ;;  %v1638_v10 = vor.u32 1.1754944e-38, %v1637_v57  ;;  %v1642_v1 = vmul.f32 %v3945_v50, %v3753_v6  ;;  %v1619_v0 = vsel %vm3936_vm11, %v3692_v42, %v1615_v63 }
 0x302   : > { %v1733_v48 = vadd.f32 %v4365_v53, %v3739_v54  ;;  %v1734_v40 = vadd.f32 %v1718_v18, %v1710_v17  ;;  %v3968_v26 = vpop.eup %2642  ;;  %v1652_v45 = vand.u32 2147483648, %v3753_v6  ;;  %v1775_v54 = vmul.f32 %v3648_v52, %v1774_v2 }
 0x303   : > { %v3966_v28 = vadd.f32 1e-12, %v1732_v55  ;;  %v1634_v3 = vsel %vm3951_vm12, %v3710_v20, %v1630_v23  ;;  %v1643_v49 = vsub.f32 1.0, %v1642_v1  ;;  %vm1646_vm14 = vweird.f32 %v3753_v6 }
 0x304   : > { %v3974_v16 = vadd.f32 1e-12, %v1733_v48  ;;  %v1657_v38 = vmul.f32 %v3968_v26, %v3755_v43  ;;  %v3983_v44 = vadd.f32 1e-12, %v1734_v40  ;;  %v1776_v57 = vmul.f32 0.5, %v1775_v54 }
 0x305   : > { %vm1779_vm15 = vweird.f32 %v3584_v33  ;;  %vm1780_vm1 = vweird.f32 %v3648_v52  ;;  %v1784_v42 = vmul.f32 %v3669_v9, %v3605_v60  ;;  %v1644_v63 = vmul.f32 %v3945_v50, %v1643_v49 }
 0x306   : > { %v1650_v20 = vand.u32 2147483647, %v3753_v6  ;;  %v1658_v14 = vsub.f32 1.0, %v1657_v38  ;;  %2644 = vrsqrt.f32 %v3966_v28  ;;  %v3994_v17 = vsel %vm3927_vm10, %v1623_v15, %v1619_v0  ;;  %vm4005_vm3 = vmor %vm1779_vm15, %vm1780_vm1 }
 0x307   : > { %v1777_v34 = vsub.f32 1.5, %v1776_v57  ;;  %v1785_v23 = vmul.f32 %v3669_v9, %v1784_v42  ;;  %2646 = vrsqrt.f32 %v3974_v16  ;;  %v4000_v33 = vsel %vm3955_vm13, %v1638_v10, %v1634_v3 }
 0x308   : > { %v4002_v18 = vor.u32 1.1754944e-38, %v1652_v45  ;;  %v1667_v47 = vand.u32 2147483648, %v3755_v43  ;;  %2648 = vrsqrt.f32 %v3983_v44  ;;  %v4011_v35 = vadd.f32 %v3945_v50, %v1644_v63 }
 0x309   : > { %vm1647_vm2 = vweird.f32 %v3945_v50  ;;  %v1778_v15 = vmul.f32 %v3648_v52, %v1777_v34  ;;  %v1786_v12 = vmul.f32 0.5, %v1785_v23  ;;  %v1659_v31 = vmul.f32 %v3968_v26, %v1658_v14 }
 0x30a   : > { %v1847_v53 = vmul.f32 %v3553_v39, %v3490_v19  ;;  %v1848_v48 = vmul.f32 %v3553_v39, %v3449_v41  ;;  %v1853_v2 = vmul.f32 %v3553_v39, %v3493_v61  ;;  %vm1789_vm4 = vweird.f32 %v3605_v60  ;;  %vm4035_vm7 = vmor %vm1646_vm14, %vm1647_vm2 }
 0x30b   : > { %v1782_v10 = vsel %vm4005_vm3, %v3648_v52, %v1778_v15  ;;  %v1787_v1 = vsub.f32 1.5, %v1786_v12  ;;  %vm1790_vm5 = vweird.f32 %v3669_v9  ;;  %vm1799_vm6 = vweird.f32 %v3966_v28 }
 0x30c   : > { %v2645_v40 = vpop.eup %2644  ;;  %v1850_v0 = vrot.slane %v1848_v48, 1  ;;  %v1855_v45 = vrot.slane %v1853_v2, 2  ;;  %v4368_v54 = vsub.f32 0.0, %v3532_v8  ;;  %v1826_v57 = vperm.slane %v1782_v10, 4  ;;  %vm4054_vm8 = vmor %vm1789_vm4, %vm1790_vm5 }
 0x30d   : > { %v2647_v49 = vpop.eup %2646  ;;  %v1788_v52 = vmul.f32 %v3669_v9, %v1787_v1  ;;  %v1794_v38 = vmul.f32 %v2645_v40, %v3966_v28  ;;  %v1843_v42 = vmul.f32 %v3360_v24, %v3697_v21  ;;  %v4048_v63 = vadd.f32 %v3968_v26, %v1659_v31 }
 0x30e   : > { %v1873_v3 = vmul.f32 %v3326_v4, %v4368_v54  ;;  %v2649_v8 = vpop.eup %2648  ;;  %v1649_v4 = vsel %vm4035_vm7, %v3945_v50, %v4011_v35  ;;  %v1804_v34 = vmul.f32 %v2647_v49, %v3974_v16  ;;  %vm1809_vm9 = vweird.f32 %v3974_v16 }
 0x30f   : > { %v1852_v24 = vadd.f32 %v1850_v0, %v1847_v53  ;;  %v1792_v23 = vsel %vm4054_vm8, %v3669_v9, %v1788_v52  ;;  %v1795_v55 = vmul.f32 %v2645_v40, %v1794_v38  ;;  %vm1800_vm10 = vweird.f32 %v2645_v40 }
 0x310   : > { %v1814_v15 = vmul.f32 %v2649_v8, %v3983_v44  ;;  %vm1819_vm11 = vweird.f32 %v3983_v44  ;;  %v1805_v60 = vmul.f32 %v2647_v49, %v1804_v34  ;;  %vm1810_vm12 = vweird.f32 %v2647_v49  ;;  %vm1801_vm14 = vmor %vm1799_vm6, %vm1800_vm10 }
 0x311   : > { %v1857_v12 = vadd.f32 %v1855_v45, %v1852_v24  ;;  %v1874_v31 = vmul.f32 1.442695, %v1873_v3  ;;  %v1796_v48 = vmul.f32 0.5, %v1795_v55  ;;  %vm1820_vm13 = vweird.f32 %v2649_v8  ;;  %vm1811_vm15 = vmor %vm1809_vm9, %vm1810_vm12 }
 0x312   : > { %v1815_v2 = vmul.f32 %v2649_v8, %v1814_v15  ;;  %v4066_v10 = vmul.f32 %v1826_v57, %v3465_v46  ;;  %v1806_v53 = vmul.f32 0.5, %v1805_v60  ;;  %v1827_v1 = vperm.slane %v1792_v23, 4  ;;  %vm1821_vm1 = vmor %vm1819_vm11, %vm1820_vm13 }
 0x313   : > { %v1858_v0 = vand.u32 2147483647, %v1857_v12  ;;  %2650 = vpow2.f32 %v1874_v31  ;;  %v1797_v9 = vsub.f32 1.5, %v1796_v48  ;;  %v1897_v52 = vmul.f32 %v3562_v56, %v3490_v19 }
 0x314   : > { %v1816_v54 = vmul.f32 0.5, %v1815_v2  ;;  %v1898_v38 = vmul.f32 %v3562_v56, %v3449_v41  ;;  %v1807_v45 = vsub.f32 1.5, %v1806_v53  ;;  %v1903_v14 = vmul.f32 %v3562_v56, %v3493_v61 }
 0x315   : > { %v1859_v3 = vmul.f32 %v1858_v0, %v1843_v42  ;;  %v1919_v46 = vmul.f32 1.442695, %v3556_v37  ;;  %v1798_v57 = vmul.f32 %v2645_v40, %v1797_v9  ;;  %v1882_v24 = vrot.slane %v3702_v36, 7 }
 0x316   : > { %v1817_v34 = vsub.f32 1.5, %v1816_v54  ;;  %v1900_v23 = vrot.slane %v1898_v38, 1  ;;  %v1808_v55 = vmul.f32 %v2647_v49, %v1807_v45  ;;  %v1905_v60 = vrot.slane %v1903_v14, 2 }
 0x317   : > { %v1860_v15 = vperm.slane %v1859_v3, 0  ;;  %2652 = vpow2.f32 %v1919_v46  ;;  %v1802_v12 = vsel %vm1801_vm14, %v2645_v40, %v1798_v57  ;;  %v1893_v37 = vmul.f32 %v3368_v27, %v3697_v21  ;;  %v4374_v46 = vld [vmem:[#allocation26_spill] sm:$0xff] }
 0x318   : > { %v1818_v56 = vmul.f32 %v2649_v8, %v1817_v34  ;;  %v1902_v42 = vadd.f32 %v1900_v23, %v1897_v52  ;;  %v1812_v48 = vsel %vm1811_vm15, %v2647_v49, %v1808_v55  ;;  %v1828_v28 = vperm.slane %v1802_v12, 4  ;;  %v4376_v34 = vld [vmem:[#allocation9_spill] sm:$0xff] }
 0x319   : > { %v2651_v31 = vpop.eup %2650  ;;  %v4088_v2 = vmul.f32 %v1827_v1, %v3504_v32  ;;  %v1929_v40 = vrot.slane %v3759_v11, 7  ;;  %v1829_v16 = vperm.slane %v1812_v48, 4  ;;  %v1861_v27 = vmul.f32 %v1860_v15, %v3860_v5  ;;  %v4373_v32 = vld [vmem:[#allocation17_spill] sm:$0xff]  ;;  %v4377_v48 = vld [vmem:[#allocation23_spill] sm:$0xff] }
 0x31a   : > { %v1822_v53 = vsel %vm1821_vm1, %v2649_v8, %v1818_v56  ;;  %v1876_v0 = vsub.f32 1.0, %v2651_v31  ;;  %v1907_v9 = vadd.f32 %v1905_v60, %v1902_v42  ;;  %v1945_v49 = vmul.f32 %v3713_v25, %v3449_v41 }
 0x31b   : > { %v1830_v54 = vperm.slane %v1822_v53, 4  ;;  %v1950_v44 = vmul.f32 %v3713_v25, %v3493_v61  ;;  %v1940_v1 = vmul.f32 %v4373_v32, %v3697_v21  ;;  %v1944_v8 = vmul.f32 %v3713_v25, %v3490_v19  ;;  %v4379_v32 = vld [vmem:[#allocation28_spill] sm:$0xff] }
 0x31c   : > { %v1878_v52 = vperm.slane %v1876_v0, 0  ;;  %v1908_v38 = vand.u32 2147483647, %v1907_v9  ;;  %v4101_v3 = vmul.f32 %v1828_v28, %v3546_v59  ;;  %v1877_v14 = vsub.f32 1.0, %v1876_v0 }
 0x31d   : > { %v2653_v45 = vpop.eup %2652  ;;  %v1947_v5 = vrot.slane %v1945_v49, 1  ;;  %v4375_v57 = vsub.f32 0.0, %v4374_v46  ;;  %v4107_v55 = vmul.f32 %v1829_v16, %v3623_v29  ;;  %v4110_v15 = vmul.f32 %v1830_v54, %v3626_v58  ;;  %v4378_v16 = vld [vmem:[#allocation31_spill] sm:$0xff]  ;;  %v4382_v46 = vld [vmem:[#allocation18_spill] sm:$0xff] }
 0x31e   : > { %v1909_v60 = vmul.f32 %v1908_v38, %v1893_v37  ;;  %v1952_v12 = vrot.slane %v1950_v44, 2  ;;  %v1879_v56 = vmul.f32 %v1878_v52, %v1861_v27  ;;  %v1921_v25 = vsub.f32 1.0, %v2653_v45 }
 0x31f   : > { %v1965_v23 = vmul.f32 %v4376_v34, %v4375_v57  ;;  %v1949_v42 = vadd.f32 %v1947_v5, %v1944_v8  ;;  %v1886_v59 = vmul.f32 %v3702_v36, %v1878_v52  ;;  %v1888_v28 = vmul.f32 %v1878_v52, %v4377_v48  ;;  %v4381_v8 = vld [vmem:[#allocation11_spill] sm:$0xff] }
 0x320   : > { %v1910_v53 = vperm.slane %v1909_v60, 0  ;;  %v1989_v0 = vrot.slane %v4066_v10, 4  ;;  %v1922_v9 = vmul.f32 %v1921_v25, %v1877_v14  ;;  %v1923_v49 = vsub.f32 1.0, %v1921_v25 }
 0x321   : > { %v1966_v31 = vmul.f32 1.442695, %v1965_v23  ;;  %v1954_v29 = vadd.f32 %v1952_v12, %v1949_v42  ;;  %v1976_v37 = vrot.slane %v4378_v16, 7  ;;  %v4380_v52 = vsub.f32 0.0, %v4379_v32  ;;  %v4383_v12 = vld [vmem:[#allocation24_spill] sm:$0xff] }
 0x322   : > { %v1911_v58 = vmul.f32 %v1910_v53, %v3880_v30  ;;  %v1992_v54 = vmul.f32 %v1989_v0, %v3449_v41  ;;  %v1997_v27 = vmul.f32 %v1989_v0, %v3493_v61  ;;  %v1924_v44 = vmul.f32 %v1923_v49, %v1877_v14 }
 0x323   : > { %2654 = vpow2.f32 %v1966_v31  ;;  %v1925_v38 = vperm.slane %v1922_v9, 0  ;;  %v1955_v36 = vand.u32 2147483647, %v1954_v29  ;;  %v2012_v45 = vmul.f32 %v4381_v8, %v4380_v52 }
 0x324   : > { %v1884_v5 = vmul.f32 %v1882_v24, %v1879_v56  ;;  %v1987_v57 = vmul.f32 %v4382_v46, %v3697_v21  ;;  %v1991_v34 = vmul.f32 %v1989_v0, %v3490_v19  ;;  %v1994_v30 = vrot.slane %v1992_v54, 1  ;;  %v4384_v54 = vld [vmem:[#allocation32_spill] sm:$0xff] }
 0x325   : > { %v1926_v23 = vmul.f32 %v1925_v38, %v1911_v58  ;;  %v1933_v60 = vmul.f32 %v3759_v11, %v1925_v38  ;;  %v1935_v25 = vmul.f32 %v1925_v38, %v4383_v12  ;;  %v1956_v42 = vmul.f32 %v1955_v36, %v1940_v1  ;;  %v4387_v12 = vld [vmem:[#allocation29_spill] sm:$0xff] }
 0x326   : > { %v1996_v14 = vadd.f32 %v1994_v30, %v1991_v34  ;;  %v1999_v31 = vrot.slane %v1997_v27, 2  ;;  %v2013_v48 = vmul.f32 1.442695, %v2012_v45  ;;  %v2036_v53 = vrot.slane %v4088_v2, 4  ;;  %v4386_v34 = vld [vmem:[#allocation30_spill] sm:$0xff] }
 0x327   : > { %v1927_v49 = vadd.f32 %v1926_v23, %v1879_v56  ;;  %v1931_v24 = vmul.f32 %v1929_v40, %v1926_v23  ;;  %v1934_v29 = vadd.f32 %v1933_v60, %v1886_v59  ;;  %v1936_v32 = vadd.f32 %v1935_v25, %v1888_v28  ;;  %v4385_v40 = vld [vmem:[#allocation20_spill] sm:$0xff] }
 0x328   : > { %v1957_v52 = vperm.slane %v1956_v42, 0  ;;  %v2001_v0 = vadd.f32 %v1999_v31, %v1996_v14  ;;  %2656 = vpow2.f32 %v2013_v48  ;;  %v2023_v11 = vrot.slane %v4384_v54, 7  ;;  %v4388_v14 = vld [vmem:[#allocation12_spill] sm:$0xff] }
 0x329   : > { %v2655_v9 = vpop.eup %2654  ;;  %v1932_v58 = vadd.f32 %v1931_v24, %v1884_v5  ;;  %v2039_v38 = vmul.f32 %v2036_v53, %v3449_v41  ;;  %v2044_v1 = vmul.f32 %v2036_v53, %v3493_v61  ;;  %v2034_v56 = vmul.f32 %v4385_v40, %v3697_v21 }
 0x32a   : > { %v1968_v8 = vsub.f32 1.0, %v2655_v9  ;;  %v1958_v27 = vmul.f32 %v1957_v52, %v3924_v7  ;;  %v2002_v46 = vand.u32 2147483647, %v2001_v0  ;;  %v2038_v59 = vmul.f32 %v2036_v53, %v3490_v19  ;;  %v4389_v52 = vld [vmem:[#allocation27_spill] sm:$0xff] }
 0x32b   : > { %v2041_v28 = vrot.slane %v2039_v38, 1  ;;  %v2057_v30 = vsub.f32 0.0, %v4386_v34  ;;  %2658 = vpow2.f32 %v4387_v12  ;;  %v2046_v42 = vrot.slane %v2044_v1, 2 }
 0x32c   : > { %v1969_v36 = vmul.f32 %v1968_v8, %v1924_v44  ;;  %v1970_v45 = vsub.f32 1.0, %v1968_v8  ;;  %v2003_v60 = vmul.f32 %v2002_v46, %v1987_v57  ;;  %v2083_v31 = vrot.slane %v4101_v3, 4  ;;  %v4390_v57 = vld [vmem:[#allocation21_spill] sm:$0xff] }
 0x32d   : > { %v2043_v25 = vadd.f32 %v2041_v28, %v2038_v59  ;;  %v2059_v7 = vmul.f32 %v4388_v14, %v2057_v30  ;;  %vm4168_vm3 = vcmp.eq.f32.partialorder %v1650_v20, 8.507059e+37  ;;  %vm1662_vm2 = vweird.f32 %v3968_v26 }
 0x32e   : > { %v1971_v5 = vmul.f32 %v1970_v45, %v1924_v44  ;;  %v1972_v23 = vperm.slane %v1969_v36, 0  ;;  %v2657_v48 = vpop.eup %2656  ;;  %v2004_v8 = vperm.slane %v2003_v60, 0  ;;  %v2081_v36 = vmul.f32 %v4390_v57, %v3697_v21 }
 0x32f   : > { %v2015_v0 = vsub.f32 1.0, %v2657_v48  ;;  %v2048_v38 = vadd.f32 %v2046_v42, %v2043_v25  ;;  %v2060_v44 = vmul.f32 1.442695, %v2059_v7  ;;  %v2091_v60 = vmul.f32 %v2083_v31, %v3493_v61 }
 0x330   : > { %v1973_v9 = vmul.f32 %v1972_v23, %v1958_v27  ;;  %v1980_v24 = vmul.f32 %v4378_v16, %v1972_v23  ;;  %v1982_v53 = vmul.f32 %v1972_v23, %v4389_v52  ;;  %v2005_v59 = vmul.f32 %v2004_v8, %v3949_v51  ;;  %v4391_v51 = vld [vmem:[#allocation25_spill] sm:$0xff] }
 0x331   : > { %v2016_v28 = vmul.f32 %v2015_v0, %v1971_v5  ;;  %v2017_v34 = vsub.f32 1.0, %v2015_v0  ;;  %v2049_v27 = vand.u32 2147483647, %v2048_v38  ;;  %v4144_v30 = vpop.eup %2658  ;;  %2660 = vpow2.f32 %v2060_v44 }
 0x332   : > { %v1974_v45 = vadd.f32 %v1973_v9, %v1927_v49  ;;  %v1978_v46 = vmul.f32 %v1976_v37, %v1973_v9  ;;  %v1981_v1 = vadd.f32 %v1980_v24, %v1934_v29  ;;  %v1983_v40 = vadd.f32 %v1982_v53, %v1936_v32  ;;  %v4392_v32 = vld [vmem:[#allocation13_spill] sm:$0xff] }
 0x333   : > { %v2086_v23 = vmul.f32 %v2083_v31, %v3449_v41  ;;  %v2018_v12 = vmul.f32 %v2017_v34, %v1971_v5  ;;  %v2019_v25 = vperm.slane %v2016_v28, 0  ;;  %v2050_v42 = vmul.f32 %v2049_v27, %v2034_v56  ;;  %v4394_v56 = vld [vmem:[#allocation14_spill] sm:$0xff] }
 0x334   : > { %v1979_v16 = vadd.f32 %v1978_v46, %v1932_v58  ;;  %v2070_v37 = vrot.slane %v4144_v30, 7  ;;  %v2085_v49 = vmul.f32 %v2083_v31, %v3490_v19  ;;  %v4393_v14 = vperm.slane %v4392_v32, 0 }
 0x335   : > { %v2088_v29 = vrot.slane %v2086_v23, 1  ;;  %v2104_v48 = vsub.f32 0.0, %v3856_v22  ;;  %v2020_v58 = vmul.f32 %v2019_v25, %v2005_v59  ;;  %v2027_v9 = vmul.f32 %v4384_v54, %v2019_v25 }
 0x336   : > { %v2101_v7 = vmul.f32 %v4393_v14, %v4391_v51  ;;  %v2029_v24 = vmul.f32 %v2019_v25, %v4066_v10  ;;  %v2051_v52 = vperm.slane %v2050_v42, 0  ;;  %v2093_v53 = vrot.slane %v2091_v60, 2  ;;  %v4395_v25 = vld [vmem:[#allocation10_spill] sm:$0xff]  ;;  %v4399_v14 = vld [vmem:[#allocation16_spill] sm:$0xff] }
 0x337   : > { %v2090_v5 = vadd.f32 %v2088_v29, %v2085_v49  ;;  %v2106_v8 = vmul.f32 %v4394_v56, %v2104_v48  ;;  %v2130_v0 = vrot.slane %v4107_v55, 4  ;;  %v2021_v31 = vadd.f32 %v2020_v58, %v1974_v45  ;;  %v2661_v46 = vpop.eup %2660 }
 0x338   : > { %v2025_v38 = vmul.f32 %v2023_v11, %v2020_v58  ;;  %v2028_v44 = vadd.f32 %v2027_v9, %v1981_v1  ;;  %v2030_v57 = vadd.f32 %v2029_v24, %v1983_v40  ;;  %v2052_v28 = vmul.f32 %v2051_v52, %v3994_v17 }
 0x339   : > { %v2095_v22 = vadd.f32 %v2093_v53, %v2090_v5  ;;  %v2102_v59 = vmul.f32 1.442695, %v2101_v7  ;;  %v2107_v34 = vmul.f32 1.442695, %v2106_v8  ;;  %v2062_v27 = vsub.f32 1.0, %v2661_v46  ;;  %v4400_v8 = vld [vmem:[#allocation19_spill] sm:$0xff] }
 0x33a   : > { %v2026_v54 = vadd.f32 %v2025_v38, %v1979_v16  ;;  %v2133_v10 = vmul.f32 %v2130_v0, %v3449_v41  ;;  %v2138_v23 = vmul.f32 %v2130_v0, %v3493_v61  ;;  %v4396_v45 = vperm.slane %v4395_v25, 0  ;;  %v4401_v25 = vld [vmem:[#allocation15_spill] sm:$0xff] }
 0x33b   : > { %v2096_v60 = vand.u32 2147483647, %v2095_v22  ;;  %2662 = vpow2.f32 %v2107_v34  ;;  %v2151_v1 = vsub.f32 0.0, %v3876_v62  ;;  %v2063_v40 = vmul.f32 %v2062_v27, %v2018_v12 }
 0x33c   : > { %v2148_v11 = vmul.f32 %v4396_v45, %v4391_v51  ;;  %v2064_v42 = vsub.f32 1.0, %v2062_v27  ;;  %v2132_v17 = vmul.f32 %v2130_v0, %v3490_v19  ;;  %v2135_v49 = vrot.slane %v2133_v10, 1 }
 0x33d   : > { %v2097_v29 = vmul.f32 %v2096_v60, %v2081_v36  ;;  %2664 = vpow2.f32 %v2102_v59  ;;  %v2153_v7 = vmul.f32 %v4399_v14, %v2151_v1  ;;  %v2066_v58 = vperm.slane %v2063_v40, 0 }
 0x33e   : > { %v2149_v32 = vmul.f32 1.442695, %v2148_v11  ;;  %v2065_v48 = vmul.f32 %v2064_v42, %v2018_v12  ;;  %v2137_v9 = vadd.f32 %v2135_v49, %v2132_v17  ;;  %v2140_v62 = vrot.slane %v2138_v23, 2 }
 0x33f   : > { %v2098_v24 = vperm.slane %v2097_v29, 0  ;;  %v2154_v52 = vmul.f32 1.442695, %v2153_v7  ;;  %v2176_v5 = vrot.slane %v4110_v15, 4  ;;  %v2067_v53 = vmul.f32 %v2066_v58, %v2052_v28 }
 0x340   : > { %2666 = vpow2.f32 %v2149_v32  ;;  %v2074_v6 = vmul.f32 %v4144_v30, %v2066_v58  ;;  %v2076_v20 = vmul.f32 %v2066_v58, %v4088_v2  ;;  %v2142_v56 = vadd.f32 %v2140_v62, %v2137_v9 }
 0x341   : > { %v2663_v36 = vpop.eup %2662  ;;  %v2128_v0 = vmul.f32 %v4400_v8, %v3697_v21  ;;  %2668 = vpow2.f32 %v2154_v52  ;;  %v2178_v12 = vmul.f32 %v2176_v5, %v3490_v19  ;;  %v2179_v38 = vmul.f32 %v2176_v5, %v3449_v41 }
 0x342   : > { %v2068_v46 = vadd.f32 %v2067_v53, %v2021_v31  ;;  %v2072_v22 = vmul.f32 %v2070_v37, %v2067_v53  ;;  %v2075_v59 = vadd.f32 %v2074_v6, %v2028_v44  ;;  %v2077_v34 = vadd.f32 %v2076_v20, %v2030_v57 }
 0x343   : > { %v2665_v27 = vpop.eup %2664  ;;  %v2109_v30 = vsub.f32 1.0, %v2663_v36  ;;  %v2143_v28 = vand.u32 2147483647, %v2142_v56  ;;  %v2181_v2 = vrot.slane %v2179_v38, 1  ;;  %v2184_v10 = vmul.f32 %v2176_v5, %v3493_v61 }
 0x344   : > { %v2073_v23 = vadd.f32 %v2072_v22, %v2026_v54  ;;  %v2099_v60 = vmul.f32 %v2098_v24, %v4000_v33  ;;  %v4402_v19 = vperm.slane %v4401_v25, 0  ;;  %v2197_v41 = vsub.f32 0.0, %v3891_v13  ;;  %v4403_v33 = vld [vmem:[#allocation22_spill] sm:$0xff] }
 0x345   : > { %v2110_v31 = vmul.f32 %v2109_v30, %v2065_v48  ;;  %v2111_v44 = vsub.f32 1.0, %v2109_v30  ;;  %v2144_v57 = vmul.f32 %v2143_v28, %v2128_v0  ;;  %v2183_v11 = vadd.f32 %v2181_v2, %v2178_v12 }
 0x346   : > { %v2194_v45 = vmul.f32 %v4402_v19, %v4391_v51  ;;  %v2667_v37 = vpop.eup %2666  ;;  %v1654_v61 = vsel %vm4168_vm3, %v4002_v18, %v1649_v4  ;;  %v2174_v54 = vmul.f32 %v4403_v33, %v3697_v21  ;;  %v2186_v51 = vrot.slane %v2184_v10, 2 }
 0x347   : > { %v2198_v13 = vmul.f32 %v2197_v41, %v4399_v14  ;;  %v2669_v1 = vpop.eup %2668  ;;  %v2112_v40 = vmul.f32 %v2111_v44, %v2065_v48  ;;  %v2113_v42 = vperm.slane %v2110_v31, 0  ;;  %v2117_v17 = vrot.slane %v2665_v27, 7 }
 0x348   : > { %v2145_v49 = vperm.slane %v2144_v57, 0  ;;  %v2156_v29 = vsub.f32 1.0, %v2669_v1  ;;  %v2188_v39 = vadd.f32 %v2186_v51, %v2183_v11  ;;  %v2195_v32 = vmul.f32 1.442695, %v2194_v45 }
 0x349   : > { %v2199_v7 = vmul.f32 1.442695, %v2198_v13  ;;  %v2114_v50 = vmul.f32 %v2113_v42, %v2099_v60  ;;  %v2121_v35 = vmul.f32 %v2665_v27, %v2113_v42  ;;  %v2123_v16 = vmul.f32 %v2113_v42, %v4101_v3  ;;  %v2225_v60 = vpop.permute.xlu2 %2224 }
 0x34a   : > { %v2146_v18 = vmul.f32 %v2145_v49, %v1654_v61  ;;  %v2157_v4 = vmul.f32 %v2156_v29, %v2112_v40  ;;  %v2158_v58 = vsub.f32 1.0, %v2156_v29  ;;  %v2189_v21 = vand.u32 2147483647, %v2188_v39 }
 0x34b   : > { %2670 = vpow2.f32 %v2199_v7  ;;  %v2115_v9 = vadd.f32 %v2114_v50, %v2068_v46  ;;  %v2119_v14 = vmul.f32 %v2117_v17, %v2114_v50  ;;  %v2122_v62 = vadd.f32 %v2121_v35, %v2075_v59 }
 0x34c   : > { %v2124_v48 = vadd.f32 %v2123_v16, %v2077_v34  ;;  %v2159_v24 = vmul.f32 %v2158_v58, %v2112_v40  ;;  %v2160_v52 = vperm.slane %v2157_v4, 0  ;;  %v2190_v5 = vmul.f32 %v2189_v21, %v2174_v54 }
 0x34d   : > { %vm1661_vm4 = vweird.f32 %v3755_v43  ;;  %v1665_v53 = vand.u32 2147483647, %v3755_v43  ;;  %v2120_v6 = vadd.f32 %v2119_v14, %v2073_v23  ;;  %v2164_v20 = vrot.slane %v2667_v37, 7 }
 0x34e   : > { %vm4203_vm5 = vmor %vm1661_vm4, %vm1662_vm2  ;;  %v2161_v56 = vmul.f32 %v2160_v52, %v2146_v18  ;;  %v2168_v36 = vmul.f32 %v2667_v37, %v2160_v52  ;;  %v2170_v8 = vmul.f32 %v2160_v52, %v4107_v55  ;;  %2672 = vpow2.f32 %v2195_v32 }
 0x34f   : > { %v1664_v0 = vsel %vm4203_vm5, %v3968_v26, %v4048_v63  ;;  %v1668_v12 = vor.u32 1.1754944e-38, %v1667_v47  ;;  %v2191_v38 = vperm.slane %v2190_v5, 0  ;;  %vm1666_vm6 = vcmp.eq.f32.partialorder %v1665_v53, 8.507059e+37 }
 0x350   : > { %v2162_v22 = vadd.f32 %v2161_v56, %v2115_v9  ;;  %v2166_v59 = vmul.f32 %v2164_v20, %v2161_v56  ;;  %v2169_v34 = vadd.f32 %v2168_v36, %v2122_v62  ;;  %v2171_v27 = vadd.f32 %v2170_v8, %v2124_v48 }
 0x351   : > { %v2671_v46 = vpop.eup %2670  ;;  %v1669_v28 = vsel %vm1666_vm6, %v1668_v12, %v1664_v0  ;;  %v2226_v47 = vrot.slane %v2225_v60, 7  ;;  %vm2253_vm7 = vcmask 1042432   ;;  %vm2255_vm8 = vcmask 1045504  }
 0x352   : > { %v2201_v30 = vsub.f32 1.0, %v2671_v46  ;;  %v2167_v2 = vadd.f32 %v2166_v59, %v2120_v6  ;;  %v2192_v55 = vmul.f32 %v2191_v38, %v1669_v28 }
 0x354   : > { %v2202_v10 = vmul.f32 %v2201_v30, %v2159_v24  ;;  %v2673_v23 = vpop.eup %2672 }
 0x355   : > { %v2207_v26 = vrot.slane %v2673_v23, 7 }
 0x356   : > { %v2203_v25 = vperm.slane %v2202_v10, 0 }
 0x358   : > { %v2204_v19 = vmul.f32 %v2203_v25, %v2192_v55  ;;  %v2211_v63 = vmul.f32 %v2673_v23, %v2203_v25  ;;  %v2213_v43 = vmul.f32 %v2203_v25, %v4110_v15 }
 0x35a   : > { %v2205_v45 = vadd.f32 %v2204_v19, %v2162_v22  ;;  %v2209_v41 = vmul.f32 %v2207_v26, %v2204_v19  ;;  %v2212_v37 = vadd.f32 %v2211_v63, %v2169_v34  ;;  %v2214_v31 = vadd.f32 %v2213_v43, %v2171_v27 }
 0x35c   : > { %v2210_v44 = vadd.f32 %v2209_v41, %v2167_v2  ;;  %v2215_v57 = vadd.f32 1e-06, %v2212_v37  ;;  %v2228_v11 = vadd.f32 %v2226_v47, %v2205_v45  ;;  %v2236_v61 = vsub.f32 0.0, %v2214_v31 }
 0x35e   : > { %2674 = vrcp.f32 %v2215_v57  ;;  %v2229_v33 = vmax.f32 %v2228_v11, 1e-06  ;;  %v2231_v54 = vadd.f32 %v2226_v47, %v2210_v44  ;;  %v2453_v1 = vclamps-f32 %v2236_v61, 1.0 }
 0x360   : > { %v2230_v51 = vmin.f32 %v2229_v33, 1.0  ;;  %v2232_v13 = vmax.f32 %v2231_v54, 1e-06  ;;  %v2239_v29 = vmul.f32 0.5, %v2453_v1 }
 0x362   : > { %v2233_v40 = vmin.f32 %v2232_v13, 1.0  ;;  %v2242_v42 = vrot.slane %v2230_v51, 1  ;;  %v2240_v50 = vadd.f32 0.5, %v2239_v29 }
 0x364   : > { %v2675_v15 = vpop.eup %2674  ;;  %v2245_v17 = vrot.slane %v2233_v40, 6  ;;  %v2251_v18 = vrot.slane %v2240_v50, 3 }
 0x365   : > { %v2218_v49 = vrot.slane %v2675_v15, 7 }
 0x366   : > { %v2254_v39 = vsel %vm2253_vm7, %v2242_v42, %v2245_v17 }
 0x367   : > { %v2220_v32 = vmul.f32 %v2218_v49, %v2210_v44 }
 0x369   : > { %v2234_v7 = vmax.f32 %v2220_v32, 1e-06 }
 0x36b   : > { %v2235_v35 = vmin.f32 %v2234_v7, 1.0 }
 0x36d   : > { %v2248_v16 = vrot.slane %v2235_v35, 3 }
 0x36f   : > { %v2256_v4 = vsel %vm2255_vm8, %v2254_v39, %v2248_v16  ;;  %v2257_v58 = vsel %vm559_vm0, %v2248_v16, %v2251_v18 }
 0x370   : > { %2258 = vst [vmem:[%s413_s18] sm:$0xff] %v2256_v4 }
 0x371   : > { %2259 = vst [vmem:[%s413_s18 + $0x8] sm:$0xf] %v2257_v58 }
 0x372   : > { %2734 = shalt.err (!%p2731_p9)
}
 0x373   : > { %s2782_s23 = smov 128   ;;  %s2783_s26 = smov 256  }
 0x374   : > { %s2784_s18 = smov 8  }
 0x375   : > { %2468 = dma.vmem_to_hbm [thread:$0]  (%p2883_p6), %s2273_s20, 256, %s2275_s21, %s2261_s17, %s2782_s23, %s2783_s26, %s2784_s18  }
 0x376 PF: > { %s2289_s11 = sand.u32 1, %s2761_s13   ;;  %p2475_p11 = pnand %p2358_p1, %p2889_p10 }
 0x377   : > { %s2290_s27 = scalar_lea.sflag [#allocation5], %s2289_s11 }
 0x378   : > { %p2476_p12 = pneg %p2475_p11 }
 0x37a   : > { %2756 = dma.done.wait (%p2476_p12), %s2290_s27, 256  }
 0x37b   : > { %2758 = vsyncadd (%p2476_p12), %s2290_s27, 4294967040  ;;  %p21_p13 = scmp.ge.s32.totalorder %s2865_s19, 4   ;;  %s4406_s13 = smov %s2765_s14 }
 0x37c   : > { %s4407_s14 = smov %s2769_s15  ;;  %s4408_s15 = smov %s2877_s22 }
 0x37d   : > { %s4409_s16 = smov %s2865_s19  ;;  %23 = sbr.rel (!%p21_p13) target bundleno = 6 (0x6), region = 143 }
 0x382   :  { %2296 = vsyncpa [#allocation4], 1 }
 0x383   :  { %2298 = vsyncpa [#allocation4 + $0x1], 1 }
 0x384   :  { %2299 = vsyncpa [#allocation5], 1 }
 0x385   :  { %2301 = vsyncpa [#allocation5 + $0x1], 1 }

</bundles_post_ra>
